<compile_context>
chip_gen: v7x
topology: tpu7x:2x2x1
jax: 0.10.0
libtpu: 0.0.40
codegen_flags: <defaults>
</compile_context>

<pallas_src>
import functools

import jax
import jax.numpy as jnp
from jax.experimental import pallas as pl
from jax.experimental.pallas import tpu as pltpu

EPS = 1e-5
LANE = 128
_VMEM_LIMIT = 64 * 1024 * 1024


def _round_up(x, m):
    return (x + m - 1) // m * m


def _pick_row_tile(m, cap=256):
    """Largest multiple of 8 that divides m and is <= cap (fallback: m)."""
    t = min(cap, m)
    t -= t % 8
    while t >= 8:
        if m % t == 0:
            return t
        t -= 8
    return m


def _pad_last(a, target):
    pad = target - a.shape[-1]
    if pad == 0:
        return a
    cfg = [(0, 0)] * (a.ndim - 1) + [(0, pad)]
    return jnp.pad(a, cfg)


# ----------------------------- Pallas kernels ------------------------------ #

def _bn_scale_shift(sum_ref, sq_ref, g_ref, b_ref, count):
    """Per-channel affine (scale, shift) from accumulated sum / sum-of-squares."""
    inv_n = 1.0 / count
    mean = sum_ref[...] * inv_n                                    # (1, C)
    var = jnp.maximum(sq_ref[...] * inv_n - mean * mean, 0.0)      # biased var
    scale = g_ref[...] * jax.lax.rsqrt(var + EPS)
    shift = b_ref[...] - mean * scale
    return scale, shift


def conv1x1_stats_kernel(x_ref, w_ref, y_ref, ssum_ref, ssq_ref):
    """y = x @ w (bf16 operands, f32 acc); accumulate per-channel sum/sumsq."""
    y = jnp.dot(x_ref[...], w_ref[...], preferred_element_type=jnp.float32)
    y_ref[...] = y.astype(y_ref.dtype)

    @pl.when(pl.program_id(0) == 0)
    def _():
        ssum_ref[...] = jnp.zeros_like(ssum_ref)
        ssq_ref[...] = jnp.zeros_like(ssq_ref)

    ssum_ref[...] += jnp.sum(y, axis=0, keepdims=True)
    ssq_ref[...] += jnp.sum(y * y, axis=0, keepdims=True)


def bn_relu_kernel(y_ref, ssum_ref, ssq_ref, g_ref, b_ref, o_ref, *, count):
    """o = relu(BN(y)) using globally accumulated statistics."""
    scale, shift = _bn_scale_shift(ssum_ref, ssq_ref, g_ref, b_ref, count)
    y = y_ref[...].astype(jnp.float32)
    o_ref[...] = jnp.maximum(y * scale + shift, 0.0).astype(o_ref.dtype)


def conv3x3_stats_kernel(hc_ref, w_ref, y_ref, ssum_ref, ssq_ref, acc_ref, *, H, W):
    """3x3 conv as 3 dh-shifted matmuls (dw folded into channels) + BN stats."""
    acc_ref[...] = jnp.zeros_like(acc_ref)
    for dh in range(3):
        tap = hc_ref[0, dh:dh + H, :, :]            # (H, W, 3*Cin_p) bf16
        tap = tap.reshape(H * W, tap.shape[-1])
        acc_ref[...] += jnp.dot(tap, w_ref[dh, :, :],
                                preferred_element_type=jnp.float32)
    acc = acc_ref[...]
    y_ref[...] = acc.astype(y_ref.dtype)

    @pl.when(pl.program_id(0) == 0)
    def _():
        ssum_ref[...] = jnp.zeros_like(ssum_ref)
        ssq_ref[...] = jnp.zeros_like(ssq_ref)

    ssum_ref[...] += jnp.sum(acc, axis=0, keepdims=True)
    ssq_ref[...] += jnp.sum(acc * acc, axis=0, keepdims=True)


def bn_relu_conv1x1_stats_kernel(y_ref, ssum_ref, ssq_ref, g_ref, b_ref, w_ref,
                                 o_ref, osum_ref, osq_ref, *, count):
    """h = relu(BN(y)); o = h @ w; accumulate stats of o (for the next BN)."""
    scale, shift = _bn_scale_shift(ssum_ref, ssq_ref, g_ref, b_ref, count)
    h = jnp.maximum(y_ref[...].astype(jnp.float32) * scale + shift, 0.0)
    o = jnp.dot(h.astype(jnp.bfloat16), w_ref[...],
                preferred_element_type=jnp.float32)
    o_ref[...] = o.astype(o_ref.dtype)

    @pl.when(pl.program_id(0) == 0)
    def _():
        osum_ref[...] = jnp.zeros_like(osum_ref)
        osq_ref[...] = jnp.zeros_like(osq_ref)

    osum_ref[...] += jnp.sum(o, axis=0, keepdims=True)
    osq_ref[...] += jnp.sum(o * o, axis=0, keepdims=True)


def bn_residual_kernel(y_ref, ssum_ref, ssq_ref, g_ref, b_ref, res_ref, o_ref,
                       *, count, last_relu):
    """o = [relu](BN(y) + residual)."""
    scale, shift = _bn_scale_shift(ssum_ref, ssq_ref, g_ref, b_ref, count)
    out = y_ref[...].astype(jnp.float32) * scale + shift + res_ref[...]
    if last_relu:
        out = jnp.maximum(out, 0.0)
    o_ref[...] = out.astype(o_ref.dtype)


# ----------------------------- pallas_call wrappers ------------------------ #

def _params(semantics):
    return pltpu.CompilerParams(dimension_semantics=semantics,
                                vmem_limit_bytes=_VMEM_LIMIT)


def conv1x1_stats(x, w, *, tm):
    m, cin = x.shape
    cout = w.shape[1]
    return pl.pallas_call(
        conv1x1_stats_kernel,
        grid=(m // tm,),
        in_specs=[
            pl.BlockSpec((tm, cin), lambda i: (i, 0)),
            pl.BlockSpec((cin, cout), lambda i: (0, 0)),
        ],
        out_specs=(
            pl.BlockSpec((tm, cout), lambda i: (i, 0)),
            pl.BlockSpec((1, cout), lambda i: (0, 0)),
            pl.BlockSpec((1, cout), lambda i: (0, 0)),
        ),
        out_shape=(
            jax.ShapeDtypeStruct((m, cout), jnp.bfloat16),
            jax.ShapeDtypeStruct((1, cout), jnp.float32),
            jax.ShapeDtypeStruct((1, cout), jnp.float32),
        ),
        compiler_params=_params(("arbitrary",)),
    )(x, w)


def bn_relu(y, ssum, ssq, g, b, *, count, tm):
    m, c = y.shape
    kernel = functools.partial(bn_relu_kernel, count=count)
    return pl.pallas_call(
        kernel,
        grid=(m // tm,),
        in_specs=[
            pl.BlockSpec((tm, c), lambda i: (i, 0)),
            pl.BlockSpec((1, c), lambda i: (0, 0)),
            pl.BlockSpec((1, c), lambda i: (0, 0)),
            pl.BlockSpec((1, c), lambda i: (0, 0)),
            pl.BlockSpec((1, c), lambda i: (0, 0)),
        ],
        out_specs=pl.BlockSpec((tm, c), lambda i: (i, 0)),
        out_shape=jax.ShapeDtypeStruct((m, c), jnp.bfloat16),
        compiler_params=_params(("parallel",)),
    )(y, ssum, ssq, g, b)


def conv3x3_stats(hcol, w, *, H, W):
    # hcol: (N, H+2, W, 3*Cin_p), w: (3, 3*Cin_p, Cout_p)
    # TODO(synk): for large feature maps, additionally tile over H bands (with a
    # 2-row halo) instead of one full image per grid step.
    n = hcol.shape[0]
    cin3 = hcol.shape[-1]
    cout = w.shape[-1]
    m = n * H * W
    kernel = functools.partial(conv3x3_stats_kernel, H=H, W=W)
    return pl.pallas_call(
        kernel,
        grid=(n,),
        in_specs=[
            pl.BlockSpec((1, H + 2, W, cin3), lambda i: (i, 0, 0, 0)),
            pl.BlockSpec((3, cin3, cout), lambda i: (0, 0, 0)),
        ],
        out_specs=(
            pl.BlockSpec((H * W, cout), lambda i: (i, 0)),
            pl.BlockSpec((1, cout), lambda i: (0, 0)),
            pl.BlockSpec((1, cout), lambda i: (0, 0)),
        ),
        out_shape=(
            jax.ShapeDtypeStruct((m, cout), jnp.bfloat16),
            jax.ShapeDtypeStruct((1, cout), jnp.float32),
            jax.ShapeDtypeStruct((1, cout), jnp.float32),
        ),
        scratch_shapes=[pltpu.VMEM((H * W, cout), jnp.float32)],
        compiler_params=_params(("arbitrary",)),
    )(hcol, w)


def bn_relu_conv1x1_stats(y, ssum, ssq, g, b, w, *, count, tm):
    m, c = y.shape
    cout = w.shape[1]
    kernel = functools.partial(bn_relu_conv1x1_stats_kernel, count=count)
    return pl.pallas_call(
        kernel,
        grid=(m // tm,),
        in_specs=[
            pl.BlockSpec((tm, c), lambda i: (i, 0)),
            pl.BlockSpec((1, c), lambda i: (0, 0)),
            pl.BlockSpec((1, c), lambda i: (0, 0)),
            pl.BlockSpec((1, c), lambda i: (0, 0)),
            pl.BlockSpec((1, c), lambda i: (0, 0)),
            pl.BlockSpec((c, cout), lambda i: (0, 0)),
        ],
        out_specs=(
            pl.BlockSpec((tm, cout), lambda i: (i, 0)),
            pl.BlockSpec((1, cout), lambda i: (0, 0)),
            pl.BlockSpec((1, cout), lambda i: (0, 0)),
        ),
        out_shape=(
            jax.ShapeDtypeStruct((m, cout), jnp.bfloat16),
            jax.ShapeDtypeStruct((1, cout), jnp.float32),
            jax.ShapeDtypeStruct((1, cout), jnp.float32),
        ),
        compiler_params=_params(("arbitrary",)),
    )(y, ssum, ssq, g, b, w)


def bn_residual(y, ssum, ssq, g, b, res, *, count, last_relu, tm):
    m, c = y.shape
    kernel = functools.partial(bn_residual_kernel, count=count, last_relu=last_relu)
    return pl.pallas_call(
        kernel,
        grid=(m // tm,),
        in_specs=[
            pl.BlockSpec((tm, c), lambda i: (i, 0)),
            pl.BlockSpec((1, c), lambda i: (0, 0)),
            pl.BlockSpec((1, c), lambda i: (0, 0)),
            pl.BlockSpec((1, c), lambda i: (0, 0)),
            pl.BlockSpec((1, c), lambda i: (0, 0)),
            pl.BlockSpec((tm, c), lambda i: (i, 0)),
        ],
        out_specs=pl.BlockSpec((tm, c), lambda i: (i, 0)),
        out_shape=jax.ShapeDtypeStruct((m, c), jnp.float32),
        compiler_params=_params(("parallel",)),
    )(y, ssum, ssq, g, b, res)


# ------------------------------ module wrapper ----------------------------- #

def init_params(key, inplanes, planes):
    """Deterministic synthetic parameters (channels-last weight layouts)."""
    expansion = 4
    k = jax.random.split(key, 3)
    p = {
        # conv1: 1x1, inplanes -> planes
        "w1": 0.1 * jax.random.normal(k[0], (inplanes, planes), jnp.float32),
        # conv2: 3x3, planes -> 2*planes, layout (kh, kw, cin, cout)
        "w2": 0.1 * jax.random.normal(k[1], (3, 3, planes, 2 * planes), jnp.float32),
        # conv3: 1x1, 2*planes -> 4*planes
        "w3": 0.1 * jax.random.normal(k[2], (2 * planes, expansion * planes), jnp.float32),
    }
    for name, c in (("1", planes), ("2", 2 * planes), ("3", expansion * planes)):
        p["g" + name] = 1.0 + 0.1 * jnp.arange(c, dtype=jnp.float32) / c
        p["b" + name] = 0.01 * jnp.arange(c, dtype=jnp.float32)
    return p


def bottleneck_big_ci(x_nchw, params, last_relu=True):
    """Forward of Bottleneck_BIG_CI (stride=1, dilation=1, downsample=None)."""
    N, cin, H, W = x_nchw.shape
    planes = params["w1"].shape[1]
    expansion = 4
    assert cin == expansion * planes, \
        "downsample=None requires inplanes == planes * expansion"
    M = N * H * W

    cin_p = _round_up(cin, LANE)              # == c4_p (asserted above)
    p_p = _round_up(planes, LANE)
    c2_p = _round_up(2 * planes, LANE)
    c4_p = _round_up(expansion * planes, LANE)
    tm = _pick_row_tile(M)

    # NCHW -> NHWC rows, pad channels to a lane multiple.
    x_nhwc = jnp.transpose(x_nchw, (0, 2, 3, 1)).astype(jnp.float32)
    x2d = _pad_last(x_nhwc.reshape(M, cin), c4_p)      # f32, reused as residual
    x_bf16 = x2d.astype(jnp.bfloat16)

    # Padded weights (zero pad rows/cols -> identical math on real channels).
    w1 = jnp.pad(params["w1"], ((0, cin_p - cin), (0, p_p - planes))).astype(jnp.bfloat16)
    w2 = jnp.pad(params["w2"], ((0, 0), (0, 0), (0, p_p - planes),
                                (0, c2_p - 2 * planes))).astype(jnp.bfloat16)
    w2k = w2.reshape(3, 3 * p_p, c2_p)                 # dw folded into rows
    w3 = jnp.pad(params["w3"], ((0, c2_p - 2 * planes),
                                (0, c4_p - expansion * planes))).astype(jnp.bfloat16)

    def bn_params(name, c, cp):
        g = jnp.pad(params["g" + name], (0, cp - c), constant_values=1.0).reshape(1, cp)
        b = jnp.pad(params["b" + name], (0, cp - c)).reshape(1, cp)
        return g, b

    g1, b1 = bn_params("1", planes, p_p)
    g2, b2 = bn_params("2", 2 * planes, c2_p)
    g3, b3 = bn_params("3", expansion * planes, c4_p)

    # conv1 (1x1) + BN1 statistics.
    y1, s1, q1 = conv1x1_stats(x_bf16, w1, tm=tm)
    # BN1 + ReLU.
    h1 = bn_relu(y1, s1, q1, g1, b1, count=M, tm=tm)

    # conv2 (3x3, stride 1, pad 1): fold the 3 dw shifts into the channel axis
    # (lane-dense 3*p_p channels); dh shifts are handled inside the kernel.
    h1p = jnp.pad(h1.reshape(N, H, W, p_p), ((0, 0), (1, 1), (1, 1), (0, 0)))
    hcol = jnp.concatenate([h1p[:, :, dw:dw + W, :] for dw in range(3)], axis=-1)
    y2, s2, q2 = conv3x3_stats(hcol, w2k, H=H, W=W)

    # BN2 + ReLU + conv3 (1x1) fused, accumulating BN3 statistics.
    y3, s3, q3 = bn_relu_conv1x1_stats(y2, s2, q2, g2, b2, w3, count=M, tm=tm)

    # BN3 + residual add + optional last ReLU.
    out2d = bn_residual(y3, s3, q3, g3, b3, x2d, count=M,
                        last_relu=last_relu, tm=tm)

    # Un-pad channels, center crop, back to NCHW.
    out = out2d.reshape(N, H, W, c4_p)[:, 1:-1, 1:-1, :expansion * planes]
    return jnp.transpose(out, (0, 3, 1, 2))


# ----------------------------------- main ----------------------------------- #

if __name__ == "__main__":
    # downsample=None => inplanes must equal planes * expansion.
    N, inplanes, planes, H, W = 2, 16, 4, 16, 16

    key = jax.random.PRNGKey(0)
    kx, kp = jax.random.split(key)
    x = jax.random.normal(kx, (N, inplanes, H, W), jnp.float32)   # NCHW like PyTorch
    params = init_params(kp, inplanes, planes)

    fwd = jax.jit(bottleneck_big_ci, static_argnames=("last_relu",))
    out = jax.block_until_ready(fwd(x, params, last_relu=True))

    expected = (N, planes * 4, H - 2, W - 2)
    assert out.shape == expected, (out.shape, expected)
    assert bool(jnp.all(jnp.isfinite(out)))
    print("KERNEL_OK")
</pallas_src>

<mosaic_0001>
module attributes {stable_mosaic.version = 11 : i64} {
  func.func @conv1x1_stats_kernel(%arg0: i32, %arg1: memref<256x128xbf16, #tpu.memory_space<vmem>>, %arg2: memref<128x128xbf16, #tpu.memory_space<vmem>>, %arg3: memref<256x128xbf16, #tpu.memory_space<vmem>>, %arg4: memref<1x128xf32, #tpu.memory_space<vmem>>, %arg5: memref<1x128xf32, #tpu.memory_space<vmem>>) attributes {dimension_semantics = [#tpu.dimension_semantics<arbitrary>], iteration_bounds = array<i64: 2>, scalar_prefetch = 0 : i64, scratch_operands = 0 : i64, tpu.core_type = #tpu.core_type<tc>, window_params = [{transform_indices = @transform_0, window_bounds = array<i64: 256, 128>}, {pipeline_mode = #tpu.pipeline_mode<synchronous>, transform_indices = @transform_1, window_bounds = array<i64: 128, 128>}, {transform_indices = @transform_2, window_bounds = array<i64: 256, 128>}, {pipeline_mode = #tpu.pipeline_mode<synchronous>, transform_indices = @transform_3, window_bounds = array<i64: 1, 128>}, {pipeline_mode = #tpu.pipeline_mode<synchronous>, transform_indices = @transform_4, window_bounds = array<i64: 1, 128>}]} {
    %c0 = arith.constant 0 : index
    %c0_0 = arith.constant 0 : index
    %0 = vector.load %arg1[%c0, %c0_0] : memref<256x128xbf16, #tpu.memory_space<vmem>>, vector<256x128xbf16>
    %c0_1 = arith.constant 0 : index
    %c0_2 = arith.constant 0 : index
    %1 = vector.load %arg2[%c0_1, %c0_2] : memref<128x128xbf16, #tpu.memory_space<vmem>>, vector<128x128xbf16>
    %cst = arith.constant dense<0.000000e+00> : vector<256x128xf32>
    %2 = tpu.matmul %0, %1, %cst {dimension_numbers = #tpu.dot_dimension_numbers<[1], [0], [0], [1], [0, 0, 1, 1], [], []>} : vector<256x128xbf16>, vector<128x128xbf16>, vector<256x128xf32> -> vector<256x128xf32>
    %3 = arith.truncf %2 : vector<256x128xf32> to vector<256x128xbf16>
    %c0_3 = arith.constant 0 : index
    %c0_4 = arith.constant 0 : index
    %4 = vector.load %arg3[%c0_3, %c0_4] : memref<256x128xbf16, #tpu.memory_space<vmem>>, vector<256x128xbf16>
    tpu.vector_store %arg3[%c0_3, %c0_4], %3 {strides = array<i32>} : memref<256x128xbf16, #tpu.memory_space<vmem>>, vector<256x128xbf16>,
    %c0_i32 = arith.constant 0 : i32
    %5 = arith.cmpi eq, %arg0, %c0_i32 : i32
    %6 = arith.extui %5 : i1 to i32
    %c0_i32_5 = arith.constant 0 : i32
    %7 = arith.cmpi ne, %6, %c0_i32_5 : i32
    scf.if %7 {
      %cst_16 = arith.constant 0.000000e+00 : f32
      %19 = vector.broadcast %cst_16 : f32 to vector<1x128xf32>
      %c0_17 = arith.constant 0 : index
      %c0_18 = arith.constant 0 : index
      %20 = vector.load %arg4[%c0_17, %c0_18] : memref<1x128xf32, #tpu.memory_space<vmem>>, vector<1x128xf32>
      tpu.vector_store %arg4[%c0_17, %c0_18], %19 {strides = array<i32>} : memref<1x128xf32, #tpu.memory_space<vmem>>, vector<1x128xf32>,
      %cst_19 = arith.constant 0.000000e+00 : f32
      %21 = vector.broadcast %cst_19 : f32 to vector<1x128xf32>
      %c0_20 = arith.constant 0 : index
      %c0_21 = arith.constant 0 : index
      %22 = vector.load %arg5[%c0_20, %c0_21] : memref<1x128xf32, #tpu.memory_space<vmem>>, vector<1x128xf32>
      tpu.vector_store %arg5[%c0_20, %c0_21], %21 {strides = array<i32>} : memref<1x128xf32, #tpu.memory_space<vmem>>, vector<1x128xf32>,
    } else {
    }
    %c0_6 = arith.constant 0 : index
    %c0_7 = arith.constant 0 : index
    %8 = vector.load %arg4[%c0_6, %c0_7] : memref<1x128xf32, #tpu.memory_space<vmem>>, vector<1x128xf32>
    %cst_8 = arith.constant dense<0.000000e+00> : vector<128xf32>
    %9 = vector.multi_reduction <add>, %2, %cst_8 [0] : vector<256x128xf32> to vector<128xf32>
    %10 = vector.shape_cast %9 : vector<128xf32> to vector<1x128xf32>
    %11 = arith.addf %8, %10 : vector<1x128xf32>
    %c0_9 = arith.constant 0 : index
    %c0_10 = arith.constant 0 : index
    %12 = vector.load %arg4[%c0_9, %c0_10] : memref<1x128xf32, #tpu.memory_space<vmem>>, vector<1x128xf32>
    tpu.vector_store %arg4[%c0_9, %c0_10], %11 {strides = array<i32>} : memref<1x128xf32, #tpu.memory_space<vmem>>, vector<1x128xf32>,
    %c0_11 = arith.constant 0 : index
    %c0_12 = arith.constant 0 : index
    %13 = vector.load %arg5[%c0_11, %c0_12] : memref<1x128xf32, #tpu.memory_space<vmem>>, vector<1x128xf32>
    %14 = arith.mulf %2, %2 : vector<256x128xf32>
    %cst_13 = arith.constant dense<0.000000e+00> : vector<128xf32>
    %15 = vector.multi_reduction <add>, %14, %cst_13 [0] : vector<256x128xf32> to vector<128xf32>
    %16 = vector.shape_cast %15 : vector<128xf32> to vector<1x128xf32>
    %17 = arith.addf %13, %16 : vector<1x128xf32>
    %c0_14 = arith.constant 0 : index
    %c0_15 = arith.constant 0 : index
    %18 = vector.load %arg5[%c0_14, %c0_15] : memref<1x128xf32, #tpu.memory_space<vmem>>, vector<1x128xf32>
    tpu.vector_store %arg5[%c0_14, %c0_15], %17 {strides = array<i32>} : memref<1x128xf32, #tpu.memory_space<vmem>>, vector<1x128xf32>,
    return
  }
  func.func @transform_0(%arg0: i32) -> (i32, i32) {
    %c0_i32 = arith.constant 0 : i32
    %c0_i32_0 = arith.constant 0 : i32
    return %arg0, %c0_i32 : i32, i32
  }
  func.func @transform_1(%arg0: i32) -> (i32, i32) {
    %c0_i32 = arith.constant 0 : i32
    %c0_i32_0 = arith.constant 0 : i32
    %c0_i32_1 = arith.constant 0 : i32
    return %c0_i32, %c0_i32_0 : i32, i32
  }
  func.func @transform_2(%arg0: i32) -> (i32, i32) {
    %c0_i32 = arith.constant 0 : i32
    %c0_i32_0 = arith.constant 0 : i32
    return %arg0, %c0_i32 : i32, i32
  }
  func.func @transform_3(%arg0: i32) -> (i32, i32) {
    %c0_i32 = arith.constant 0 : i32
    %c0_i32_0 = arith.constant 0 : i32
    %c0_i32_1 = arith.constant 0 : i32
    return %c0_i32, %c0_i32_0 : i32, i32
  }
  func.func @transform_4(%arg0: i32) -> (i32, i32) {
    %c0_i32 = arith.constant 0 : i32
    %c0_i32_0 = arith.constant 0 : i32
    %c0_i32_1 = arith.constant 0 : i32
    return %c0_i32, %c0_i32_0 : i32, i32
  }
}

module attributes {stable_mosaic.version = 11 : i64} {
  func.func @bn_relu_kernel(%arg0: i32, %arg1: memref<256x128xbf16, #tpu.memory_space<vmem>>, %arg2: memref<1x128xf32, #tpu.memory_space<vmem>>, %arg3: memref<1x128xf32, #tpu.memory_space<vmem>>, %arg4: memref<1x128xf32, #tpu.memory_space<vmem>>, %arg5: memref<1x128xf32, #tpu.memory_space<vmem>>, %arg6: memref<256x128xbf16, #tpu.memory_space<vmem>>) attributes {dimension_semantics = [#tpu.dimension_semantics<parallel>], iteration_bounds = array<i64: 2>, scalar_prefetch = 0 : i64, scratch_operands = 0 : i64, tpu.core_type = #tpu.core_type<tc>, window_params = [{transform_indices = @transform_0, window_bounds = array<i64: 256, 128>}, {pipeline_mode = #tpu.pipeline_mode<synchronous>, transform_indices = @transform_1, window_bounds = array<i64: 1, 128>}, {pipeline_mode = #tpu.pipeline_mode<synchronous>, transform_indices = @transform_2, window_bounds = array<i64: 1, 128>}, {pipeline_mode = #tpu.pipeline_mode<synchronous>, transform_indices = @transform_3, window_bounds = array<i64: 1, 128>}, {pipeline_mode = #tpu.pipeline_mode<synchronous>, transform_indices = @transform_4, window_bounds = array<i64: 1, 128>}, {transform_indices = @transform_5, window_bounds = array<i64: 256, 128>}]} {
    %c0 = arith.constant 0 : index
    %c0_0 = arith.constant 0 : index
    %0 = vector.load %arg2[%c0, %c0_0] : memref<1x128xf32, #tpu.memory_space<vmem>>, vector<1x128xf32>
    %cst = arith.constant 0.001953125 : f32
    %1 = vector.broadcast %cst : f32 to vector<1x128xf32>
    %2 = arith.mulf %0, %1 : vector<1x128xf32>
    %c0_1 = arith.constant 0 : index
    %c0_2 = arith.constant 0 : index
    %3 = vector.load %arg3[%c0_1, %c0_2] : memref<1x128xf32, #tpu.memory_space<vmem>>, vector<1x128xf32>
    %cst_3 = arith.constant 0.001953125 : f32
    %4 = vector.broadcast %cst_3 : f32 to vector<1x128xf32>
    %5 = arith.mulf %3, %4 : vector<1x128xf32>
    %6 = arith.mulf %2, %2 : vector<1x128xf32>
    %7 = arith.subf %5, %6 : vector<1x128xf32>
    %cst_4 = arith.constant 0.000000e+00 : f32
    %8 = vector.broadcast %cst_4 : f32 to vector<1x128xf32>
    %9 = arith.maximumf %7, %8 : vector<1x128xf32>
    %c0_5 = arith.constant 0 : index
    %c0_6 = arith.constant 0 : index
    %10 = vector.load %arg4[%c0_5, %c0_6] : memref<1x128xf32, #tpu.memory_space<vmem>>, vector<1x128xf32>
    %cst_7 = arith.constant 9.99999974E-6 : f32
    %11 = vector.broadcast %cst_7 : f32 to vector<1x128xf32>
    %12 = arith.addf %9, %11 : vector<1x128xf32>
    %13 = math.rsqrt %12 : vector<1x128xf32>
    %14 = arith.mulf %10, %13 : vector<1x128xf32>
    %c0_8 = arith.constant 0 : index
    %c0_9 = arith.constant 0 : index
    %15 = vector.load %arg5[%c0_8, %c0_9] : memref<1x128xf32, #tpu.memory_space<vmem>>, vector<1x128xf32>
    %16 = arith.mulf %2, %14 : vector<1x128xf32>
    %17 = arith.subf %15, %16 : vector<1x128xf32>
    %c0_10 = arith.constant 0 : index
    %c0_11 = arith.constant 0 : index
    %18 = vector.load %arg1[%c0_10, %c0_11] : memref<256x128xbf16, #tpu.memory_space<vmem>>, vector<256x128xbf16>
    %19 = arith.extf %18 : vector<256x128xbf16> to vector<256x128xf32>
    %20 = vector.broadcast %14 : vector<1x128xf32> to vector<256x128xf32>
    %21 = arith.mulf %19, %20 : vector<256x128xf32>
    %22 = vector.broadcast %17 : vector<1x128xf32> to vector<256x128xf32>
    %23 = arith.addf %21, %22 : vector<256x128xf32>
    %cst_12 = arith.constant 0.000000e+00 : f32
    %24 = vector.broadcast %cst_12 : f32 to vector<256x128xf32>
    %25 = arith.maximumf %23, %24 : vector<256x128xf32>
    %26 = arith.truncf %25 : vector<256x128xf32> to vector<256x128xbf16>
    %c0_13 = arith.constant 0 : index
    %c0_14 = arith.constant 0 : index
    %27 = vector.load %arg6[%c0_13, %c0_14] : memref<256x128xbf16, #tpu.memory_space<vmem>>, vector<256x128xbf16>
    tpu.vector_store %arg6[%c0_13, %c0_14], %26 {strides = array<i32>} : memref<256x128xbf16, #tpu.memory_space<vmem>>, vector<256x128xbf16>,
    return
  }
  func.func @transform_0(%arg0: i32) -> (i32, i32) {
    %c0_i32 = arith.constant 0 : i32
    %c0_i32_0 = arith.constant 0 : i32
    return %arg0, %c0_i32 : i32, i32
  }
  func.func @transform_1(%arg0: i32) -> (i32, i32) {
    %c0_i32 = arith.constant 0 : i32
    %c0_i32_0 = arith.constant 0 : i32
    %c0_i32_1 = arith.constant 0 : i32
    return %c0_i32, %c0_i32_0 : i32, i32
  }
  func.func @transform_2(%arg0: i32) -> (i32, i32) {
    %c0_i32 = arith.constant 0 : i32
    %c0_i32_0 = arith.constant 0 : i32
    %c0_i32_1 = arith.constant 0 : i32
    return %c0_i32, %c0_i32_0 : i32, i32
  }
  func.func @transform_3(%arg0: i32) -> (i32, i32) {
    %c0_i32 = arith.constant 0 : i32
    %c0_i32_0 = arith.constant 0 : i32
    %c0_i32_1 = arith.constant 0 : i32
    return %c0_i32, %c0_i32_0 : i32, i32
  }
  func.func @transform_4(%arg0: i32) -> (i32, i32) {
    %c0_i32 = arith.constant 0 : i32
    %c0_i32_0 = arith.constant 0 : i32
    %c0_i32_1 = arith.constant 0 : i32
    return %c0_i32, %c0_i32_0 : i32, i32
  }
  func.func @transform_5(%arg0: i32) -> (i32, i32) {
    %c0_i32 = arith.constant 0 : i32
    %c0_i32_0 = arith.constant 0 : i32
    return %arg0, %c0_i32 : i32, i32
  }
}

module attributes {stable_mosaic.version = 11 : i64} {
  func.func @conv3x3_stats_kernel(%arg0: i32, %arg1: memref<1x18x16x384xbf16, #tpu.memory_space<vmem>>, %arg2: memref<3x384x128xbf16, #tpu.memory_space<vmem>>, %arg3: memref<256x128xbf16, #tpu.memory_space<vmem>>, %arg4: memref<1x128xf32, #tpu.memory_space<vmem>>, %arg5: memref<1x128xf32, #tpu.memory_space<vmem>>, %arg6: memref<256x128xf32, #tpu.memory_space<vmem>>) attributes {dimension_semantics = [#tpu.dimension_semantics<arbitrary>], iteration_bounds = array<i64: 2>, scalar_prefetch = 0 : i64, scratch_operands = 1 : i64, tpu.core_type = #tpu.core_type<tc>, window_params = [{transform_indices = @transform_0, window_bounds = array<i64: 1, 18, 16, 384>}, {pipeline_mode = #tpu.pipeline_mode<synchronous>, transform_indices = @transform_1, window_bounds = array<i64: 3, 384, 128>}, {transform_indices = @transform_2, window_bounds = array<i64: 256, 128>}, {pipeline_mode = #tpu.pipeline_mode<synchronous>, transform_indices = @transform_3, window_bounds = array<i64: 1, 128>}, {pipeline_mode = #tpu.pipeline_mode<synchronous>, transform_indices = @transform_4, window_bounds = array<i64: 1, 128>}]} {
    %cst = arith.constant 0.000000e+00 : f32
    %0 = vector.broadcast %cst : f32 to vector<256x128xf32>
    %c0 = arith.constant 0 : index
    %c0_0 = arith.constant 0 : index
    %1 = vector.load %arg6[%c0, %c0_0] : memref<256x128xf32, #tpu.memory_space<vmem>>, vector<256x128xf32>
    tpu.vector_store %arg6[%c0, %c0_0], %0 {strides = array<i32>} : memref<256x128xf32, #tpu.memory_space<vmem>>, vector<256x128xf32>,
    %c0_1 = arith.constant 0 : index
    %c0_2 = arith.constant 0 : index
    %c0_3 = arith.constant 0 : index
    %c0_4 = arith.constant 0 : index
    %2 = vector.load %arg1[%c0_1, %c0_2, %c0_3, %c0_4] : memref<1x18x16x384xbf16, #tpu.memory_space<vmem>>, vector<1x16x16x384xbf16>
    %3 = vector.shape_cast %2 : vector<1x16x16x384xbf16> to vector<16x16x384xbf16>
    %4 = vector.shape_cast %3 : vector<16x16x384xbf16> to vector<256x384xbf16>
    %c0_5 = arith.constant 0 : index
    %c0_6 = arith.constant 0 : index
    %5 = vector.load %arg6[%c0_5, %c0_6] : memref<256x128xf32, #tpu.memory_space<vmem>>, vector<256x128xf32>
    %c0_7 = arith.constant 0 : index
    %c0_8 = arith.constant 0 : index
    %c0_9 = arith.constant 0 : index
    %6 = vector.load %arg2[%c0_7, %c0_8, %c0_9] : memref<3x384x128xbf16, #tpu.memory_space<vmem>>, vector<1x384x128xbf16>
    %7 = vector.shape_cast %6 : vector<1x384x128xbf16> to vector<384x128xbf16>
    %cst_10 = arith.constant dense<0.000000e+00> : vector<256x128xf32>
    %8 = tpu.matmul %4, %7, %cst_10 {dimension_numbers = #tpu.dot_dimension_numbers<[1], [0], [0], [1], [0, 0, 1, 1], [], []>} : vector<256x384xbf16>, vector<384x128xbf16>, vector<256x128xf32> -> vector<256x128xf32>
    %9 = arith.addf %5, %8 : vector<256x128xf32>
    %c0_11 = arith.constant 0 : index
    %c0_12 = arith.constant 0 : index
    %10 = vector.load %arg6[%c0_11, %c0_12] : memref<256x128xf32, #tpu.memory_space<vmem>>, vector<256x128xf32>
    tpu.vector_store %arg6[%c0_11, %c0_12], %9 {strides = array<i32>} : memref<256x128xf32, #tpu.memory_space<vmem>>, vector<256x128xf32>,
    %c0_13 = arith.constant 0 : index
    %c1 = arith.constant 1 : index
    %c0_14 = arith.constant 0 : index
    %c0_15 = arith.constant 0 : index
    %11 = vector.load %arg1[%c0_13, %c1, %c0_14, %c0_15] : memref<1x18x16x384xbf16, #tpu.memory_space<vmem>>, vector<1x16x16x384xbf16>
    %12 = vector.shape_cast %11 : vector<1x16x16x384xbf16> to vector<16x16x384xbf16>
    %13 = vector.shape_cast %12 : vector<16x16x384xbf16> to vector<256x384xbf16>
    %c0_16 = arith.constant 0 : index
    %c0_17 = arith.constant 0 : index
    %14 = vector.load %arg6[%c0_16, %c0_17] : memref<256x128xf32, #tpu.memory_space<vmem>>, vector<256x128xf32>
    %c1_18 = arith.constant 1 : index
    %c0_19 = arith.constant 0 : index
    %c0_20 = arith.constant 0 : index
    %15 = vector.load %arg2[%c1_18, %c0_19, %c0_20] : memref<3x384x128xbf16, #tpu.memory_space<vmem>>, vector<1x384x128xbf16>
    %16 = vector.shape_cast %15 : vector<1x384x128xbf16> to vector<384x128xbf16>
    %cst_21 = arith.constant dense<0.000000e+00> : vector<256x128xf32>
    %17 = tpu.matmul %13, %16, %cst_21 {dimension_numbers = #tpu.dot_dimension_numbers<[1], [0], [0], [1], [0, 0, 1, 1], [], []>} : vector<256x384xbf16>, vector<384x128xbf16>, vector<256x128xf32> -> vector<256x128xf32>
    %18 = arith.addf %14, %17 : vector<256x128xf32>
    %c0_22 = arith.constant 0 : index
    %c0_23 = arith.constant 0 : index
    %19 = vector.load %arg6[%c0_22, %c0_23] : memref<256x128xf32, #tpu.memory_space<vmem>>, vector<256x128xf32>
    tpu.vector_store %arg6[%c0_22, %c0_23], %18 {strides = array<i32>} : memref<256x128xf32, #tpu.memory_space<vmem>>, vector<256x128xf32>,
    %c0_24 = arith.constant 0 : index
    %c2 = arith.constant 2 : index
    %c0_25 = arith.constant 0 : index
    %c0_26 = arith.constant 0 : index
    %20 = vector.load %arg1[%c0_24, %c2, %c0_25, %c0_26] : memref<1x18x16x384xbf16, #tpu.memory_space<vmem>>, vector<1x16x16x384xbf16>
    %21 = vector.shape_cast %20 : vector<1x16x16x384xbf16> to vector<16x16x384xbf16>
    %22 = vector.shape_cast %21 : vector<16x16x384xbf16> to vector<256x384xbf16>
    %c0_27 = arith.constant 0 : index
    %c0_28 = arith.constant 0 : index
    %23 = vector.load %arg6[%c0_27, %c0_28] : memref<256x128xf32, #tpu.memory_space<vmem>>, vector<256x128xf32>
    %c2_29 = arith.constant 2 : index
    %c0_30 = arith.constant 0 : index
    %c0_31 = arith.constant 0 : index
    %24 = vector.load %arg2[%c2_29, %c0_30, %c0_31] : memref<3x384x128xbf16, #tpu.memory_space<vmem>>, vector<1x384x128xbf16>
    %25 = vector.shape_cast %24 : vector<1x384x128xbf16> to vector<384x128xbf16>
    %cst_32 = arith.constant dense<0.000000e+00> : vector<256x128xf32>
    %26 = tpu.matmul %22, %25, %cst_32 {dimension_numbers = #tpu.dot_dimension_numbers<[1], [0], [0], [1], [0, 0, 1, 1], [], []>} : vector<256x384xbf16>, vector<384x128xbf16>, vector<256x128xf32> -> vector<256x128xf32>
    %27 = arith.addf %23, %26 : vector<256x128xf32>
    %c0_33 = arith.constant 0 : index
    %c0_34 = arith.constant 0 : index
    %28 = vector.load %arg6[%c0_33, %c0_34] : memref<256x128xf32, #tpu.memory_space<vmem>>, vector<256x128xf32>
    tpu.vector_store %arg6[%c0_33, %c0_34], %27 {strides = array<i32>} : memref<256x128xf32, #tpu.memory_space<vmem>>, vector<256x128xf32>,
    %c0_35 = arith.constant 0 : index
    %c0_36 = arith.constant 0 : index
    %29 = vector.load %arg6[%c0_35, %c0_36] : memref<256x128xf32, #tpu.memory_space<vmem>>, vector<256x128xf32>
    %30 = arith.truncf %29 : vector<256x128xf32> to vector<256x128xbf16>
    %c0_37 = arith.constant 0 : index
    %c0_38 = arith.constant 0 : index
    %31 = vector.load %arg3[%c0_37, %c0_38] : memref<256x128xbf16, #tpu.memory_space<vmem>>, vector<256x128xbf16>
    tpu.vector_store %arg3[%c0_37, %c0_38], %30 {strides = array<i32>} : memref<256x128xbf16, #tpu.memory_space<vmem>>, vector<256x128xbf16>,
    %c0_i32 = arith.constant 0 : i32
    %32 = arith.cmpi eq, %arg0, %c0_i32 : i32
    %33 = arith.extui %32 : i1 to i32
    %c0_i32_39 = arith.constant 0 : i32
    %34 = arith.cmpi ne, %33, %c0_i32_39 : i32
    scf.if %34 {
      %cst_50 = arith.constant 0.000000e+00 : f32
      %46 = vector.broadcast %cst_50 : f32 to vector<1x128xf32>
      %c0_51 = arith.constant 0 : index
      %c0_52 = arith.constant 0 : index
      %47 = vector.load %arg4[%c0_51, %c0_52] : memref<1x128xf32, #tpu.memory_space<vmem>>, vector<1x128xf32>
      tpu.vector_store %arg4[%c0_51, %c0_52], %46 {strides = array<i32>} : memref<1x128xf32, #tpu.memory_space<vmem>>, vector<1x128xf32>,
      %cst_53 = arith.constant 0.000000e+00 : f32
      %48 = vector.broadcast %cst_53 : f32 to vector<1x128xf32>
      %c0_54 = arith.constant 0 : index
      %c0_55 = arith.constant 0 : index
      %49 = vector.load %arg5[%c0_54, %c0_55] : memref<1x128xf32, #tpu.memory_space<vmem>>, vector<1x128xf32>
      tpu.vector_store %arg5[%c0_54, %c0_55], %48 {strides = array<i32>} : memref<1x128xf32, #tpu.memory_space<vmem>>, vector<1x128xf32>,
    } else {
    }
    %c0_40 = arith.constant 0 : index
    %c0_41 = arith.constant 0 : index
    %35 = vector.load %arg4[%c0_40, %c0_41] : memref<1x128xf32, #tpu.memory_space<vmem>>, vector<1x128xf32>
    %cst_42 = arith.constant dense<0.000000e+00> : vector<128xf32>
    %36 = vector.multi_reduction <add>, %29, %cst_42 [0] : vector<256x128xf32> to vector<128xf32>
    %37 = vector.shape_cast %36 : vector<128xf32> to vector<1x128xf32>
    %38 = arith.addf %35, %37 : vector<1x128xf32>
    %c0_43 = arith.constant 0 : index
    %c0_44 = arith.constant 0 : index
    %39 = vector.load %arg4[%c0_43, %c0_44] : memref<1x128xf32, #tpu.memory_space<vmem>>, vector<1x128xf32>
    tpu.vector_store %arg4[%c0_43, %c0_44], %38 {strides = array<i32>} : memref<1x128xf32, #tpu.memory_space<vmem>>, vector<1x128xf32>,
    %c0_45 = arith.constant 0 : index
    %c0_46 = arith.constant 0 : index
    %40 = vector.load %arg5[%c0_45, %c0_46] : memref<1x128xf32, #tpu.memory_space<vmem>>, vector<1x128xf32>
    %41 = arith.mulf %29, %29 : vector<256x128xf32>
    %cst_47 = arith.constant dense<0.000000e+00> : vector<128xf32>
    %42 = vector.multi_reduction <add>, %41, %cst_47 [0] : vector<256x128xf32> to vector<128xf32>
    %43 = vector.shape_cast %42 : vector<128xf32> to vector<1x128xf32>
    %44 = arith.addf %40, %43 : vector<1x128xf32>
    %c0_48 = arith.constant 0 : index
    %c0_49 = arith.constant 0 : index
    %45 = vector.load %arg5[%c0_48, %c0_49] : memref<1x128xf32, #tpu.memory_space<vmem>>, vector<1x128xf32>
    tpu.vector_store %arg5[%c0_48, %c0_49], %44 {strides = array<i32>} : memref<1x128xf32, #tpu.memory_space<vmem>>, vector<1x128xf32>,
    return
  }
  func.func @transform_0(%arg0: i32) -> (i32, i32, i32, i32) {
    %c0_i32 = arith.constant 0 : i32
    %c0_i32_0 = arith.constant 0 : i32
    %c0_i32_1 = arith.constant 0 : i32
    %c0_i32_2 = arith.constant 0 : i32
    return %arg0, %c0_i32, %c0_i32_0, %c0_i32_1 : i32, i32, i32, i32
  }
  func.func @transform_1(%arg0: i32) -> (i32, i32, i32) {
    %c0_i32 = arith.constant 0 : i32
    %c0_i32_0 = arith.constant 0 : i32
    %c0_i32_1 = arith.constant 0 : i32
    %c0_i32_2 = arith.constant 0 : i32
    return %c0_i32, %c0_i32_0, %c0_i32_1 : i32, i32, i32
  }
  func.func @transform_2(%arg0: i32) -> (i32, i32) {
    %c0_i32 = arith.constant 0 : i32
    %c0_i32_0 = arith.constant 0 : i32
    return %arg0, %c0_i32 : i32, i32
  }
  func.func @transform_3(%arg0: i32) -> (i32, i32) {
    %c0_i32 = arith.constant 0 : i32
    %c0_i32_0 = arith.constant 0 : i32
    %c0_i32_1 = arith.constant 0 : i32
    return %c0_i32, %c0_i32_0 : i32, i32
  }
  func.func @transform_4(%arg0: i32) -> (i32, i32) {
    %c0_i32 = arith.constant 0 : i32
    %c0_i32_0 = arith.constant 0 : i32
    %c0_i32_1 = arith.constant 0 : i32
    return %c0_i32, %c0_i32_0 : i32, i32
  }
}

module attributes {stable_mosaic.version = 11 : i64} {
  func.func @bn_relu_conv1x1_stats_kernel(%arg0: i32, %arg1: memref<256x128xbf16, #tpu.memory_space<vmem>>, %arg2: memref<1x128xf32, #tpu.memory_space<vmem>>, %arg3: memref<1x128xf32, #tpu.memory_space<vmem>>, %arg4: memref<1x128xf32, #tpu.memory_space<vmem>>, %arg5: memref<1x128xf32, #tpu.memory_space<vmem>>, %arg6: memref<128x128xbf16, #tpu.memory_space<vmem>>, %arg7: memref<256x128xbf16, #tpu.memory_space<vmem>>, %arg8: memref<1x128xf32, #tpu.memory_space<vmem>>, %arg9: memref<1x128xf32, #tpu.memory_space<vmem>>) attributes {dimension_semantics = [#tpu.dimension_semantics<arbitrary>], iteration_bounds = array<i64: 2>, scalar_prefetch = 0 : i64, scratch_operands = 0 : i64, tpu.core_type = #tpu.core_type<tc>, window_params = [{transform_indices = @transform_0, window_bounds = array<i64: 256, 128>}, {pipeline_mode = #tpu.pipeline_mode<synchronous>, transform_indices = @transform_1, window_bounds = array<i64: 1, 128>}, {pipeline_mode = #tpu.pipeline_mode<synchronous>, transform_indices = @transform_2, window_bounds = array<i64: 1, 128>}, {pipeline_mode = #tpu.pipeline_mode<synchronous>, transform_indices = @transform_3, window_bounds = array<i64: 1, 128>}, {pipeline_mode = #tpu.pipeline_mode<synchronous>, transform_indices = @transform_4, window_bounds = array<i64: 1, 128>}, {pipeline_mode = #tpu.pipeline_mode<synchronous>, transform_indices = @transform_5, window_bounds = array<i64: 128, 128>}, {transform_indices = @transform_6, window_bounds = array<i64: 256, 128>}, {pipeline_mode = #tpu.pipeline_mode<synchronous>, transform_indices = @transform_7, window_bounds = array<i64: 1, 128>}, {pipeline_mode = #tpu.pipeline_mode<synchronous>, transform_indices = @transform_8, window_bounds = array<i64: 1, 128>}]} {
    %c0 = arith.constant 0 : index
    %c0_0 = arith.constant 0 : index
    %0 = vector.load %arg2[%c0, %c0_0] : memref<1x128xf32, #tpu.memory_space<vmem>>, vector<1x128xf32>
    %cst = arith.constant 0.001953125 : f32
    %1 = vector.broadcast %cst : f32 to vector<1x128xf32>
    %2 = arith.mulf %0, %1 : vector<1x128xf32>
    %c0_1 = arith.constant 0 : index
    %c0_2 = arith.constant 0 : index
    %3 = vector.load %arg3[%c0_1, %c0_2] : memref<1x128xf32, #tpu.memory_space<vmem>>, vector<1x128xf32>
    %cst_3 = arith.constant 0.001953125 : f32
    %4 = vector.broadcast %cst_3 : f32 to vector<1x128xf32>
    %5 = arith.mulf %3, %4 : vector<1x128xf32>
    %6 = arith.mulf %2, %2 : vector<1x128xf32>
    %7 = arith.subf %5, %6 : vector<1x128xf32>
    %cst_4 = arith.constant 0.000000e+00 : f32
    %8 = vector.broadcast %cst_4 : f32 to vector<1x128xf32>
    %9 = arith.maximumf %7, %8 : vector<1x128xf32>
    %c0_5 = arith.constant 0 : index
    %c0_6 = arith.constant 0 : index
    %10 = vector.load %arg4[%c0_5, %c0_6] : memref<1x128xf32, #tpu.memory_space<vmem>>, vector<1x128xf32>
    %cst_7 = arith.constant 9.99999974E-6 : f32
    %11 = vector.broadcast %cst_7 : f32 to vector<1x128xf32>
    %12 = arith.addf %9, %11 : vector<1x128xf32>
    %13 = math.rsqrt %12 : vector<1x128xf32>
    %14 = arith.mulf %10, %13 : vector<1x128xf32>
    %c0_8 = arith.constant 0 : index
    %c0_9 = arith.constant 0 : index
    %15 = vector.load %arg5[%c0_8, %c0_9] : memref<1x128xf32, #tpu.memory_space<vmem>>, vector<1x128xf32>
    %16 = arith.mulf %2, %14 : vector<1x128xf32>
    %17 = arith.subf %15, %16 : vector<1x128xf32>
    %c0_10 = arith.constant 0 : index
    %c0_11 = arith.constant 0 : index
    %18 = vector.load %arg1[%c0_10, %c0_11] : memref<256x128xbf16, #tpu.memory_space<vmem>>, vector<256x128xbf16>
    %19 = arith.extf %18 : vector<256x128xbf16> to vector<256x128xf32>
    %20 = vector.broadcast %14 : vector<1x128xf32> to vector<256x128xf32>
    %21 = arith.mulf %19, %20 : vector<256x128xf32>
    %22 = vector.broadcast %17 : vector<1x128xf32> to vector<256x128xf32>
    %23 = arith.addf %21, %22 : vector<256x128xf32>
    %cst_12 = arith.constant 0.000000e+00 : f32
    %24 = vector.broadcast %cst_12 : f32 to vector<256x128xf32>
    %25 = arith.maximumf %23, %24 : vector<256x128xf32>
    %26 = arith.truncf %25 : vector<256x128xf32> to vector<256x128xbf16>
    %c0_13 = arith.constant 0 : index
    %c0_14 = arith.constant 0 : index
    %27 = vector.load %arg6[%c0_13, %c0_14] : memref<128x128xbf16, #tpu.memory_space<vmem>>, vector<128x128xbf16>
    %cst_15 = arith.constant dense<0.000000e+00> : vector<256x128xf32>
    %28 = tpu.matmul %26, %27, %cst_15 {dimension_numbers = #tpu.dot_dimension_numbers<[1], [0], [0], [1], [0, 0, 1, 1], [], []>} : vector<256x128xbf16>, vector<128x128xbf16>, vector<256x128xf32> -> vector<256x128xf32>
    %29 = arith.truncf %28 : vector<256x128xf32> to vector<256x128xbf16>
    %c0_16 = arith.constant 0 : index
    %c0_17 = arith.constant 0 : index
    %30 = vector.load %arg7[%c0_16, %c0_17] : memref<256x128xbf16, #tpu.memory_space<vmem>>, vector<256x128xbf16>
    tpu.vector_store %arg7[%c0_16, %c0_17], %29 {strides = array<i32>} : memref<256x128xbf16, #tpu.memory_space<vmem>>, vector<256x128xbf16>,
    %c0_i32 = arith.constant 0 : i32
    %31 = arith.cmpi eq, %arg0, %c0_i32 : i32
    %32 = arith.extui %31 : i1 to i32
    %c0_i32_18 = arith.constant 0 : i32
    %33 = arith.cmpi ne, %32, %c0_i32_18 : i32
    scf.if %33 {
      %cst_29 = arith.constant 0.000000e+00 : f32
      %45 = vector.broadcast %cst_29 : f32 to vector<1x128xf32>
      %c0_30 = arith.constant 0 : index
      %c0_31 = arith.constant 0 : index
      %46 = vector.load %arg8[%c0_30, %c0_31] : memref<1x128xf32, #tpu.memory_space<vmem>>, vector<1x128xf32>
      tpu.vector_store %arg8[%c0_30, %c0_31], %45 {strides = array<i32>} : memref<1x128xf32, #tpu.memory_space<vmem>>, vector<1x128xf32>,
      %cst_32 = arith.constant 0.000000e+00 : f32
      %47 = vector.broadcast %cst_32 : f32 to vector<1x128xf32>
      %c0_33 = arith.constant 0 : index
      %c0_34 = arith.constant 0 : index
      %48 = vector.load %arg9[%c0_33, %c0_34] : memref<1x128xf32, #tpu.memory_space<vmem>>, vector<1x128xf32>
      tpu.vector_store %arg9[%c0_33, %c0_34], %47 {strides = array<i32>} : memref<1x128xf32, #tpu.memory_space<vmem>>, vector<1x128xf32>,
    } else {
    }
    %c0_19 = arith.constant 0 : index
    %c0_20 = arith.constant 0 : index
    %34 = vector.load %arg8[%c0_19, %c0_20] : memref<1x128xf32, #tpu.memory_space<vmem>>, vector<1x128xf32>
    %cst_21 = arith.constant dense<0.000000e+00> : vector<128xf32>
    %35 = vector.multi_reduction <add>, %28, %cst_21 [0] : vector<256x128xf32> to vector<128xf32>
    %36 = vector.shape_cast %35 : vector<128xf32> to vector<1x128xf32>
    %37 = arith.addf %34, %36 : vector<1x128xf32>
    %c0_22 = arith.constant 0 : index
    %c0_23 = arith.constant 0 : index
    %38 = vector.load %arg8[%c0_22, %c0_23] : memref<1x128xf32, #tpu.memory_space<vmem>>, vector<1x128xf32>
    tpu.vector_store %arg8[%c0_22, %c0_23], %37 {strides = array<i32>} : memref<1x128xf32, #tpu.memory_space<vmem>>, vector<1x128xf32>,
    %c0_24 = arith.constant 0 : index
    %c0_25 = arith.constant 0 : index
    %39 = vector.load %arg9[%c0_24, %c0_25] : memref<1x128xf32, #tpu.memory_space<vmem>>, vector<1x128xf32>
    %40 = arith.mulf %28, %28 : vector<256x128xf32>
    %cst_26 = arith.constant dense<0.000000e+00> : vector<128xf32>
    %41 = vector.multi_reduction <add>, %40, %cst_26 [0] : vector<256x128xf32> to vector<128xf32>
    %42 = vector.shape_cast %41 : vector<128xf32> to vector<1x128xf32>
    %43 = arith.addf %39, %42 : vector<1x128xf32>
    %c0_27 = arith.constant 0 : index
    %c0_28 = arith.constant 0 : index
    %44 = vector.load %arg9[%c0_27, %c0_28] : memref<1x128xf32, #tpu.memory_space<vmem>>, vector<1x128xf32>
    tpu.vector_store %arg9[%c0_27, %c0_28], %43 {strides = array<i32>} : memref<1x128xf32, #tpu.memory_space<vmem>>, vector<1x128xf32>,
    return
  }
  func.func @transform_0(%arg0: i32) -> (i32, i32) {
    %c0_i32 = arith.constant 0 : i32
    %c0_i32_0 = arith.constant 0 : i32
    return %arg0, %c0_i32 : i32, i32
  }
  func.func @transform_1(%arg0: i32) -> (i32, i32) {
    %c0_i32 = arith.constant 0 : i32
    %c0_i32_0 = arith.constant 0 : i32
    %c0_i32_1 = arith.constant 0 : i32
    return %c0_i32, %c0_i32_0 : i32, i32
  }
  func.func @transform_2(%arg0: i32) -> (i32, i32) {
    %c0_i32 = arith.constant 0 : i32
    %c0_i32_0 = arith.constant 0 : i32
    %c0_i32_1 = arith.constant 0 : i32
    return %c0_i32, %c0_i32_0 : i32, i32
  }
  func.func @transform_3(%arg0: i32) -> (i32, i32) {
    %c0_i32 = arith.constant 0 : i32
    %c0_i32_0 = arith.constant 0 : i32
    %c0_i32_1 = arith.constant 0 : i32
    return %c0_i32, %c0_i32_0 : i32, i32
  }
  func.func @transform_4(%arg0: i32) -> (i32, i32) {
    %c0_i32 = arith.constant 0 : i32
    %c0_i32_0 = arith.constant 0 : i32
    %c0_i32_1 = arith.constant 0 : i32
    return %c0_i32, %c0_i32_0 : i32, i32
  }
  func.func @transform_5(%arg0: i32) -> (i32, i32) {
    %c0_i32 = arith.constant 0 : i32
    %c0_i32_0 = arith.constant 0 : i32
    %c0_i32_1 = arith.constant 0 : i32
    return %c0_i32, %c0_i32_0 : i32, i32
  }
  func.func @transform_6(%arg0: i32) -> (i32, i32) {
    %c0_i32 = arith.constant 0 : i32
    %c0_i32_0 = arith.constant 0 : i32
    return %arg0, %c0_i32 : i32, i32
  }
  func.func @transform_7(%arg0: i32) -> (i32, i32) {
    %c0_i32 = arith.constant 0 : i32
    %c0_i32_0 = arith.constant 0 : i32
    %c0_i32_1 = arith.constant 0 : i32
    return %c0_i32, %c0_i32_0 : i32, i32
  }
  func.func @transform_8(%arg0: i32) -> (i32, i32) {
    %c0_i32 = arith.constant 0 : i32
    %c0_i32_0 = arith.constant 0 : i32
    %c0_i32_1 = arith.constant 0 : i32
    return %c0_i32, %c0_i32_0 : i32, i32
  }
}

module attributes {stable_mosaic.version = 11 : i64} {
  func.func @bn_residual_kernel(%arg0: i32, %arg1: memref<256x128xbf16, #tpu.memory_space<vmem>>, %arg2: memref<1x128xf32, #tpu.memory_space<vmem>>, %arg3: memref<1x128xf32, #tpu.memory_space<vmem>>, %arg4: memref<1x128xf32, #tpu.memory_space<vmem>>, %arg5: memref<1x128xf32, #tpu.memory_space<vmem>>, %arg6: memref<256x128xf32, #tpu.memory_space<vmem>>, %arg7: memref<256x128xf32, #tpu.memory_space<vmem>>) attributes {dimension_semantics = [#tpu.dimension_semantics<parallel>], iteration_bounds = array<i64: 2>, scalar_prefetch = 0 : i64, scratch_operands = 0 : i64, tpu.core_type = #tpu.core_type<tc>, window_params = [{transform_indices = @transform_0, window_bounds = array<i64: 256, 128>}, {pipeline_mode = #tpu.pipeline_mode<synchronous>, transform_indices = @transform_1, window_bounds = array<i64: 1, 128>}, {pipeline_mode = #tpu.pipeline_mode<synchronous>, transform_indices = @transform_2, window_bounds = array<i64: 1, 128>}, {pipeline_mode = #tpu.pipeline_mode<synchronous>, transform_indices = @transform_3, window_bounds = array<i64: 1, 128>}, {pipeline_mode = #tpu.pipeline_mode<synchronous>, transform_indices = @transform_4, window_bounds = array<i64: 1, 128>}, {transform_indices = @transform_5, window_bounds = array<i64: 256, 128>}, {transform_indices = @transform_6, window_bounds = array<i64: 256, 128>}]} {
    %c0 = arith.constant 0 : index
    %c0_0 = arith.constant 0 : index
    %0 = vector.load %arg2[%c0, %c0_0] : memref<1x128xf32, #tpu.memory_space<vmem>>, vector<1x128xf32>
    %cst = arith.constant 0.001953125 : f32
    %1 = vector.broadcast %cst : f32 to vector<1x128xf32>
    %2 = arith.mulf %0, %1 : vector<1x128xf32>
    %c0_1 = arith.constant 0 : index
    %c0_2 = arith.constant 0 : index
    %3 = vector.load %arg3[%c0_1, %c0_2] : memref<1x128xf32, #tpu.memory_space<vmem>>, vector<1x128xf32>
    %cst_3 = arith.constant 0.001953125 : f32
    %4 = vector.broadcast %cst_3 : f32 to vector<1x128xf32>
    %5 = arith.mulf %3, %4 : vector<1x128xf32>
    %6 = arith.mulf %2, %2 : vector<1x128xf32>
    %7 = arith.subf %5, %6 : vector<1x128xf32>
    %cst_4 = arith.constant 0.000000e+00 : f32
    %8 = vector.broadcast %cst_4 : f32 to vector<1x128xf32>
    %9 = arith.maximumf %7, %8 : vector<1x128xf32>
    %c0_5 = arith.constant 0 : index
    %c0_6 = arith.constant 0 : index
    %10 = vector.load %arg4[%c0_5, %c0_6] : memref<1x128xf32, #tpu.memory_space<vmem>>, vector<1x128xf32>
    %cst_7 = arith.constant 9.99999974E-6 : f32
    %11 = vector.broadcast %cst_7 : f32 to vector<1x128xf32>
    %12 = arith.addf %9, %11 : vector<1x128xf32>
    %13 = math.rsqrt %12 : vector<1x128xf32>
    %14 = arith.mulf %10, %13 : vector<1x128xf32>
    %c0_8 = arith.constant 0 : index
    %c0_9 = arith.constant 0 : index
    %15 = vector.load %arg5[%c0_8, %c0_9] : memref<1x128xf32, #tpu.memory_space<vmem>>, vector<1x128xf32>
    %16 = arith.mulf %2, %14 : vector<1x128xf32>
    %17 = arith.subf %15, %16 : vector<1x128xf32>
    %c0_10 = arith.constant 0 : index
    %c0_11 = arith.constant 0 : index
    %18 = vector.load %arg1[%c0_10, %c0_11] : memref<256x128xbf16, #tpu.memory_space<vmem>>, vector<256x128xbf16>
    %19 = arith.extf %18 : vector<256x128xbf16> to vector<256x128xf32>
    %20 = vector.broadcast %14 : vector<1x128xf32> to vector<256x128xf32>
    %21 = arith.mulf %19, %20 : vector<256x128xf32>
    %22 = vector.broadcast %17 : vector<1x128xf32> to vector<256x128xf32>
    %23 = arith.addf %21, %22 : vector<256x128xf32>
    %c0_12 = arith.constant 0 : index
    %c0_13 = arith.constant 0 : index
    %24 = vector.load %arg6[%c0_12, %c0_13] : memref<256x128xf32, #tpu.memory_space<vmem>>, vector<256x128xf32>
    %25 = arith.addf %23, %24 : vector<256x128xf32>
    %cst_14 = arith.constant 0.000000e+00 : f32
    %26 = vector.broadcast %cst_14 : f32 to vector<256x128xf32>
    %27 = arith.maximumf %25, %26 : vector<256x128xf32>
    %c0_15 = arith.constant 0 : index
    %c0_16 = arith.constant 0 : index
    %28 = vector.load %arg7[%c0_15, %c0_16] : memref<256x128xf32, #tpu.memory_space<vmem>>, vector<256x128xf32>
    tpu.vector_store %arg7[%c0_15, %c0_16], %27 {strides = array<i32>} : memref<256x128xf32, #tpu.memory_space<vmem>>, vector<256x128xf32>,
    return
  }
  func.func @transform_0(%arg0: i32) -> (i32, i32) {
    %c0_i32 = arith.constant 0 : i32
    %c0_i32_0 = arith.constant 0 : i32
    return %arg0, %c0_i32 : i32, i32
  }
  func.func @transform_1(%arg0: i32) -> (i32, i32) {
    %c0_i32 = arith.constant 0 : i32
    %c0_i32_0 = arith.constant 0 : i32
    %c0_i32_1 = arith.constant 0 : i32
    return %c0_i32, %c0_i32_0 : i32, i32
  }
  func.func @transform_2(%arg0: i32) -> (i32, i32) {
    %c0_i32 = arith.constant 0 : i32
    %c0_i32_0 = arith.constant 0 : i32
    %c0_i32_1 = arith.constant 0 : i32
    return %c0_i32, %c0_i32_0 : i32, i32
  }
  func.func @transform_3(%arg0: i32) -> (i32, i32) {
    %c0_i32 = arith.constant 0 : i32
    %c0_i32_0 = arith.constant 0 : i32
    %c0_i32_1 = arith.constant 0 : i32
    return %c0_i32, %c0_i32_0 : i32, i32
  }
  func.func @transform_4(%arg0: i32) -> (i32, i32) {
    %c0_i32 = arith.constant 0 : i32
    %c0_i32_0 = arith.constant 0 : i32
    %c0_i32_1 = arith.constant 0 : i32
    return %c0_i32, %c0_i32_0 : i32, i32
  }
  func.func @transform_5(%arg0: i32) -> (i32, i32) {
    %c0_i32 = arith.constant 0 : i32
    %c0_i32_0 = arith.constant 0 : i32
    return %arg0, %c0_i32 : i32, i32
  }
  func.func @transform_6(%arg0: i32) -> (i32, i32) {
    %c0_i32 = arith.constant 0 : i32
    %c0_i32_0 = arith.constant 0 : i32
    return %arg0, %c0_i32 : i32, i32
  }
}

</mosaic_0001>

<bundles_post_ra>
// kernel: bottleneck_big_ci.5
= control target key start
LH: loop header
LB: loop body
LE: loop exit
PB: predicated region body
PF: predicated region fallthrough
CT: control target
= control target key end

     0   :  { %10 = vsyncpa [#allocation3], 0  ;;  %s2099_s0 = inlined_call_operand.hbm [shape: bf16[512,128], index: 0, kind: input, shape index: {}]   ;;  %s2100_s1 = inlined_call_operand.hbm [shape: bf16[128,128], index: 1, kind: input, shape index: {}]   ;;  %s2101_s2 = inlined_call_operand.hbm [shape: bf16[512,128], index: 2, kind: output, shape index: {0}]   ;;  %s2102_s3 = inlined_call_operand.hbm [shape: f32[1,128], index: 3, kind: output, shape index: {1}]   ;;  %s2103_s4 = inlined_call_operand.hbm [shape: f32[1,128], index: 4, kind: output, shape index: {2}]  }
   0x1   :  { %12 = vsyncpa [#allocation3 + $0x1], 0 }
   0x2   :  { %13 = vsyncpa [#allocation6], 0 }
   0x3   :  { %14 = vsyncpa [#allocation4], 0 }
   0x4   :  { %16 = vsyncpa [#allocation4 + $0x1], 0 }
   0x5   :  { %17 = vsyncpa [#allocation9], 0  ;;  %s1616_s15 = smov 0   ;;  %s1618_s16 = smov 0  }
   0x6   :  { %s1620_s17 = smov 0   ;;  %s1622_s18 = smov 0  }
   0x7 LB: > { %s1637_s19 = sadd.s32 4294967295, %s1579_s18   ;;  %s1001_s20 = sadd.s32 4294967294, %s1579_s18   ;;  %s1579_s18 = sphi %s1622_s18, %s2131_s18   ;;  %s1575_s17 = sphi %s1620_s17, %s2130_s17   ;;  %s1571_s16 = sphi %s1618_s16, %s2129_s16   ;;  %s1567_s15 = sphi %s1616_s15, %s2128_s15  }
   0x8   : > { %p43_p0 = scmp.ne.s32.totalorder %s1571_s16, %s1567_s15  ;;  %p2104_p1 = scmp.eq.s32.totalorder %s1637_s19, 0 }
   0x9   : > { %p94_p3 = scmp.eq.s32.totalorder %s1001_s20, 1  ;;  %p1002_p5 = scmp.ge.s32.totalorder %s1579_s18, 1 }
   0xa   : > { %p1646_p4 = por %p2104_p1, %p43_p0  ;;  %p143_p7 = scmp.lt.s32.totalorder %s1579_s18, 3 }
   0xb   : > { %p1651_p6 = por %p94_p3, %p43_p0  ;;  %s1581_s24 = smov [#allocation5]  }
   0xc   : > { %s2107_s21 = scalar_select %p1646_p4, 1, 0 }
   0xd   : > { %s2108_s22 = scalar_select %p1651_p6, 1, 0 }
   0xe   : > { %p1657_p9 = pnand %p1002_p5, %p143_p7  ;;  %s155_s25 = sshll.u32 %s1581_s24, 4  ;;  %s1661_s25 = int_to_ptr.vmem [resolvable:$true] %s155_s25 }
   0xf   : > { %s1673_s27 = sadd.s32 1, %s1579_s18   ;;  %s30_s28 = sadd.s32 1, %s1575_s17 }
  0x10   : > { %s2109_s23 = scalar_select %p1657_p9, 1, 0 }
  0x11   : > { %p1311_p10 = pneg %p1657_p9  ;;  %s27_s29 = ssub.s32 %s1579_s18, %s1673_s27 }
  0x12   : > { %s1395_s6 = scalar_lea.hbm %s2100_s1, 1024 }
  0x13   : > { %p1668_p12 = pnand %p1311_p10, %p2104_p1  ;;  %p1396_p13 = scmp.ne.s32.totalorder %s2100_s1, %s1395_s6 }
  0x14   : > { %p1402_p7 = scmp.lt.u32.totalorder %s1395_s6, %s2100_s1 }
  0x15   : > { %p1397_p0 = pneg %p1668_p12 }
  0x17   : > { %p1398_p3 = pnand %p1397_p0, %p1396_p13 }
  0x19   : > { %p1399_p5 = pneg %p1398_p3 }
  0x1b   : > { %p1404_p10 = pnand %p1402_p7, %p1399_p5 }
  0x1d   : > { %1407 = shalt.err (!%p1404_p10)
}
  0x1e   : > { %s1408_s11 = scalar_lea.vmem %s1661_s25, 1024  ;;  %p1416_p2 = scmp.lt.s32.totalorder %s1661_s25, %s1661_s25 }
  0x1f   : > { %p1409_p11 = scmp.ne.s32.totalorder %s1661_s25, %s1408_s11  ;;  %p1417_p6 = scmp.lt.s32.totalorder %s1408_s11, %s1408_s11 }
  0x21   : > { %p1411_p8 = pnand %p1409_p11, %p1397_p0  ;;  %p1418_p4 = por %p1417_p6, %p1416_p2 }
  0x23   : > { %p1412_p1 = pneg %p1411_p8 }
  0x25   : > { %p1419_p9 = pnand %p1418_p4, %p1412_p1 }
  0x27   : > { %1422 = shalt.err (!%p1419_p9)
}
  0x28   : > { %s1582_s12 = smov 64   ;;  %s1583_s13 = smov 4  }
  0x29   : > { %1314 = dma.hbm_to_vmem [thread:$0]  (!%p1668_p12), %s2100_s1, 1024, %s1661_s25, [#allocation6], %s1582_s12, %s1582_s12, %s1583_s13  }
  0x2a   : > { %p28_p1 = scmp.eq.s32.totalorder %s27_s29, 0  ;;  %p37_p2 = scmp.ne.s32.totalorder %s1575_s17, %s1571_s16 }
  0x2b   : > { %p38_p4 = scmp.eq.s32.totalorder %s1579_s18, 0  ;;  %p1324_p6 = scmp.lt.s32.totalorder %s1579_s18, 2 }
  0x2c   : > { %s1707_s24 = scalar_select %p28_p1, %s1575_s17, %s30_s28  }
  0x2d   : > { %p39_p8 = por %p38_p4, %p37_p2  ;;  %p2111_p9 = scmp.eq.s32.totalorder %s1637_s19, 1 }
  0x2e   : > { %s169_s26 = sand.u32 1, %s1575_s17   ;;  %s1078_s5 = sshll.u32 %s1579_s18, 11 }
  0x2f   : > { %p1711_p11 = por %p2111_p9, %p37_p2  ;;  %s1005_s6 = sshll.u32 %s169_s26, 7 }
  0x30   : > { %s1720_s9 = scalar_lea.hbm %s2099_s0, %s1078_s5  ;;  %s173_s25 = scalar_lea.vmem [#allocation2], %s1005_s6 }
  0x31   : > { %s180_s28 = sshll.u32 %s173_s25, 4  ;;  %p1722_p12 = pnand %p1324_p6, %p39_p8  ;;  %s1726_s28 = int_to_ptr.vmem [resolvable:$true] %s180_s28 }
  0x32   : > { %s1728_s10 = scalar_lea.sflag [#allocation3], %s169_s26  ;;  %s1423_s11 = scalar_lea.hbm %s1720_s9, 2048 }
  0x33   : > { %p1424_p13 = scmp.ne.s32.totalorder %s1720_s9, %s1423_s11  ;;  %p1425_p0 = pneg %p1722_p12 }
  0x34   : > { %s1428_s5 = scalar_lea.hbm %s2099_s0, 4096  ;;  %p1429_p7 = scmp.lt.u32.totalorder %s1720_s9, %s2099_s0 }
  0x35   : > { %p1426_p3 = pnand %p1425_p0, %p1424_p13  ;;  %p1430_p10 = scmp.lt.u32.totalorder %s1428_s5, %s1423_s11 }
  0x36   : > { %p1432_p2 = scmp.lt.u32.totalorder %s1423_s11, %s1720_s9 }
  0x37   : > { %p1427_p5 = pneg %p1426_p3  ;;  %p1431_p1 = por %p1430_p10, %p1429_p7 }
  0x39   : > { %p1433_p4 = por %p1432_p2, %p1431_p1 }
  0x3b   : > { %p1434_p6 = pnand %p1433_p4, %p1427_p5 }
  0x3d   : > { %1437 = shalt.err (!%p1434_p6)
}
  0x3e   : > { %s1438_s26 = scalar_lea.vmem %s1726_s28, 2048  ;;  %s1584_s8 = smov [#allocation2]  }
  0x3f   : > { %p1439_p8 = scmp.ne.s32.totalorder %s1726_s28, %s1438_s26  ;;  %s1443_s25 = sshll.u32 %s1584_s8, 4  ;;  %s1444_s25 = int_to_ptr.vmem [resolvable:$false] %s1443_s25 }
  0x40   : > { %s1445_s14 = scalar_lea.vmem %s1444_s25, 4096  ;;  %p1446_p3 = scmp.lt.s32.totalorder %s1726_s28, %s1444_s25 }
  0x41   : > { %p1441_p9 = pnand %p1439_p8, %p1425_p0  ;;  %p1447_p7 = scmp.lt.s32.totalorder %s1445_s14, %s1438_s26 }
  0x43   : > { %p1442_p13 = pneg %p1441_p9  ;;  %p1448_p10 = por %p1447_p7, %p1446_p3 }
  0x45   : > { %p1449_p1 = pnand %p1448_p10, %p1442_p13 }
  0x47   : > { %1452 = shalt.err (!%p1449_p1)
}
  0x48   : > { %1318 = dma.hbm_to_vmem [thread:$0]  (!%p1722_p12), %s1720_s9, 2048, %s1726_s28, %s1728_s10, %s1582_s12, %s1582_s12, %s1583_s13  }
  0x49   : > { %p2114_p0 = scmp.ne.s32.totalorder %s2109_s23, 0 }
  0x4a   : > { %s1762_s11 = sand.u32 (!%p2114_p0), 1, %s1571_s16   ;;  %p2115_p5 = scmp.ne.s32.totalorder (!%p2114_p0), %s2107_s21, 0 }
  0x4b   : > { %192 = sbr.rel (%p2114_p0) target bundleno = 493 (0x1ed), region = 28  ;;  %s1009_s20 = sshll.u32 (!%p2114_p0), %s1762_s11, 7 }
  0x4c   : > { %s195_s5 = scalar_lea.sflag (!%p2114_p0), [#allocation3], %s1762_s11  ;;  %s1768_s29 = scalar_lea.vmem (!%p2114_p0), [#allocation2], %s1009_s20 }
  0x52   : > { %1550 = dma.done.wait (%p2115_p5), %s195_s5, 2048  }
  0x53   : > { %1552 = vsyncadd (%p2115_p5), %s195_s5, 4294965248  ;;  %p2116_p12 = scmp.eq.s32.totalorder %s1637_s19, 0 }
  0x55   : > { %1554 = dma.done.wait (%p2116_p12), [#allocation6], 1024   ;;  %p2117_p2 = pmov %p2116_p12 }
  0x56   : > { %v1371_v0 = vld [vmem:[#allocation5] sm:$0xff]   ;;  %v1372_v1 = vld [vmem:[#allocation5 + $0x8] sm:$0xff]   ;;  %v1373_v2 = vld [vmem:[#allocation5 + $0x10] sm:$0xff]   ;;  %s1820_s21 = scalar_lea.vmem [#allocation7], %s1009_s20  ;;  %p2118_p4 = scmp.ne.s32.totalorder %s1637_s19, 0 }
  0x57   : > { %1556 = vsyncadd (%p2117_p2), [#allocation6], 4294966272  ;;  %1231 = vmatprep.subr.bf16.mxu0 %v1371_v0  ;;  %1279 = vmatprep.subr.bf16.mxu1 %v1371_v0  ;;  %v1374_v3 = vld [vmem:[#allocation5 + $0x18] sm:$0xff]   ;;  %v1379_v4 = vld [vmem:[%s1768_s29] sm:$0xff]  }
  0x58   : > { %1232 = vmatpush3.bf16.msra.mxu0 %v1371_v0  ;;  %1287 = vmatpush3.bf16.msra.mxu1 %v1371_v0  ;;  %v1380_v5 = vld [vmem:[%s1768_s29 + $0x40] sm:$0xff]   ;;  %v1376_v7 = vld [vmem:[#allocation5 + $0x28] sm:$0xff]   ;;  %v1377_v8 = vld [vmem:[#allocation5 + $0x30] sm:$0xff]  }
  0x59   : > { %1233 = vmatprep.subr.bf16.mxu0 %v1372_v1  ;;  %1280 = vmatprep.subr.bf16.mxu1 %v1372_v1  ;;  %v1375_v6 = vld [vmem:[#allocation5 + $0x20] sm:$0xff]   ;;  %v1378_v9 = vld [vmem:[#allocation5 + $0x38] sm:$0xff]   ;;  %v1381_v10 = vld [vmem:[%s1768_s29 + $0x8] sm:$0xff]  }
  0x5a   : > { %1247 = vmatprep.mubr.bf16.mxu0 %v1379_v4  ;;  %1263 = vmatprep.mubr.bf16.mxu1 %v1380_v5  ;;  %v1382_v11 = vld [vmem:[%s1768_s29 + $0x48] sm:$0xff]   ;;  %v1383_v12 = vld [vmem:[%s1768_s29 + $0x10] sm:$0xff]   ;;  %v1385_v14 = vld [vmem:[%s1768_s29 + $0x18] sm:$0xff]  }
  0x5b   : > { %v1384_v13 = vld [vmem:[%s1768_s29 + $0x50] sm:$0xff]   ;;  %v1386_v15 = vld [vmem:[%s1768_s29 + $0x58] sm:$0xff]   ;;  %v1387_v16 = vld [vmem:[%s1768_s29 + $0x20] sm:$0xff]  }
  0x5c   : > { %1234 = vmatpush3.bf16.msra.mxu0 %v1372_v1  ;;  %1288 = vmatpush3.bf16.msra.mxu1 %v1372_v1  ;;  %v1388_v17 = vld [vmem:[%s1768_s29 + $0x60] sm:$0xff]   ;;  %v1389_v18 = vld [vmem:[%s1768_s29 + $0x28] sm:$0xff]   ;;  %v1391_v20 = vld [vmem:[%s1768_s29 + $0x30] sm:$0xff]  }
  0x5d   : > { %1235 = vmatprep.subr.bf16.mxu0 %v1373_v2  ;;  %1281 = vmatprep.subr.bf16.mxu1 %v1373_v2  ;;  %v1390_v19 = vld [vmem:[%s1768_s29 + $0x68] sm:$0xff]   ;;  %v1392_v21 = vld [vmem:[%s1768_s29 + $0x70] sm:$0xff]   ;;  %v1393_v22 = vld [vmem:[%s1768_s29 + $0x38] sm:$0xff]  }
  0x5e   : > { %v1394_v23 = vld [vmem:[%s1768_s29 + $0x78] sm:$0xff]  }
  0x60   : > { %1236 = vmatpush3.bf16.msra.mxu0 %v1373_v2  ;;  %1289 = vmatpush3.bf16.msra.mxu1 %v1373_v2 }
  0x61   : > { %1237 = vmatprep.subr.bf16.mxu0 %v1374_v3  ;;  %1282 = vmatprep.subr.bf16.mxu1 %v1374_v3 }
  0x64   : > { %1238 = vmatpush3.bf16.msra.mxu0 %v1374_v3  ;;  %1290 = vmatpush3.bf16.msra.mxu1 %v1374_v3 }
  0x65   : > { %1239 = vmatprep.subr.bf16.mxu0 %v1375_v6  ;;  %1283 = vmatprep.subr.bf16.mxu1 %v1375_v6 }
  0x68   : > { %1240 = vmatpush3.bf16.msra.mxu0 %v1375_v6  ;;  %1291 = vmatpush3.bf16.msra.mxu1 %v1375_v6 }
  0x69   : > { %1241 = vmatprep.subr.bf16.mxu0 %v1376_v7  ;;  %1284 = vmatprep.subr.bf16.mxu1 %v1376_v7 }
  0x6c   : > { %1242 = vmatpush3.bf16.msra.mxu0 %v1376_v7  ;;  %1292 = vmatpush3.bf16.msra.mxu1 %v1376_v7 }
  0x6d   : > { %1243 = vmatprep.subr.bf16.mxu0 %v1377_v8  ;;  %1285 = vmatprep.subr.bf16.mxu1 %v1377_v8 }
  0x70   : > { %1244 = vmatpush3.bf16.msra.mxu0 %v1377_v8  ;;  %1293 = vmatpush3.bf16.msra.mxu1 %v1377_v8  ;;  %v1585_v8 = vmov (!%p2118_p4), 0.0  }
  0x71   : > { %1245 = vmatprep.subr.bf16.mxu0 %v1378_v9  ;;  %1286 = vmatprep.subr.bf16.mxu1 %v1378_v9  ;;  %747 = vst [vmem:[#allocation8] sm:$0x1] (!%p2118_p4), %v1585_v8  ;;  %748 = vst [vmem:[#allocation10] sm:$0x1] (!%p2118_p4), %v1585_v8 }
  0x74   : > { %1246 = vmatpush3.bf16.msra.mxu0 %v1378_v9  ;;  %1294 = vmatpush3.bf16.msra.mxu1 %v1378_v9 }
  0x77   : > { %1248 = vmatmul.mubr.bf16.vlgmr.msra.gmra.mrb[0].mxu0 %v1381_v10  ;;  %1264 = vmatmul.mubr.bf16.vlgmr.msra.gmra.mrb[0].mxu1 %v1382_v11 }
  0x78   : > { %1251 = vmatprep.mubr.bf16.mxu0 %v1383_v12  ;;  %1267 = vmatprep.mubr.bf16.mxu1 %v1384_v13 }
  0x7f   : > { %1252 = vmatmul.mubr.bf16.gmra.mrb[4].mxu0 %v1385_v14  ;;  %1268 = vmatmul.mubr.bf16.gmra.mrb[4].mxu1 %v1386_v15 }
  0x80   : > { %1255 = vmatprep.mubr.bf16.mxu0 %v1387_v16  ;;  %1271 = vmatprep.mubr.bf16.mxu1 %v1388_v17 }
  0x87   : > { %1256 = vmatmul.mubr.bf16.gmra.mrb[8].mxu0 %v1389_v18  ;;  %1272 = vmatmul.mubr.bf16.gmra.mrb[8].mxu1 %v1390_v19 }
  0x88   : > { %1259 = vmatprep.mubr.bf16.mxu0 %v1391_v20  ;;  %1275 = vmatprep.mubr.bf16.mxu1 %v1392_v21 }
  0x8f   : > { %1260 = vmatmul.mubr.bf16.gmra.mrb[12].mxu0 %v1393_v22  ;;  %1276 = vmatmul.mubr.bf16.gmra.mrb[12].mxu1 %v1394_v23 }
 0x14a   : > { %v1794_v24 = vpop.f32.mrb[0].mxu0  ;;  %v1796_v25 = vpop.f32.mrb[0].mxu1 }
 0x14b   : > { %v1798_v26 = vpop.f32.mrb[1].mxu0  ;;  %v1800_v27 = vpop.f32.mrb[1].mxu1 }
 0x14c   : > { %v1802_v28 = vpop.f32.mrb[2].mxu0  ;;  %v1804_v29 = vpop.f32.mrb[2].mxu1 }
 0x14d   : > { %v1120_v30 = vpack.c.bf16 %v1802_v28, %v1794_v24  ;;  %v1160_v31 = vpack.c.bf16 %v1804_v29, %v1796_v25  ;;  %v1810_v32 = vpop.f32.mrb[3].mxu0  ;;  %v1812_v33 = vpop.f32.mrb[3].mxu1 }
 0x14e   : > { %v1115_v34 = vpack.c.bf16 %v1810_v32, %v1798_v26  ;;  %v1155_v35 = vpack.c.bf16 %v1812_v33, %v1800_v27 }
 0x14f   : > { %1192 = vst [vmem:[%s1820_s21 + $0x8] sm:$0xff] %v1120_v30   ;;  %1200 = vst [vmem:[%s1820_s21 + $0x48] sm:$0xff] %v1160_v31  }
 0x150   : > { %1116 = vst [vmem:[%s1820_s21] sm:$0xff] %v1115_v34   ;;  %1199 = vst [vmem:[%s1820_s21 + $0x40] sm:$0xff] %v1155_v35  }
 0x152   : > { %v1826_v36 = vpop.f32.mrb[4].mxu0  ;;  %v1828_v37 = vpop.f32.mrb[4].mxu1 }
 0x153   : > { %v1830_v38 = vpop.f32.mrb[5].mxu0  ;;  %v1832_v39 = vpop.f32.mrb[5].mxu1 }
 0x154   : > { %v1834_v40 = vpop.f32.mrb[6].mxu0  ;;  %v1836_v41 = vpop.f32.mrb[6].mxu1 }
 0x155   : > { %v1130_v42 = vpack.c.bf16 %v1834_v40, %v1826_v36  ;;  %v1170_v43 = vpack.c.bf16 %v1836_v41, %v1828_v37  ;;  %v1842_v44 = vpop.f32.mrb[7].mxu0  ;;  %v1844_v45 = vpop.f32.mrb[7].mxu1 }
 0x156   : > { %v1125_v46 = vpack.c.bf16 %v1842_v44, %v1830_v38  ;;  %v1165_v47 = vpack.c.bf16 %v1844_v45, %v1832_v39 }
 0x157   : > { %1194 = vst [vmem:[%s1820_s21 + $0x18] sm:$0xff] %v1130_v42   ;;  %1202 = vst [vmem:[%s1820_s21 + $0x58] sm:$0xff] %v1170_v43  }
 0x158   : > { %1193 = vst [vmem:[%s1820_s21 + $0x10] sm:$0xff] %v1125_v46   ;;  %1201 = vst [vmem:[%s1820_s21 + $0x50] sm:$0xff] %v1165_v47  }
 0x15a   : > { %v1854_v48 = vpop.f32.mrb[8].mxu0  ;;  %v1856_v49 = vpop.f32.mrb[8].mxu1 }
 0x15b   : > { %v1858_v50 = vpop.f32.mrb[9].mxu0  ;;  %v1860_v51 = vpop.f32.mrb[9].mxu1 }
 0x15c   : > { %v1862_v52 = vpop.f32.mrb[10].mxu0  ;;  %v1864_v53 = vpop.f32.mrb[10].mxu1 }
 0x15d   : > { %v1140_v54 = vpack.c.bf16 %v1862_v52, %v1854_v48  ;;  %v1180_v55 = vpack.c.bf16 %v1864_v53, %v1856_v49  ;;  %v1870_v56 = vpop.f32.mrb[11].mxu0  ;;  %v1872_v57 = vpop.f32.mrb[11].mxu1 }
 0x15e   : > { %v1135_v58 = vpack.c.bf16 %v1870_v56, %v1858_v50  ;;  %v1175_v59 = vpack.c.bf16 %v1872_v57, %v1860_v51 }
 0x15f   : > { %1196 = vst [vmem:[%s1820_s21 + $0x28] sm:$0xff] %v1140_v54   ;;  %1204 = vst [vmem:[%s1820_s21 + $0x68] sm:$0xff] %v1180_v55  }
 0x160   : > { %1195 = vst [vmem:[%s1820_s21 + $0x20] sm:$0xff] %v1135_v58   ;;  %1203 = vst [vmem:[%s1820_s21 + $0x60] sm:$0xff] %v1175_v59  }
 0x162   : > { %v1882_v60 = vpop.f32.mrb[12].mxu0  ;;  %v1884_v61 = vpop.f32.mrb[12].mxu1  ;;  %746 = sbr.rel (%p2118_p4) target bundleno = 361 (0x169), region = 40 }
 0x163   : > { %v1886_v62 = vpop.f32.mrb[13].mxu0  ;;  %v1888_v63 = vpop.f32.mrb[13].mxu1 }
 0x164   : > { %v1890_v0 = vpop.f32.mrb[14].mxu0  ;;  %v1892_v1 = vpop.f32.mrb[14].mxu1 }
 0x165   : > { %v1150_v2 = vpack.c.bf16 %v1890_v0, %v1882_v60  ;;  %v1190_v3 = vpack.c.bf16 %v1892_v1, %v1884_v61  ;;  %v1898_v4 = vpop.f32.mrb[15].mxu0  ;;  %v1900_v5 = vpop.f32.mrb[15].mxu1 }
 0x166   : > { %v1145_v6 = vpack.c.bf16 %v1898_v4, %v1886_v62  ;;  %v1185_v7 = vpack.c.bf16 %v1900_v5, %v1888_v63 }
 0x167   : > { %1198 = vst [vmem:[%s1820_s21 + $0x38] sm:$0xff] %v1150_v2   ;;  %1206 = vst [vmem:[%s1820_s21 + $0x78] sm:$0xff] %v1190_v3  }
 0x168   : > { %1197 = vst [vmem:[%s1820_s21 + $0x30] sm:$0xff] %v1145_v6   ;;  %1205 = vst [vmem:[%s1820_s21 + $0x70] sm:$0xff] %v1185_v7  }
 0x169 PF: > { %v750_v9 = vadd.f32 %v1810_v32, %v1798_v26  ;;  %s1111_s23 = sshll.u32 %s1637_s19, 11  ;;  %s875_s28 = sshll.u32 %s1820_s21, 4  ;;  %v790_v12 = vmul.f32 %v1798_v26, %v1798_v26  ;;  %v791_v13 = vmul.f32 %v1810_v32, %v1810_v32  ;;  %s1923_s28 = int_to_ptr.vmem [resolvable:$true] %s875_s28 }
 0x16a   : > { %s1919_s9 = scalar_lea.hbm %s2101_s2, %s1111_s23  ;;  %s862_s10 = scalar_lea.sflag [#allocation4], %s1762_s11 }
 0x16b   : > { %v751_v10 = vadd.f32 %v1794_v24, %v750_v9  ;;  %s1453_s6 = scalar_lea.vmem %s1923_s28, 2048  ;;  %s1586_s7 = smov [#allocation7]  }
 0x16c   : > { %p1454_p6 = scmp.ne.s32.totalorder %s1923_s28, %s1453_s6  ;;  %s1457_s26 = sshll.u32 %s1586_s7, 4  ;;  %s1458_s26 = int_to_ptr.vmem [resolvable:$false] %s1457_s26 }
 0x16d   : > { %v752_v11 = vadd.f32 %v1802_v28, %v751_v10  ;;  %s1459_s8 = scalar_lea.vmem %s1458_s26, 4096  ;;  %p1460_p13 = scmp.lt.s32.totalorder %s1923_s28, %s1458_s26 }
 0x16e   : > { %p1455_p8 = pnand %p1454_p6, %p1711_p11  ;;  %p1461_p3 = scmp.lt.s32.totalorder %s1459_s8, %s1453_s6 }
 0x16f   : > { %v753_v14 = vadd.f32 %v752_v11, %v1830_v38 }
 0x170   : > { %p1456_p9 = pneg %p1455_p8  ;;  %p1462_p7 = por %p1461_p3, %p1460_p13 }
 0x172   : > { %p1463_p10 = pnand %p1462_p7, %p1456_p9 }
 0x174   : > { %1466 = shalt.err (!%p1463_p10)
}
 0x175   : > { %s1467_s25 = scalar_lea.hbm %s1919_s9, 2048  ;;  %s1471_s5 = scalar_lea.hbm %s2101_s2, 4096 }
 0x176   : > { %p1468_p1 = scmp.ne.s32.totalorder %s1919_s9, %s1467_s25  ;;  %p1472_p12 = scmp.lt.u32.totalorder %s1919_s9, %s2101_s2 }
 0x177   : > { %p1473_p2 = scmp.lt.u32.totalorder %s1471_s5, %s1467_s25  ;;  %p1475_p6 = scmp.lt.u32.totalorder %s1467_s25, %s1919_s9 }
 0x178   : > { %p1469_p0 = pnand %p1468_p1, %p1711_p11 }
 0x179   : > { %p1474_p4 = por %p1473_p2, %p1472_p12 }
 0x17a   : > { %p1470_p5 = pneg %p1469_p0 }
 0x17b   : > { %p1476_p8 = por %p1475_p6, %p1474_p4 }
 0x17d   : > { %p1477_p9 = pnand %p1476_p8, %p1470_p5 }
 0x17f   : > { %1480 = shalt.err (!%p1477_p9)
}
 0x180   : > { %s1587_s23 = smov 64   ;;  %s1588_s12 = smov 4   ;;  %v792_v15 = vmul.f32 %v1794_v24, %v1794_v24  ;;  %v754_v16 = vadd.f32 %v753_v14, %v1842_v44  ;;  %v793_v17 = vmul.f32 %v1802_v28, %v1802_v28  ;;  %v822_v18 = vadd.f32 %v791_v13, %v790_v12 }
 0x181   : > { %1301 = dma.vmem_to_hbm [thread:$0]  (%p1711_p11), %s1923_s28, 2048, %s1919_s9, %s862_s10, %s1587_s23, %s1587_s23, %s1588_s12   ;;  %v794_v20 = vmul.f32 %v1830_v38, %v1830_v38  ;;  %v795_v23 = vmul.f32 %v1842_v44, %v1842_v44  ;;  %v796_v30 = vmul.f32 %v1826_v36, %v1826_v36  ;;  %v797_v32 = vmul.f32 %v1834_v40, %v1834_v40 }
 0x182   : > { %v755_v19 = vadd.f32 %v1826_v36, %v754_v16  ;;  %v823_v21 = vadd.f32 %v822_v18, %v792_v15  ;;  %v798_v38 = vmul.f32 %v1858_v50, %v1858_v50  ;;  %v799_v44 = vmul.f32 %v1870_v56, %v1870_v56  ;;  %s1589_s30 = smov [#allocation8]   ;;  %p2119_p13 = scmp.eq.s32.totalorder %s1637_s19, 1 }
 0x183   : > { %v800_v47 = vmul.f32 %v1854_v48, %v1854_v48  ;;  %v801_v55 = vmul.f32 %v1862_v52, %v1862_v52  ;;  %v802_v59 = vmul.f32 %v1886_v62, %v1886_v62  ;;  %v803_v3 = vmul.f32 %v1898_v4, %v1898_v4  ;;  %s889_s11 = sshll.u32 %s1589_s30, 4  ;;  %s890_s11 = int_to_ptr.vmem [resolvable:$true] %s889_s11 }
 0x184   : > { %v756_v22 = vadd.f32 %v1834_v40, %v755_v19  ;;  %v824_v26 = vadd.f32 %v823_v21, %v793_v17  ;;  %v804_v7 = vmul.f32 %v1882_v60, %v1882_v60  ;;  %v805_v9 = vmul.f32 %v1890_v0, %v1890_v0  ;;  %s1481_s13 = scalar_lea.vmem %s890_s11, 16  ;;  %s1487_s9 = scalar_lea.vmem %s890_s11, 32 }
 0x185   : > { %v806_v11 = vmul.f32 %v1800_v27, %v1800_v27  ;;  %v807_v13 = vmul.f32 %v1812_v33, %v1812_v33  ;;  %v808_v15 = vmul.f32 %v1796_v25, %v1796_v25  ;;  %v809_v17 = vmul.f32 %v1804_v29, %v1804_v29  ;;  %p1482_p11 = scmp.ne.s32.totalorder %s890_s11, %s1481_s13  ;;  %p1488_p10 = scmp.lt.s32.totalorder %s890_s11, %s890_s11 }
 0x186   : > { %v757_v24 = vadd.f32 %v756_v22, %v1858_v50  ;;  %v825_v31 = vadd.f32 %v824_v26, %v794_v20  ;;  %v810_v19 = vmul.f32 %v1832_v39, %v1832_v39  ;;  %v811_v21 = vmul.f32 %v1844_v45, %v1844_v45  ;;  %p1489_p1 = scmp.lt.s32.totalorder %s1487_s9, %s1481_s13 }
 0x187   : > { %p1483_p3 = pnand %p1482_p11, %p2119_p13 }
 0x188   : > { %v758_v28 = vadd.f32 %v757_v24, %v1870_v56  ;;  %v826_v34 = vadd.f32 %v825_v31, %v795_v23  ;;  %v812_v23 = vmul.f32 %v1828_v37, %v1828_v37  ;;  %v813_v24 = vmul.f32 %v1836_v41, %v1836_v41  ;;  %p1490_p0 = por %p1489_p1, %p1488_p10 }
 0x189   : > { %v814_v31 = vmul.f32 %v1860_v51, %v1860_v51  ;;  %p1484_p7 = pneg %p1483_p3 }
 0x18a   : > { %v759_v35 = vadd.f32 %v1854_v48, %v758_v28  ;;  %v827_v42 = vadd.f32 %v826_v34, %v796_v30 }
 0x18b   : > { %p1491_p5 = pnand %p1490_p0, %p1484_p7 }
 0x18c   : > { %v760_v43 = vadd.f32 %v1862_v52, %v759_v35  ;;  %v828_v46 = vadd.f32 %v827_v42, %v797_v32  ;;  %v815_v32 = vmul.f32 %v1872_v57, %v1872_v57  ;;  %v816_v35 = vmul.f32 %v1856_v49, %v1856_v49 }
 0x18d   : > { %v817_v42 = vmul.f32 %v1864_v53, %v1864_v53 }
 0x18e   : > { %v761_v36 = vadd.f32 %v760_v43, %v1886_v62  ;;  %v829_v54 = vadd.f32 %v828_v46, %v798_v38 }
 0x190   : > { %v762_v40 = vadd.f32 %v761_v36, %v1898_v4  ;;  %v830_v58 = vadd.f32 %v829_v54, %v799_v44  ;;  %v818_v44 = vmul.f32 %v1888_v63, %v1888_v63  ;;  %v819_v36 = vmul.f32 %v1900_v5, %v1900_v5 }
 0x191   : > { %v820_v54 = vmul.f32 %v1884_v61, %v1884_v61 }
 0x192   : > { %v763_v50 = vadd.f32 %v1882_v60, %v762_v40  ;;  %v831_v2 = vadd.f32 %v830_v58, %v800_v47 }
 0x194   : > { %v764_v56 = vadd.f32 %v1890_v0, %v763_v50  ;;  %v832_v6 = vadd.f32 %v831_v2, %v801_v55 }
 0x196   : > { %v765_v48 = vadd.f32 %v764_v56, %v1800_v27  ;;  %v833_v8 = vadd.f32 %v832_v6, %v802_v59 }
 0x198   : > { %v766_v52 = vadd.f32 %v765_v48, %v1812_v33  ;;  %v834_v10 = vadd.f32 %v833_v8, %v803_v3  ;;  %v749_v3 = vld [vmem:[#allocation8] sm:$0x1] }
 0x19a   : > { %v767_v62 = vadd.f32 %v1796_v25, %v766_v52  ;;  %v835_v12 = vadd.f32 %v834_v10, %v804_v7 }
 0x19c   : > { %v768_v4 = vadd.f32 %v1804_v29, %v767_v62  ;;  %v836_v14 = vadd.f32 %v835_v12, %v805_v9 }
 0x19e   : > { %v769_v60 = vadd.f32 %v768_v4, %v1832_v39  ;;  %v837_v16 = vadd.f32 %v836_v14, %v806_v11 }
 0x1a0   : > { %v770_v0 = vadd.f32 %v769_v60, %v1844_v45  ;;  %v838_v18 = vadd.f32 %v837_v16, %v807_v13 }
 0x1a2   : > { %v771_v27 = vadd.f32 %v1828_v37, %v770_v0  ;;  %v839_v20 = vadd.f32 %v838_v18, %v808_v15 }
 0x1a4   : > { %v772_v33 = vadd.f32 %v1836_v41, %v771_v27  ;;  %v840_v22 = vadd.f32 %v839_v20, %v809_v17 }
 0x1a6   : > { %v773_v25 = vadd.f32 %v772_v33, %v1860_v51  ;;  %v841_v26 = vadd.f32 %v840_v22, %v810_v19 }
 0x1a8   : > { %v774_v29 = vadd.f32 %v773_v25, %v1872_v57  ;;  %v842_v30 = vadd.f32 %v841_v26, %v811_v21 }
 0x1aa   : > { %v775_v39 = vadd.f32 %v1856_v49, %v774_v29  ;;  %v843_v28 = vadd.f32 %v842_v30, %v812_v23 }
 0x1ac   : > { %v776_v45 = vadd.f32 %v1864_v53, %v775_v39  ;;  %v844_v34 = vadd.f32 %v843_v28, %v813_v24  ;;  %v821_v53 = vmul.f32 %v1892_v1, %v1892_v1 }
 0x1ae   : > { %v777_v37 = vadd.f32 %v776_v45, %v1888_v63  ;;  %v845_v38 = vadd.f32 %v844_v34, %v814_v31 }
 0x1b0   : > { %v778_v41 = vadd.f32 %v777_v37, %v1900_v5  ;;  %v846_v43 = vadd.f32 %v845_v38, %v815_v32 }
 0x1b2   : > { %v779_v51 = vadd.f32 %v1884_v61, %v778_v41  ;;  %v847_v46 = vadd.f32 %v846_v43, %v816_v35 }
 0x1b4   : > { %v780_v57 = vadd.f32 %v1892_v1, %v779_v51  ;;  %v848_v47 = vadd.f32 %v847_v46, %v817_v42 }
 0x1b6   : > { %v781_v49 = vrot.slane %v780_v57, 4  ;;  %v849_v40 = vadd.f32 %v848_v47, %v818_v44 }
 0x1b8   : > { %v782_v55 = vadd.f32 %v781_v49, %v780_v57  ;;  %v850_v58 = vadd.f32 %v849_v40, %v819_v36 }
 0x1ba   : > { %v783_v50 = vrot.slane %v782_v55, 2  ;;  %v851_v59 = vadd.f32 %v850_v58, %v820_v54 }
 0x1bc   : > { %v784_v63 = vadd.f32 %v783_v50, %v782_v55  ;;  %v852_v2 = vadd.f32 %v851_v59, %v821_v53 }
 0x1be   : > { %v785_v56 = vrot.slane %v784_v63, 1  ;;  %v853_v6 = vrot.slane %v852_v2, 4 }
 0x1c0   : > { %v786_v5 = vadd.f32 %v785_v56, %v784_v63  ;;  %v854_v48 = vadd.f32 %v853_v6, %v852_v2 }
 0x1c2   : > { %v787_v7 = vadd.f32 %v786_v5, %v749_v3  ;;  %v855_v61 = vrot.slane %v854_v48, 2 }
 0x1c4   : > { %788 = vst [vmem:[#allocation8] sm:$0x1] %v787_v7  ;;  %v856_v8 = vadd.f32 %v855_v61, %v854_v48 }
 0x1c5   : > { %1494 = shalt.err (!%p1491_p5)
}
 0x1c6   : > { %s1495_s6 = scalar_lea.hbm %s2102_s3, 16  ;;  %p2120_p2 = pmov %p2119_p13 }
 0x1c7   : > { %p1496_p12 = scmp.ne.s32.totalorder %s2102_s3, %s1495_s6  ;;  %p1501_p8 = scmp.lt.u32.totalorder %s1495_s6, %s2102_s3 }
 0x1c9   : > { %p1497_p4 = pnand %p1496_p12, %p2120_p2 }
 0x1cb   : > { %p1498_p6 = pneg %p1497_p4 }
 0x1cd   : > { %p1503_p9 = pnand %p1501_p8, %p1498_p6 }
 0x1cf   : > { %1506 = shalt.err (!%p1503_p9)
}
 0x1d0   : > { %p2121_p11 = pmov %p2120_p2  ;;  %v857_v1 = vrot.slane %v856_v8, 1  ;;  %v789_v52 = vld [vmem:[#allocation10] sm:$0x1]  ;;  %s1590_s5 = smov [#allocation10]  }
 0x1d1   : > { %s900_s29 = sshll.u32 %s1590_s5, 4  ;;  %p2122_p3 = pmov %p2120_p2  ;;  %s901_s29 = int_to_ptr.vmem [resolvable:$true] %s900_s29 }
 0x1d2   : > { %1303 = dma.vmem_to_hbm [thread:$0]  (%p2121_p11), %s890_s11, 16, %s2102_s3, [#allocation9]   ;;  %v858_v9 = vadd.f32 %v857_v1, %v856_v8 }
 0x1d3   : > { %s1507_s21 = scalar_lea.vmem %s901_s29, 16  ;;  %s1513_s23 = scalar_lea.vmem %s901_s29, 32 }
 0x1d4   : > { %v859_v10 = vadd.f32 %v858_v9, %v789_v52  ;;  %p1508_p13 = scmp.ne.s32.totalorder %s901_s29, %s1507_s21  ;;  %p1514_p1 = scmp.lt.s32.totalorder %s901_s29, %s901_s29 }
 0x1d5   : > { %p1515_p0 = scmp.lt.s32.totalorder %s1513_s23, %s1507_s21 }
 0x1d6   : > { %860 = vst [vmem:[#allocation10] sm:$0x1] %v859_v10  ;;  %p1509_p7 = pnand %p1508_p13, %p2122_p3 }
 0x1d7   : > { %p1516_p5 = por %p1515_p0, %p1514_p1 }
 0x1d8   : > { %p1510_p10 = pneg %p1509_p7 }
 0x1da   : > { %p1517_p12 = pnand %p1516_p5, %p1510_p10 }
 0x1dc   : > { %1520 = shalt.err (!%p1517_p12)
}
 0x1dd   : > { %s1521_s11 = scalar_lea.hbm %s2103_s4, 16  ;;  %p2123_p4 = pmov %p2122_p3 }
 0x1de   : > { %p1522_p2 = scmp.ne.s32.totalorder %s2103_s4, %s1521_s11  ;;  %p1527_p9 = scmp.lt.u32.totalorder %s1521_s11, %s2103_s4 }
 0x1e0   : > { %p1523_p6 = pnand %p1522_p2, %p2123_p4 }
 0x1e2   : > { %p1524_p8 = pneg %p1523_p6 }
 0x1e4   : > { %p1529_p11 = pnand %p1527_p9, %p1524_p8 }
 0x1e6   : > { %1532 = shalt.err (!%p1529_p11)
}
 0x1e7   : > { %p2124_p13 = pmov %p2122_p3 }
 0x1e9   : > { %1305 = dma.vmem_to_hbm [thread:$0]  (%p2124_p13), %s901_s29, 16, %s2103_s4, [#allocation9]  }
 0x1ea   : > { %1558 = dma.done.wait (%p2122_p3), [#allocation9], 32   ;;  %p2125_p7 = pmov %p2122_p3 }
 0x1ec   : > { %1560 = vsyncadd (%p2125_p7), [#allocation9], 4294967264 }
 0x1ed PF: > { %s920_s26 = sand.u32 1, %s1567_s15   ;;  %p2126_p10 = scmp.ne.s32.totalorder %s2108_s22, 0 }
 0x1ee   : > { %p2127_p1 = scmp.ge.s32.totalorder %s1579_s18, 2  ;;  %s921_s8 = scalar_lea.sflag [#allocation4], %s920_s26 }
 0x1f0   : > { %p1320_p0 = pnand %p2127_p1, %p2126_p10 }
 0x1f2   : > { %1562 = dma.done.wait (!%p1320_p0), %s921_s8, 2048  }
 0x1f3   : > { %1564 = vsyncadd (!%p1320_p0), %s921_s8, 4294965248  ;;  %p20_p5 = scmp.ge.s32.totalorder %s1673_s27, 4   ;;  %s2128_s15 = smov %s1571_s16 }
 0x1f4   : > { %s2129_s16 = smov %s1575_s17  ;;  %s2130_s17 = smov %s1707_s24 }
 0x1f5   : > { %s2131_s18 = smov %s1673_s27  ;;  %22 = sbr.rel (!%p20_p5) target bundleno = 7 (0x7), region = 97 }
 0x1fc   :  { %926 = vsyncpa [#allocation3], 1 }
 0x1fd   :  { %928 = vsyncpa [#allocation3 + $0x1], 1 }
 0x1fe   :  { %929 = vsyncpa [#allocation6], 1 }
 0x1ff   :  { %930 = vsyncpa [#allocation4], 1 }
 0x200   :  { %932 = vsyncpa [#allocation4 + $0x1], 1 }
 0x201   :  { %933 = vsyncpa [#allocation9], 1 }

// kernel: bottleneck_big_ci.6
= control target key start
LH: loop header
LB: loop body
LE: loop exit
PB: predicated region body
PF: predicated region fallthrough
CT: control target
= control target key end

     0   :  { %10 = vsyncpa [#allocation3], 0  ;;  %s1847_s0 = inlined_call_operand.hbm [shape: bf16[512,128], index: 0, kind: input, shape index: {}]   ;;  %s1848_s1 = inlined_call_operand.hbm [shape: f32[1,128], index: 1, kind: input, shape index: {}]   ;;  %s1849_s2 = inlined_call_operand.hbm [shape: f32[1,128], index: 2, kind: input, shape index: {}]   ;;  %s1850_s3 = inlined_call_operand.hbm [shape: f32[1,128], index: 3, kind: input, shape index: {}]   ;;  %s1851_s4 = inlined_call_operand.hbm [shape: f32[1,128], index: 4, kind: input, shape index: {}]   ;;  %s1852_s5 = inlined_call_operand.hbm [shape: bf16[512,128], index: 5, kind: output, shape index: {}]  }
   0x1   :  { %12 = vsyncpa [#allocation3 + $0x1], 0 }
   0x2   :  { %13 = vsyncpa [#allocation6], 0 }
   0x3   :  { %14 = vsyncpa [#allocation9], 0 }
   0x4   :  { %15 = vsyncpa [#allocation4], 0 }
   0x5   :  { %17 = vsyncpa [#allocation4 + $0x1], 0  ;;  %s1379_s18 = smov 0   ;;  %s1381_s19 = smov 0  }
   0x6   :  { %s1383_s20 = smov 0   ;;  %s1385_s21 = smov 0  }
   0x7 LB: > { %s1400_s22 = sadd.s32 4294967295, %s1337_s21   ;;  %s766_s23 = sadd.s32 4294967294, %s1337_s21   ;;  %s1337_s21 = sphi %s1385_s21, %s1875_s21   ;;  %s1333_s20 = sphi %s1383_s20, %s1874_s20   ;;  %s1329_s19 = sphi %s1381_s19, %s1873_s19   ;;  %s1325_s18 = sphi %s1379_s18, %s1872_s18  }
   0x8   : > { %p43_p0 = scmp.ne.s32.totalorder %s1329_s19, %s1325_s18  ;;  %p1853_p1 = scmp.eq.s32.totalorder %s1400_s22, 0 }
   0x9   : > { %p157_p3 = scmp.eq.s32.totalorder %s766_s23, 1  ;;  %p767_p5 = scmp.ge.s32.totalorder %s1337_s21, 1 }
   0xa   : > { %p1409_p4 = por %p1853_p1, %p43_p0  ;;  %p164_p7 = scmp.lt.s32.totalorder %s1337_s21, 3 }
   0xb   : > { %p1414_p6 = por %p157_p3, %p43_p0  ;;  %s1339_s27 = smov [#allocation5]  }
   0xc   : > { %s1856_s24 = scalar_select %p1409_p4, 1, 0 }
   0xd   : > { %s1857_s25 = scalar_select %p1414_p6, 1, 0 }
   0xe   : > { %p1419_p8 = pnand %p767_p5, %p164_p7  ;;  %s177_s28 = sshll.u32 %s1339_s27, 4  ;;  %s178_s28 = int_to_ptr.vmem [resolvable:$true] %s177_s28 }
   0xf   : > { %s1340_s29 = smov [#allocation8]   ;;  %s1341_s7 = smov [#allocation7]  }
  0x10   : > { %s1858_s26 = scalar_select %p1419_p8, 1, 0 }
  0x11   : > { %p1048_p10 = pneg %p1419_p8  ;;  %s199_s30 = sshll.u32 %s1340_s29, 4  ;;  %s1432_s30 = int_to_ptr.vmem [resolvable:$true] %s199_s30 }
  0x12   : > { %s188_s8 = sshll.u32 %s1341_s7, 4  ;;  %s1121_s11 = scalar_lea.hbm %s1848_s1, 16  ;;  %s1434_s8 = int_to_ptr.vmem [resolvable:$true] %s188_s8 }
  0x13   : > { %p1428_p11 = pnand %p1048_p10, %p1853_p1  ;;  %p1122_p12 = scmp.ne.s32.totalorder %s1848_s1, %s1121_s11 }
  0x14   : > { %p1128_p5 = scmp.lt.u32.totalorder %s1121_s11, %s1848_s1 }
  0x15   : > { %p1444_p13 = pneg %p1428_p11 }
  0x17   : > { %p1124_p0 = pnand %p1444_p13, %p1122_p12 }
  0x19   : > { %p1125_p3 = pneg %p1124_p0 }
  0x1b   : > { %p1130_p7 = pnand %p1128_p5, %p1125_p3 }
  0x1d   : > { %1133 = shalt.err (!%p1130_p7)
}
  0x1e   : > { %s1134_s17 = scalar_lea.vmem %s178_s28, 16  ;;  %s1141_s23 = scalar_lea.vmem %s178_s28, 32 }
  0x1f   : > { %p1135_p10 = scmp.ne.s32.totalorder %s178_s28, %s1134_s17  ;;  %p1142_p2 = scmp.lt.s32.totalorder %s178_s28, %s178_s28 }
  0x20   : > { %p1143_p6 = scmp.lt.s32.totalorder %s1141_s23, %s1134_s17 }
  0x21   : > { %p1137_p9 = pnand %p1135_p10, %p1444_p13 }
  0x22   : > { %p1144_p4 = por %p1143_p6, %p1142_p2 }
  0x23   : > { %p1138_p1 = pneg %p1137_p9 }
  0x25   : > { %p1145_p8 = pnand %p1144_p4, %p1138_p1 }
  0x27   : > { %1148 = shalt.err (!%p1145_p8)
}
  0x28   : > { %1051 = dma.hbm_to_vmem [thread:$0]  (!%p1428_p11), %s1848_s1, 16, %s178_s28, [#allocation6]  }
  0x29   : > { %s1149_s10 = scalar_lea.hbm %s1850_s3, 16 }
  0x2a   : > { %p1150_p9 = scmp.ne.s32.totalorder %s1850_s3, %s1149_s10  ;;  %p1156_p1 = scmp.lt.u32.totalorder %s1149_s10, %s1850_s3 }
  0x2c   : > { %p1152_p12 = pnand %p1150_p9, %p1444_p13 }
  0x2e   : > { %p1153_p2 = pneg %p1152_p12 }
  0x30   : > { %p1158_p4 = pnand %p1156_p1, %p1153_p2 }
  0x32   : > { %1161 = shalt.err (!%p1158_p4)
}
  0x33   : > { %s1162_s28 = scalar_lea.vmem %s1432_s30, 16  ;;  %s1169_s16 = scalar_lea.vmem %s1432_s30, 32 }
  0x34   : > { %p1163_p6 = scmp.ne.s32.totalorder %s1432_s30, %s1162_s28  ;;  %p1170_p3 = scmp.lt.s32.totalorder %s1432_s30, %s1432_s30 }
  0x35   : > { %p1171_p5 = scmp.lt.s32.totalorder %s1169_s16, %s1162_s28 }
  0x36   : > { %p1165_p8 = pnand %p1163_p6, %p1444_p13 }
  0x37   : > { %p1172_p7 = por %p1171_p5, %p1170_p3 }
  0x38   : > { %p1166_p0 = pneg %p1165_p8 }
  0x3a   : > { %p1173_p10 = pnand %p1172_p7, %p1166_p0 }
  0x3c   : > { %1176 = shalt.err (!%p1173_p10)
}
  0x3d   : > { %1057 = dma.hbm_to_vmem [thread:$0]  (!%p1428_p11), %s1850_s3, 16, %s1432_s30, [#allocation9]  }
  0x3e   : > { %s1177_s7 = scalar_lea.hbm %s1849_s2, 16 }
  0x3f   : > { %p1178_p9 = scmp.ne.s32.totalorder %s1849_s2, %s1177_s7  ;;  %p1184_p1 = scmp.lt.u32.totalorder %s1177_s7, %s1849_s2 }
  0x41   : > { %p1180_p12 = pnand %p1178_p9, %p1444_p13 }
  0x43   : > { %p1181_p2 = pneg %p1180_p12 }
  0x45   : > { %p1186_p4 = pnand %p1184_p1, %p1181_p2 }
  0x47   : > { %1189 = shalt.err (!%p1186_p4)
}
  0x48   : > { %s1190_s30 = scalar_lea.vmem %s1434_s8, 16  ;;  %s1197_s13 = scalar_lea.vmem %s1434_s8, 32 }
  0x49   : > { %p1191_p6 = scmp.ne.s32.totalorder %s1434_s8, %s1190_s30  ;;  %p1198_p3 = scmp.lt.s32.totalorder %s1434_s8, %s1434_s8 }
  0x4a   : > { %p1199_p5 = scmp.lt.s32.totalorder %s1197_s13, %s1190_s30 }
  0x4b   : > { %p1193_p8 = pnand %p1191_p6, %p1444_p13 }
  0x4c   : > { %p1200_p7 = por %p1199_p5, %p1198_p3 }
  0x4d   : > { %p1194_p0 = pneg %p1193_p8 }
  0x4f   : > { %p1201_p10 = pnand %p1200_p7, %p1194_p0 }
  0x51   : > { %1204 = shalt.err (!%p1201_p10)
}
  0x52   : > { %1054 = dma.hbm_to_vmem [thread:$0]  (!%p1428_p11), %s1849_s2, 16, %s1434_s8, [#allocation6]  }
  0x53   : > { %s1342_s16 = smov [#allocation10]   ;;  %s1205_s29 = scalar_lea.hbm %s1851_s4, 16 }
  0x54   : > { %s210_s17 = sshll.u32 %s1342_s16, 4  ;;  %p1206_p9 = scmp.ne.s32.totalorder %s1851_s4, %s1205_s29  ;;  %s211_s17 = int_to_ptr.vmem [resolvable:$true] %s210_s17 }
  0x55   : > { %p1212_p1 = scmp.lt.u32.totalorder %s1205_s29, %s1851_s4 }
  0x56   : > { %p1208_p12 = pnand %p1206_p9, %p1444_p13 }
  0x58   : > { %p1209_p2 = pneg %p1208_p12 }
  0x5a   : > { %p1214_p4 = pnand %p1212_p1, %p1209_p2 }
  0x5c   : > { %1217 = shalt.err (!%p1214_p4)
}
  0x5d   : > { %s1218_s8 = scalar_lea.vmem %s211_s17, 16  ;;  %s1225_s12 = scalar_lea.vmem %s211_s17, 32 }
  0x5e   : > { %p1219_p6 = scmp.ne.s32.totalorder %s211_s17, %s1218_s8  ;;  %p1226_p3 = scmp.lt.s32.totalorder %s211_s17, %s211_s17 }
  0x5f   : > { %p1227_p5 = scmp.lt.s32.totalorder %s1225_s12, %s1218_s8 }
  0x60   : > { %p1221_p8 = pnand %p1219_p6, %p1444_p13 }
  0x61   : > { %p1228_p7 = por %p1227_p5, %p1226_p3 }
  0x62   : > { %p1222_p0 = pneg %p1221_p8 }
  0x64   : > { %p1229_p10 = pnand %p1228_p7, %p1222_p0 }
  0x66   : > { %1232 = shalt.err (!%p1229_p10)
}
  0x67   : > { %1060 = dma.hbm_to_vmem [thread:$0]  (!%p1428_p11), %s1851_s4, 16, %s211_s17, [#allocation9]  }
  0x68   : > { %s1527_s14 = sadd.s32 1, %s1337_s21   ;;  %s30_s15 = sadd.s32 1, %s1333_s20 }
  0x69   : > { %s27_s6 = ssub.s32 %s1337_s21, %s1527_s14  ;;  %p37_p13 = scmp.ne.s32.totalorder %s1333_s20, %s1329_s19 }
  0x6a   : > { %p28_p9 = scmp.eq.s32.totalorder %s27_s6, 0  ;;  %p38_p12 = scmp.eq.s32.totalorder %s1337_s21, 0 }
  0x6b   : > { %p1861_p2 = scmp.eq.s32.totalorder %s1400_s22, 1  ;;  %p1073_p4 = scmp.lt.s32.totalorder %s1337_s21, 2 }
  0x6c   : > { %s1543_s16 = scalar_select %p28_p9, %s1333_s20, %s30_s15  }
  0x6d   : > { %p1537_p1 = por %p1861_p2, %p37_p13  ;;  %p39_p6 = por %p38_p12, %p37_p13 }
  0x6e   : > { %s221_s23 = sand.u32 1, %s1333_s20   ;;  %s820_s17 = sshll.u32 %s1337_s21, 11 }
  0x6f   : > { %s773_s27 = sshll.u32 %s221_s23, 7  ;;  %s1550_s9 = scalar_lea.hbm %s1847_s0, %s820_s17 }
  0x70   : > { %s225_s10 = scalar_lea.vmem [#allocation2], %s773_s27  ;;  %p1554_p11 = pnand %p1073_p4, %p39_p6 }
  0x71   : > { %s232_s11 = sshll.u32 %s225_s10, 4  ;;  %s1558_s12 = scalar_lea.sflag [#allocation3], %s221_s23  ;;  %s1552_s11 = int_to_ptr.vmem [resolvable:$true] %s232_s11 }
  0x72   : > { %s1233_s30 = scalar_lea.hbm %s1550_s9, 2048  ;;  %p1235_p0 = pneg %p1554_p11 }
  0x73   : > { %p1234_p8 = scmp.ne.s32.totalorder %s1550_s9, %s1233_s30  ;;  %s1238_s6 = scalar_lea.hbm %s1847_s0, 4096 }
  0x74   : > { %p1239_p7 = scmp.lt.u32.totalorder %s1550_s9, %s1847_s0  ;;  %p1240_p10 = scmp.lt.u32.totalorder %s1238_s6, %s1233_s30 }
  0x75   : > { %p1236_p3 = pnand %p1235_p0, %p1234_p8  ;;  %p1242_p9 = scmp.lt.u32.totalorder %s1233_s30, %s1550_s9 }
  0x76   : > { %p1241_p13 = por %p1240_p10, %p1239_p7 }
  0x77   : > { %p1237_p5 = pneg %p1236_p3 }
  0x78   : > { %p1243_p12 = por %p1242_p9, %p1241_p13 }
  0x7a   : > { %p1244_p2 = pnand %p1243_p12, %p1237_p5 }
  0x7c   : > { %1247 = shalt.err (!%p1244_p2)
}
  0x7d   : > { %s1248_s23 = scalar_lea.vmem %s1552_s11, 2048  ;;  %s1343_s29 = smov [#allocation2]  }
  0x7e   : > { %p1249_p4 = scmp.ne.s32.totalorder %s1552_s11, %s1248_s23  ;;  %s1253_s7 = sshll.u32 %s1343_s29, 4  ;;  %s1254_s7 = int_to_ptr.vmem [resolvable:$false] %s1253_s7 }
  0x7f   : > { %s1255_s10 = scalar_lea.vmem %s1254_s7, 4096  ;;  %p1256_p3 = scmp.lt.s32.totalorder %s1552_s11, %s1254_s7 }
  0x80   : > { %p1251_p6 = pnand %p1249_p4, %p1235_p0  ;;  %p1257_p7 = scmp.lt.s32.totalorder %s1255_s10, %s1248_s23 }
  0x82   : > { %p1252_p8 = pneg %p1251_p6  ;;  %p1258_p10 = por %p1257_p7, %p1256_p3 }
  0x84   : > { %p1259_p13 = pnand %p1258_p10, %p1252_p8 }
  0x86   : > { %1262 = shalt.err (!%p1259_p13)
}
  0x87   : > { %s1344_s30 = smov 64   ;;  %s1345_s13 = smov 4  }
  0x88   : > { %1064 = dma.hbm_to_vmem [thread:$0]  (!%p1554_p11), %s1550_s9, 2048, %s1552_s11, %s1558_s12, %s1344_s30, %s1344_s30, %s1345_s13  }
  0x89   : > { %p1864_p0 = scmp.ne.s32.totalorder %s1858_s26, 0 }
  0x8a   : > { %s1589_s15 = sand.u32 (!%p1864_p0), 1, %s1329_s19   ;;  %p1865_p5 = scmp.ne.s32.totalorder (!%p1864_p0), %s1856_s24, 0 }
  0x8b   : > { %244 = sbr.rel (%p1864_p0) target bundleno = 228 (0xe4), region = 40  ;;  %s777_s6 = sshll.u32 (!%p1864_p0), %s1589_s15, 7 }
  0x8c   : > { %s247_s27 = scalar_lea.sflag (!%p1864_p0), [#allocation3], %s1589_s15  ;;  %s1595_s17 = scalar_lea.vmem (!%p1864_p0), [#allocation2], %s777_s6 }
  0x92   : > { %1308 = dma.done.wait (%p1865_p5), %s247_s27, 2048  }
  0x93   : > { %1310 = vsyncadd (%p1865_p5), %s247_s27, 4294965248  ;;  %p1866_p11 = scmp.eq.s32.totalorder %s1400_s22, 0 }
  0x95   : > { %1312 = dma.done.wait (%p1866_p11), [#allocation6], 32   ;;  %p1867_p9 = pmov %p1866_p11 }
  0x97   : > { %1314 = vsyncadd (%p1867_p9), [#allocation6], 4294967264  ;;  %p1868_p12 = pmov %p1867_p9 }
  0x98   : > { %p1869_p2 = pmov %p1867_p9 }
  0x99   : > { %1316 = dma.done.wait (%p1868_p12), [#allocation9], 32  }
  0x9a   : > { %1318 = vsyncadd (%p1869_p2), [#allocation9], 4294967264  ;;  %v295_v0 = vld [vmem:[#allocation5] sm:$0x1]  ;;  %v297_v1 = vld [vmem:[#allocation7] sm:$0x1]  ;;  %v374_v8 = vlaneseq }
  0x9b   : > { %v296_v2 = vmul.f32 0.001953125, %v295_v0  ;;  %v298_v3 = vmul.f32 0.001953125, %v297_v1  ;;  %v855_v10 = vld [vmem:[%s1595_s17] sm:$0xff]   ;;  %v998_v11 = vld [vmem:[%s1595_s17 + $0x8] sm:$0xff]   ;;  %v999_v12 = vld [vmem:[%s1595_s17 + $0x10] sm:$0xff]   ;;  %s1704_s24 = scalar_lea.vmem [#allocation11], %s777_s6 }
  0x9c   : > { %v1609_v9 = vshrl.u32 %v374_v8, 7  ;;  %v1000_v13 = vld [vmem:[%s1595_s17 + $0x18] sm:$0xff]   ;;  %v1616_v14 = vld [vmem:[%s1595_s17 + $0x20] sm:$0xff]   ;;  %v1619_v15 = vld [vmem:[%s1595_s17 + $0x28] sm:$0xff]   ;;  %v856_v16 = vunpack.c.l.bf16 %v855_v10  ;;  %v857_v17 = vunpack.c.h.bf16 %v855_v10  ;;  %v860_v19 = vunpack.c.l.bf16 %v998_v11  ;;  %s853_s26 = sshll.u32 %s1400_s22, 11  ;;  %s655_s9 = sshll.u32 %s1704_s24, 4  ;;  %s1801_s9 = int_to_ptr.vmem [resolvable:$true] %s655_s9 }
  0x9d   : > { %v299_v4 = vmul.f32 %v296_v2, %v296_v2  ;;  %v1003_v20 = vld [vmem:[%s1595_s17 + $0x30] sm:$0xff]   ;;  %v1624_v21 = vld [vmem:[%s1595_s17 + $0x38] sm:$0xff]   ;;  %v861_v22 = vunpack.c.h.bf16 %v998_v11  ;;  %v864_v23 = vunpack.c.l.bf16 %v999_v12  ;;  %v865_v24 = vunpack.c.h.bf16 %v999_v12  ;;  %v1627_v26 = vld [vmem:[%s1595_s17 + $0x40] sm:$0xff]   ;;  %s1799_s12 = scalar_lea.hbm %s1852_s5, %s853_s26  ;;  %s642_s22 = scalar_lea.sflag [#allocation4], %s1589_s15 }
  0x9e   : > { %v376_v18 = vsub.s32 0, %v1609_v9  ;;  %v868_v25 = vunpack.c.l.bf16 %v1000_v13  ;;  %v1630_v27 = vld [vmem:[%s1595_s17 + $0x48] sm:$0xff]   ;;  %v302_v28 = vld [vmem:[#allocation8] sm:$0x1]  ;;  %v869_v29 = vunpack.c.h.bf16 %v1000_v13  ;;  %v872_v30 = vunpack.c.l.bf16 %v1616_v14  ;;  %v1636_v33 = vld [vmem:[%s1595_s17 + $0x50] sm:$0xff]   ;;  %s1263_s23 = scalar_lea.vmem %s1801_s9, 2048 }
  0x9f   : > { %v300_v5 = vsub.f32 %v298_v3, %v299_v4  ;;  %v873_v31 = vunpack.c.h.bf16 %v1616_v14  ;;  %v876_v32 = vunpack.c.l.bf16 %v1619_v15  ;;  %v877_v34 = vunpack.c.h.bf16 %v1619_v15  ;;  %v1641_v38 = vld [vmem:[%s1595_s17 + $0x58] sm:$0xff]   ;;  %v1644_v39 = vld [vmem:[%s1595_s17 + $0x60] sm:$0xff]   ;;  %v1651_v45 = vld [vmem:[%s1595_s17 + $0x68] sm:$0xff]   ;;  %p1264_p4 = scmp.ne.s32.totalorder %s1801_s9, %s1263_s23  ;;  %s1346_s29 = smov [#allocation11]  }
  0xa0   : > { %v880_v35 = vunpack.c.l.bf16 %v1003_v20  ;;  %v881_v36 = vunpack.c.h.bf16 %v1003_v20  ;;  %v884_v37 = vunpack.c.l.bf16 %v1624_v21  ;;  %v885_v41 = vunpack.c.h.bf16 %v1624_v21  ;;  %v1657_v50 = vld [vmem:[%s1595_s17 + $0x70] sm:$0xff]   ;;  %v1660_v51 = vld [vmem:[%s1595_s17 + $0x78] sm:$0xff]   ;;  %v306_v52 = vld [vmem:[#allocation10] sm:$0x1]  ;;  %s1267_s7 = sshll.u32 %s1346_s29, 4  ;;  %s1268_s7 = int_to_ptr.vmem [resolvable:$false] %s1267_s7 }
  0xa1   : > { %v301_v6 = vmax.f32 %v300_v5, 0.0  ;;  %v888_v42 = vunpack.c.l.bf16 %v1627_v26  ;;  %v889_v43 = vunpack.c.h.bf16 %v1627_v26  ;;  %v892_v44 = vunpack.c.l.bf16 %v1630_v27  ;;  %p1265_p6 = pnand %p1264_p4, %p1537_p1  ;;  %s1269_s10 = scalar_lea.vmem %s1268_s7, 4096 }
  0xa2   : > { %v893_v47 = vunpack.c.h.bf16 %v1630_v27  ;;  %v896_v48 = vunpack.c.l.bf16 %v1636_v33  ;;  %v897_v49 = vunpack.c.h.bf16 %v1636_v33  ;;  %v900_v53 = vunpack.c.l.bf16 %v1641_v38  ;;  %p1270_p3 = scmp.lt.s32.totalorder %s1801_s9, %s1268_s7  ;;  %p1271_p7 = scmp.lt.s32.totalorder %s1269_s10, %s1263_s23 }
  0xa3   : > { %v303_v7 = vadd.f32 1e-05, %v301_v6  ;;  %v901_v54 = vunpack.c.h.bf16 %v1641_v38  ;;  %v904_v55 = vunpack.c.l.bf16 %v1644_v39  ;;  %v905_v56 = vunpack.c.h.bf16 %v1644_v39  ;;  %p1266_p8 = pneg %p1265_p6 }
  0xa4   : > { %v908_v59 = vunpack.c.l.bf16 %v1651_v45  ;;  %v909_v60 = vunpack.c.h.bf16 %v1651_v45  ;;  %v912_v61 = vunpack.c.l.bf16 %v1657_v50  ;;  %v913_v62 = vunpack.c.h.bf16 %v1657_v50  ;;  %p1272_p10 = por %p1271_p7, %p1270_p3 }
  0xa5   : > { %1119 = vrsqrt.f32 %v303_v7  ;;  %v916_v63 = vunpack.c.l.bf16 %v1660_v51  ;;  %v917_v0 = vunpack.c.h.bf16 %v1660_v51 }
  0xa6   : > { %p1273_p13 = pnand %p1272_p10, %p1266_p8 }
  0xaf   : > { %v1120_v40 = vpop.eup %1119 }
  0xb0   : > { %v305_v46 = vmul.f32 %v1120_v40, %v302_v28 }
  0xb2   : > { %v307_v57 = vmul.f32 %v305_v46, %v296_v2  ;;  %v1666_v58 = vrot.slane %v305_v46, %v376_v18 }
  0xb4   : > { %v308_v1 = vsub.f32 %v306_v52, %v307_v57  ;;  %v379_v3 = vmul.f32 %v856_v16, %v1666_v58  ;;  %v380_v4 = vmul.f32 %v857_v17, %v1666_v58  ;;  %v381_v2 = vmul.f32 %v860_v19, %v1666_v58 }
  0xb5   : > { %v382_v5 = vmul.f32 %v861_v22, %v1666_v58  ;;  %v383_v6 = vmul.f32 %v864_v23, %v1666_v58  ;;  %v384_v7 = vmul.f32 %v865_v24, %v1666_v58  ;;  %v385_v8 = vmul.f32 %v868_v25, %v1666_v58 }
  0xb6   : > { %v1681_v9 = vrot.slane %v308_v1, %v376_v18  ;;  %v386_v10 = vmul.f32 %v869_v29, %v1666_v58  ;;  %v387_v11 = vmul.f32 %v872_v30, %v1666_v58  ;;  %v388_v12 = vmul.f32 %v873_v31, %v1666_v58 }
  0xb7   : > { %v389_v13 = vmul.f32 %v876_v32, %v1666_v58  ;;  %v390_v14 = vmul.f32 %v877_v34, %v1666_v58  ;;  %v391_v15 = vmul.f32 %v880_v35, %v1666_v58  ;;  %v392_v16 = vmul.f32 %v881_v36, %v1666_v58 }
  0xb8   : > { %v417_v17 = vadd.f32 %v1681_v9, %v379_v3  ;;  %v418_v19 = vadd.f32 %v1681_v9, %v380_v4  ;;  %v419_v18 = vadd.f32 %v1681_v9, %v381_v2  ;;  %v420_v20 = vadd.f32 %v1681_v9, %v382_v5 }
  0xb9   : > { %v421_v22 = vadd.f32 %v1681_v9, %v383_v6  ;;  %v422_v23 = vadd.f32 %v1681_v9, %v384_v7  ;;  %v423_v24 = vadd.f32 %v1681_v9, %v385_v8  ;;  %v424_v25 = vadd.f32 %v1681_v9, %v386_v10 }
  0xba   : > { %v449_v28 = vmax.f32 %v417_v17, 0.0  ;;  %v450_v29 = vmax.f32 %v418_v19, 0.0  ;;  %v451_v30 = vmax.f32 %v419_v18, 0.0  ;;  %v452_v31 = vmax.f32 %v420_v20, 0.0 }
  0xbb   : > { %v453_v32 = vmax.f32 %v421_v22, 0.0  ;;  %v454_v34 = vmax.f32 %v422_v23, 0.0  ;;  %v455_v35 = vmax.f32 %v423_v24, 0.0  ;;  %v456_v36 = vmax.f32 %v424_v25, 0.0 }
  0xbc   : > { %v921_v40 = vpack.c.bf16 %v450_v29, %v449_v28  ;;  %v926_v46 = vpack.c.bf16 %v452_v31, %v451_v30  ;;  %v425_v52 = vadd.f32 %v1681_v9, %v387_v11  ;;  %v426_v57 = vadd.f32 %v1681_v9, %v388_v12 }
  0xbd   : > { %v931_v1 = vpack.c.bf16 %v454_v34, %v453_v32  ;;  %v936_v3 = vpack.c.bf16 %v456_v36, %v455_v35  ;;  %v427_v4 = vadd.f32 %v1681_v9, %v389_v13  ;;  %v428_v2 = vadd.f32 %v1681_v9, %v390_v14 }
  0xbe   : > { %922 = vst [vmem:[%s1704_s24] sm:$0xff] %v921_v40   ;;  %1013 = vst [vmem:[%s1704_s24 + $0x8] sm:$0xff] %v926_v46   ;;  %v457_v5 = vmax.f32 %v425_v52, 0.0  ;;  %v458_v6 = vmax.f32 %v426_v57, 0.0  ;;  %v429_v7 = vadd.f32 %v1681_v9, %v391_v15  ;;  %v430_v8 = vadd.f32 %v1681_v9, %v392_v16 }
  0xbf   : > { %1014 = vst [vmem:[%s1704_s24 + $0x10] sm:$0xff] %v931_v1   ;;  %1015 = vst [vmem:[%s1704_s24 + $0x18] sm:$0xff] %v936_v3   ;;  %v459_v10 = vmax.f32 %v427_v4, 0.0  ;;  %v460_v11 = vmax.f32 %v428_v2, 0.0  ;;  %v393_v12 = vmul.f32 %v884_v37, %v1666_v58  ;;  %v394_v13 = vmul.f32 %v885_v41, %v1666_v58 }
  0xc0   : > { %v941_v14 = vpack.c.bf16 %v458_v6, %v457_v5  ;;  %v461_v17 = vmax.f32 %v429_v7, 0.0  ;;  %v462_v19 = vmax.f32 %v430_v8, 0.0  ;;  %v395_v15 = vmul.f32 %v888_v42, %v1666_v58 }
  0xc1   : > { %v946_v16 = vpack.c.bf16 %v460_v11, %v459_v10  ;;  %v431_v18 = vadd.f32 %v1681_v9, %v393_v12  ;;  %v432_v20 = vadd.f32 %v1681_v9, %v394_v13  ;;  %v396_v37 = vmul.f32 %v889_v43, %v1666_v58 }
  0xc2   : > { %1016 = vst [vmem:[%s1704_s24 + $0x20] sm:$0xff] %v941_v14   ;;  %v951_v21 = vpack.c.bf16 %v462_v19, %v461_v17  ;;  %v433_v41 = vadd.f32 %v1681_v9, %v395_v15  ;;  %v397_v22 = vmul.f32 %v892_v44, %v1666_v58  ;;  %v398_v42 = vmul.f32 %v893_v47, %v1666_v58 }
  0xc3   : > { %1017 = vst [vmem:[%s1704_s24 + $0x28] sm:$0xff] %v946_v16   ;;  %v463_v23 = vmax.f32 %v431_v18, 0.0  ;;  %v464_v24 = vmax.f32 %v432_v20, 0.0  ;;  %v434_v25 = vadd.f32 %v1681_v9, %v396_v37  ;;  %v399_v26 = vmul.f32 %v896_v48, %v1666_v58 }
  0xc4   : > { %1018 = vst [vmem:[%s1704_s24 + $0x30] sm:$0xff] %v951_v21   ;;  %v465_v43 = vmax.f32 %v433_v41, 0.0  ;;  %v435_v28 = vadd.f32 %v1681_v9, %v397_v22  ;;  %v436_v44 = vadd.f32 %v1681_v9, %v398_v42  ;;  %v400_v27 = vmul.f32 %v897_v49, %v1666_v58 }
  0xc5   : > { %v956_v47 = vpack.c.bf16 %v464_v24, %v463_v23  ;;  %v466_v29 = vmax.f32 %v434_v25, 0.0  ;;  %v437_v30 = vadd.f32 %v1681_v9, %v399_v26  ;;  %v401_v31 = vmul.f32 %v900_v53, %v1666_v58 }
  0xc6   : > { %v467_v48 = vmax.f32 %v435_v28, 0.0  ;;  %v468_v32 = vmax.f32 %v436_v44, 0.0  ;;  %v438_v34 = vadd.f32 %v1681_v9, %v400_v27  ;;  %v402_v35 = vmul.f32 %v901_v54, %v1666_v58 }
  0xc7   : > { %1019 = vst [vmem:[%s1704_s24 + $0x38] sm:$0xff] %v956_v47   ;;  %v961_v33 = vpack.c.bf16 %v466_v29, %v465_v43  ;;  %v469_v49 = vmax.f32 %v437_v30, 0.0  ;;  %v439_v36 = vadd.f32 %v1681_v9, %v401_v31  ;;  %v403_v40 = vmul.f32 %v904_v55, %v1666_v58 }
  0xc8   : > { %v966_v46 = vpack.c.bf16 %v468_v32, %v467_v48  ;;  %v470_v53 = vmax.f32 %v438_v34, 0.0  ;;  %v440_v52 = vadd.f32 %v1681_v9, %v402_v35  ;;  %v404_v38 = vmul.f32 %v905_v56, %v1666_v58 }
  0xc9   : > { %1020 = vst [vmem:[%s1704_s24 + $0x40] sm:$0xff] %v961_v33   ;;  %v471_v54 = vmax.f32 %v439_v36, 0.0  ;;  %v441_v57 = vadd.f32 %v1681_v9, %v403_v40  ;;  %v405_v1 = vmul.f32 %v908_v59, %v1666_v58  ;;  %v406_v55 = vmul.f32 %v909_v60, %v1666_v58 }
  0xca   : > { %1021 = vst [vmem:[%s1704_s24 + $0x48] sm:$0xff] %v966_v46   ;;  %v971_v3 = vpack.c.bf16 %v470_v53, %v469_v49  ;;  %v472_v4 = vmax.f32 %v440_v52, 0.0  ;;  %v442_v39 = vadd.f32 %v1681_v9, %v404_v38  ;;  %v407_v56 = vmul.f32 %v912_v61, %v1666_v58 }
  0xcb   : > { %v473_v2 = vmax.f32 %v441_v57, 0.0  ;;  %v443_v5 = vadd.f32 %v1681_v9, %v405_v1  ;;  %v444_v6 = vadd.f32 %v1681_v9, %v406_v55  ;;  %v408_v45 = vmul.f32 %v913_v62, %v1666_v58 }
  0xcc   : > { %1022 = vst [vmem:[%s1704_s24 + $0x50] sm:$0xff] %v971_v3   ;;  %v976_v59 = vpack.c.bf16 %v472_v4, %v471_v54  ;;  %v474_v60 = vmax.f32 %v442_v39, 0.0  ;;  %v445_v7 = vadd.f32 %v1681_v9, %v407_v56  ;;  %v409_v61 = vmul.f32 %v916_v63, %v1666_v58 }
  0xcd   : > { %v475_v8 = vmax.f32 %v443_v5, 0.0  ;;  %v476_v10 = vmax.f32 %v444_v6, 0.0  ;;  %v446_v11 = vadd.f32 %v1681_v9, %v408_v45  ;;  %v410_v50 = vmul.f32 %v917_v0, %v1666_v58 }
  0xce   : > { %1023 = vst [vmem:[%s1704_s24 + $0x58] sm:$0xff] %v976_v59   ;;  %v981_v62 = vpack.c.bf16 %v474_v60, %v473_v2  ;;  %v477_v12 = vmax.f32 %v445_v7, 0.0  ;;  %v447_v13 = vadd.f32 %v1681_v9, %v409_v61 }
  0xcf   : > { %v986_v14 = vpack.c.bf16 %v476_v10, %v475_v8  ;;  %v478_v17 = vmax.f32 %v446_v11, 0.0  ;;  %v448_v63 = vadd.f32 %v1681_v9, %v410_v50 }
  0xd0   : > { %1024 = vst [vmem:[%s1704_s24 + $0x60] sm:$0xff] %v981_v62   ;;  %v479_v19 = vmax.f32 %v447_v13, 0.0 }
  0xd1   : > { %1025 = vst [vmem:[%s1704_s24 + $0x68] sm:$0xff] %v986_v14   ;;  %v991_v51 = vpack.c.bf16 %v478_v17, %v477_v12  ;;  %v480_v58 = vmax.f32 %v448_v63, 0.0 }
  0xd3   : > { %1026 = vst [vmem:[%s1704_s24 + $0x70] sm:$0xff] %v991_v51   ;;  %v996_v0 = vpack.c.bf16 %v480_v58, %v479_v19 }
  0xd5   : > { %1027 = vst [vmem:[%s1704_s24 + $0x78] sm:$0xff] %v996_v0  }
  0xd6   : > { %1276 = shalt.err (!%p1273_p13)
}
  0xd7   : > { %s1277_s30 = scalar_lea.hbm %s1799_s12, 2048  ;;  %s1281_s27 = scalar_lea.hbm %s1852_s5, 4096 }
  0xd8   : > { %p1278_p0 = scmp.ne.s32.totalorder %s1799_s12, %s1277_s30  ;;  %p1282_p9 = scmp.lt.u32.totalorder %s1799_s12, %s1852_s5 }
  0xd9   : > { %p1283_p12 = scmp.lt.u32.totalorder %s1281_s27, %s1277_s30  ;;  %p1285_p4 = scmp.lt.u32.totalorder %s1277_s30, %s1799_s12 }
  0xda   : > { %p1279_p5 = pnand %p1278_p0, %p1537_p1 }
  0xdb   : > { %p1284_p2 = por %p1283_p12, %p1282_p9 }
  0xdc   : > { %p1280_p11 = pneg %p1279_p5 }
  0xdd   : > { %p1286_p6 = por %p1285_p4, %p1284_p2 }
  0xdf   : > { %p1287_p8 = pnand %p1286_p6, %p1280_p11 }
  0xe1   : > { %1290 = shalt.err (!%p1287_p8)
}
  0xe2   : > { %s1347_s26 = smov 64   ;;  %s1348_s11 = smov 4  }
  0xe3   : > { %1046 = dma.vmem_to_hbm [thread:$0]  (%p1537_p1), %s1801_s9, 2048, %s1799_s12, %s642_s22, %s1347_s26, %s1347_s26, %s1348_s11  }
  0xe4 PF: > { %s670_s8 = sand.u32 1, %s1325_s18   ;;  %p1870_p3 = scmp.ne.s32.totalorder %s1857_s25, 0 }
  0xe5   : > { %p1871_p7 = scmp.ge.s32.totalorder %s1337_s21, 2  ;;  %s671_s23 = scalar_lea.sflag [#allocation4], %s670_s8 }
  0xe7   : > { %p1066_p10 = pnand %p1871_p7, %p1870_p3 }
  0xe9   : > { %1320 = dma.done.wait (!%p1066_p10), %s671_s23, 2048  }
  0xea   : > { %1322 = vsyncadd (!%p1066_p10), %s671_s23, 4294965248  ;;  %p20_p13 = scmp.ge.s32.totalorder %s1527_s14, 4   ;;  %s1872_s18 = smov %s1329_s19 }
  0xeb   : > { %s1873_s19 = smov %s1333_s20  ;;  %s1874_s20 = smov %s1543_s16 }
  0xec   : > { %s1875_s21 = smov %s1527_s14  ;;  %22 = sbr.rel (!%p20_p13) target bundleno = 7 (0x7), region = 101 }
  0xf3   :  { %676 = vsyncpa [#allocation3], 1 }
  0xf4   :  { %678 = vsyncpa [#allocation3 + $0x1], 1 }
  0xf5   :  { %679 = vsyncpa [#allocation6], 1 }
  0xf6   :  { %680 = vsyncpa [#allocation9], 1 }
  0xf7   :  { %681 = vsyncpa [#allocation4], 1 }
  0xf8   :  { %683 = vsyncpa [#allocation4 + $0x1], 1 }

// kernel: bottleneck_big_ci.8
= control target key start
LH: loop header
LB: loop body
LE: loop exit
PB: predicated region body
PF: predicated region fallthrough
CT: control target
= control target key end

     0   :  { %14 = vsyncpa [#allocation3], 0  ;;  %s2894_s0 = inlined_call_operand.hbm [shape: bf16[512,128], index: 0, kind: input, shape index: {}]   ;;  %s2895_s1 = inlined_call_operand.hbm [shape: f32[1,128], index: 1, kind: input, shape index: {}]   ;;  %s2896_s2 = inlined_call_operand.hbm [shape: f32[1,128], index: 2, kind: input, shape index: {}]   ;;  %s2897_s3 = inlined_call_operand.hbm [shape: f32[1,128], index: 3, kind: input, shape index: {}]   ;;  %s2898_s4 = inlined_call_operand.hbm [shape: f32[1,128], index: 4, kind: input, shape index: {}]   ;;  %s2899_s5 = inlined_call_operand.hbm [shape: bf16[128,128], index: 5, kind: input, shape index: {}]   ;;  %s2900_s6 = inlined_call_operand.hbm [shape: bf16[512,128], index: 6, kind: output, shape index: {0}]   ;;  %s2901_s7 = inlined_call_operand.hbm [shape: f32[1,128], index: 7, kind: output, shape index: {1}]   ;;  %s2902_s8 = inlined_call_operand.hbm [shape: f32[1,128], index: 8, kind: output, shape index: {2}]  }
   0x1   :  { %16 = vsyncpa [#allocation3 + $0x1], 0 }
   0x2   :  { %17 = vsyncpa [#allocation6], 0 }
   0x3   :  { %18 = vsyncpa [#allocation9], 0 }
   0x4   :  { %19 = vsyncpa [#allocation12], 0 }
   0x5   :  { %20 = vsyncpa [#allocation4], 0 }
   0x6   :  { %22 = vsyncpa [#allocation4 + $0x1], 0 }
   0x7   :  { %23 = vsyncpa [#allocation15], 0  ;;  %s2127_s27 = smov 0   ;;  %s2129_s28 = smov 0  }
   0x8   :  { %s2131_s29 = smov 0   ;;  %s2133_s30 = smov 0  }
   0x9 LB: > { %s2068_s9 = smov [#allocation5]   ;;  %s2148_s11 = sadd.s32 4294967295, %s2066_s30   ;;  %s2066_s30 = sphi %s2133_s30, %s2941_s30   ;;  %s2062_s29 = sphi %s2131_s29, %s2940_s29   ;;  %s2058_s28 = sphi %s2129_s28, %s2939_s28   ;;  %s2054_s27 = sphi %s2127_s27, %s2938_s27  }
   0xa   : > { %s246_s10 = sshll.u32 %s2068_s9, 4  ;;  %p1272_p0 = scmp.ge.s32.totalorder %s2066_s30, 1  ;;  %s2154_s10 = int_to_ptr.vmem [resolvable:$true] %s246_s10 }
   0xb   : > { %p2903_p1 = scmp.eq.s32.totalorder %s2148_s11, 0  ;;  %p233_p2 = scmp.lt.s32.totalorder %s2066_s30, 3 }
   0xc   : > { %s2069_s13 = smov [#allocation8]   ;;  %s2070_s15 = smov [#allocation7]  }
   0xd   : > { %p2156_p4 = pnand %p1272_p0, %p233_p2  ;;  %s268_s14 = sshll.u32 %s2069_s13, 4  ;;  %s2163_s14 = int_to_ptr.vmem [resolvable:$true] %s268_s14 }
   0xe   : > { %s257_s16 = sshll.u32 %s2070_s15, 4  ;;  %s2071_s18 = smov [#allocation10]   ;;  %s2171_s16 = int_to_ptr.vmem [resolvable:$true] %s257_s16 }
   0xf   : > { %s2909_s12 = scalar_select %p2156_p4, 1, 0 }
  0x10   : > { %p1668_p6 = pneg %p2156_p4  ;;  %s2173_s19 = sshll.u32 %s2071_s18, 4  ;;  %s280_s19 = int_to_ptr.vmem [resolvable:$true] %s2173_s19 }
  0x11   : > { %s1762_s22 = scalar_lea.hbm %s2895_s1, 16 }
  0x12   : > { %p2167_p7 = pnand %p1668_p6, %p2903_p1  ;;  %p1763_p8 = scmp.ne.s32.totalorder %s2895_s1, %s1762_s22 }
  0x13   : > { %p1769_p12 = scmp.lt.u32.totalorder %s1762_s22, %s2895_s1 }
  0x14   : > { %p2183_p9 = pneg %p2167_p7 }
  0x16   : > { %p1765_p10 = pnand %p2183_p9, %p1763_p8 }
  0x18   : > { %p1766_p11 = pneg %p1765_p10 }
  0x1a   : > { %p1771_p13 = pnand %p1769_p12, %p1766_p11 }
  0x1c   : > { %1774 = shalt.err (!%p1771_p13)
}
  0x1d   : > { %s1775_s13 = scalar_lea.vmem %s2154_s10, 16  ;;  %s1782_s15 = scalar_lea.vmem %s2154_s10, 32 }
  0x1e   : > { %p1776_p0 = scmp.ne.s32.totalorder %s2154_s10, %s1775_s13  ;;  %p1783_p8 = scmp.lt.s32.totalorder %s2154_s10, %s2154_s10 }
  0x1f   : > { %p1784_p10 = scmp.lt.s32.totalorder %s1782_s15, %s1775_s13 }
  0x20   : > { %p1778_p2 = pnand %p1776_p0, %p2183_p9 }
  0x21   : > { %p1785_p5 = por %p1784_p10, %p1783_p8 }
  0x22   : > { %p1779_p6 = pneg %p1778_p2 }
  0x24   : > { %p1786_p3 = pnand %p1785_p5, %p1779_p6 }
  0x26   : > { %1789 = shalt.err (!%p1786_p3)
}
  0x27   : > { %1671 = dma.hbm_to_vmem [thread:$0]  (!%p2167_p7), %s2895_s1, 16, %s2154_s10, [#allocation6]  }
  0x28   : > { %s1790_s23 = scalar_lea.hbm %s2897_s3, 16 }
  0x29   : > { %p1791_p11 = scmp.ne.s32.totalorder %s2897_s3, %s1790_s23  ;;  %p1797_p3 = scmp.lt.u32.totalorder %s1790_s23, %s2897_s3 }
  0x2b   : > { %p1793_p12 = pnand %p1791_p11, %p2183_p9 }
  0x2d   : > { %p1794_p5 = pneg %p1793_p12 }
  0x2f   : > { %p1799_p13 = pnand %p1797_p3, %p1794_p5 }
  0x31   : > { %1802 = shalt.err (!%p1799_p13)
}
  0x32   : > { %s1803_s10 = scalar_lea.vmem %s2163_s14, 16  ;;  %s1810_s15 = scalar_lea.vmem %s2163_s14, 32 }
  0x33   : > { %p1804_p0 = scmp.ne.s32.totalorder %s2163_s14, %s1803_s10  ;;  %p1811_p8 = scmp.lt.s32.totalorder %s2163_s14, %s2163_s14 }
  0x34   : > { %p1812_p10 = scmp.lt.s32.totalorder %s1810_s15, %s1803_s10 }
  0x35   : > { %p1806_p2 = pnand %p1804_p0, %p2183_p9 }
  0x36   : > { %p1813_p11 = por %p1812_p10, %p1811_p8 }
  0x37   : > { %p1807_p6 = pneg %p1806_p2 }
  0x39   : > { %p1814_p12 = pnand %p1813_p11, %p1807_p6 }
  0x3b   : > { %1817 = shalt.err (!%p1814_p12)
}
  0x3c   : > { %1677 = dma.hbm_to_vmem [thread:$0]  (!%p2167_p7), %s2897_s3, 16, %s2163_s14, [#allocation9]  }
  0x3d   : > { %s1818_s23 = scalar_lea.hbm %s2896_s2, 16 }
  0x3e   : > { %p1819_p5 = scmp.ne.s32.totalorder %s2896_s2, %s1818_s23  ;;  %p1825_p0 = scmp.lt.u32.totalorder %s1818_s23, %s2896_s2 }
  0x40   : > { %p1821_p3 = pnand %p1819_p5, %p2183_p9 }
  0x42   : > { %p1822_p13 = pneg %p1821_p3 }
  0x44   : > { %p1827_p2 = pnand %p1825_p0, %p1822_p13 }
  0x46   : > { %1830 = shalt.err (!%p1827_p2)
}
  0x47   : > { %s1831_s14 = scalar_lea.vmem %s2171_s16, 16  ;;  %s1838_s10 = scalar_lea.vmem %s2171_s16, 32 }
  0x48   : > { %p1832_p6 = scmp.ne.s32.totalorder %s2171_s16, %s1831_s14  ;;  %p1839_p11 = scmp.lt.s32.totalorder %s2171_s16, %s2171_s16 }
  0x49   : > { %p1840_p12 = scmp.lt.s32.totalorder %s1838_s10, %s1831_s14 }
  0x4a   : > { %p1834_p8 = pnand %p1832_p6, %p2183_p9 }
  0x4b   : > { %p1841_p5 = por %p1840_p12, %p1839_p11 }
  0x4c   : > { %p1835_p10 = pneg %p1834_p8 }
  0x4e   : > { %p1842_p3 = pnand %p1841_p5, %p1835_p10 }
  0x50   : > { %1845 = shalt.err (!%p1842_p3)
}
  0x51   : > { %1674 = dma.hbm_to_vmem [thread:$0]  (!%p2167_p7), %s2896_s2, 16, %s2171_s16, [#allocation6]  }
  0x52   : > { %s2072_s20 = smov [#allocation11]   ;;  %s1846_s24 = scalar_lea.hbm %s2898_s4, 16 }
  0x53   : > { %s289_s21 = sshll.u32 %s2072_s20, 4  ;;  %p1847_p13 = scmp.ne.s32.totalorder %s2898_s4, %s1846_s24  ;;  %s290_s21 = int_to_ptr.vmem [resolvable:$true] %s289_s21 }
  0x54   : > { %p1853_p6 = scmp.lt.u32.totalorder %s1846_s24, %s2898_s4 }
  0x55   : > { %p1849_p0 = pnand %p1847_p13, %p2183_p9 }
  0x57   : > { %p1850_p2 = pneg %p1849_p0 }
  0x59   : > { %p1855_p8 = pnand %p1853_p6, %p1850_p2 }
  0x5b   : > { %1858 = shalt.err (!%p1855_p8)
}
  0x5c   : > { %s1859_s16 = scalar_lea.vmem %s280_s19, 16  ;;  %s1866_s10 = scalar_lea.vmem %s280_s19, 32 }
  0x5d   : > { %p1860_p10 = scmp.ne.s32.totalorder %s280_s19, %s1859_s16  ;;  %p1867_p5 = scmp.lt.s32.totalorder %s280_s19, %s280_s19 }
  0x5e   : > { %p1868_p3 = scmp.lt.s32.totalorder %s1866_s10, %s1859_s16 }
  0x5f   : > { %p1862_p11 = pnand %p1860_p10, %p2183_p9 }
  0x60   : > { %p1869_p1 = por %p1868_p3, %p1867_p5 }
  0x61   : > { %p1863_p12 = pneg %p1862_p11 }
  0x63   : > { %p1870_p4 = pnand %p1869_p1, %p1863_p12 }
  0x65   : > { %1873 = shalt.err (!%p1870_p4)
}
  0x66   : > { %1680 = dma.hbm_to_vmem [thread:$0]  (!%p2167_p7), %s2898_s4, 16, %s280_s19, [#allocation9]  }
  0x67   : > { %s1874_s23 = scalar_lea.hbm %s2899_s5, 1024 }
  0x68   : > { %p1875_p13 = scmp.ne.s32.totalorder %s2899_s5, %s1874_s23  ;;  %p1881_p4 = scmp.lt.u32.totalorder %s1874_s23, %s2899_s5 }
  0x6a   : > { %p1877_p0 = pnand %p1875_p13, %p2183_p9 }
  0x6c   : > { %p1878_p1 = pneg %p1877_p0 }
  0x6e   : > { %p1883_p2 = pnand %p1881_p4, %p1878_p1 }
  0x70   : > { %1886 = shalt.err (!%p1883_p2)
}
  0x71   : > { %s1887_s14 = scalar_lea.vmem %s290_s21, 1024  ;;  %p1895_p11 = scmp.lt.s32.totalorder %s290_s21, %s290_s21 }
  0x72   : > { %p1888_p6 = scmp.ne.s32.totalorder %s290_s21, %s1887_s14  ;;  %p1896_p12 = scmp.lt.s32.totalorder %s1887_s14, %s1887_s14 }
  0x74   : > { %p1890_p8 = pnand %p1888_p6, %p2183_p9  ;;  %p1897_p5 = por %p1896_p12, %p1895_p11 }
  0x76   : > { %p1891_p10 = pneg %p1890_p8 }
  0x78   : > { %p1898_p3 = pnand %p1897_p5, %p1891_p10 }
  0x7a   : > { %1901 = shalt.err (!%p1898_p3)
}
  0x7b   : > { %s2905_s19 = smov 64   ;;  %s2906_s25 = smov 4  }
  0x7c   : > { %1683 = dma.hbm_to_vmem [thread:$0]  (!%p2167_p7), %s2899_s5, 1024, %s290_s21, [#allocation12], %s2905_s19, %s2905_s19, %s2906_s25  }
  0x7d   : > { %s1271_s15 = sadd.s32 4294967294, %s2066_s30   ;;  %s2295_s18 = sadd.s32 1, %s2066_s30  }
  0x7e   : > { %s36_s20 = sadd.s32 1, %s2062_s29  ;;  %s33_s22 = ssub.s32 %s2066_s30, %s2295_s18 }
  0x7f   : > { %p43_p9 = scmp.ne.s32.totalorder %s2062_s29, %s2058_s28  ;;  %p34_p13 = scmp.eq.s32.totalorder %s33_s22, 0 }
  0x80   : > { %p44_p0 = scmp.eq.s32.totalorder %s2066_s30, 0  ;;  %p49_p1 = scmp.ne.s32.totalorder %s2058_s28, %s2054_s27 }
  0x81   : > { %p2907_p4 = scmp.eq.s32.totalorder %s2148_s11, 1  ;;  %p2912_p6 = scmp.eq.s32.totalorder %s2148_s11, 0 }
  0x82   : > { %s2307_s17 = scalar_select %p34_p13, %s2062_s29, %s36_s20  }
  0x83   : > { %p45_p2 = por %p44_p0, %p43_p9  ;;  %p2311_p8 = por %p2912_p6, %p49_p1 }
  0x84   : > { %p2317_p7 = por %p2907_p4, %p43_p9  ;;  %p184_p10 = scmp.eq.s32.totalorder %s1271_s15, 1 }
  0x85   : > { %p1697_p11 = scmp.lt.s32.totalorder %s2066_s30, 2  ;;  %s303_s24 = sand.u32 1, %s2062_s29  }
  0x86   : > { %s2914_s21 = scalar_select %p2317_p7, 1, 0 }
  0x87   : > { %p2323_p12 = por %p184_p10, %p49_p1  ;;  %s1279_s9 = sshll.u32 %s303_s24, 7 }
  0x88   : > { %s1340_s13 = sshll.u32 %s2066_s30, 11  ;;  %s307_s20 = scalar_lea.vmem [#allocation2], %s1279_s9 }
  0x89   : > { %s2915_s26 = scalar_select %p2323_p12, 1, 0 }
  0x8a   : > { %s2331_s10 = scalar_lea.hbm %s2894_s0, %s1340_s13  ;;  %s314_s22 = sshll.u32 %s307_s20, 4  ;;  %s2337_s22 = int_to_ptr.vmem [resolvable:$true] %s314_s22 }
  0x8b   : > { %p2333_p5 = pnand %p1697_p11, %p45_p2  ;;  %s2339_s19 = scalar_lea.sflag [#allocation3], %s303_s24 }
  0x8c   : > { %s1902_s25 = scalar_lea.hbm %s2331_s10, 2048  ;;  %s1907_s14 = scalar_lea.hbm %s2894_s0, 4096 }
  0x8d   : > { %p1903_p3 = scmp.ne.s32.totalorder %s2331_s10, %s1902_s25  ;;  %p1904_p9 = pneg %p2333_p5 }
  0x8e   : > { %p1908_p1 = scmp.lt.u32.totalorder %s2331_s10, %s2894_s0  ;;  %p1909_p2 = scmp.lt.u32.totalorder %s1907_s14, %s1902_s25 }
  0x8f   : > { %p1905_p13 = pnand %p1904_p9, %p1903_p3  ;;  %p1911_p10 = scmp.lt.u32.totalorder %s1902_s25, %s2331_s10 }
  0x90   : > { %p1910_p6 = por %p1909_p2, %p1908_p1 }
  0x91   : > { %p1906_p0 = pneg %p1905_p13 }
  0x92   : > { %p1912_p11 = por %p1911_p10, %p1910_p6 }
  0x94   : > { %p1913_p4 = pnand %p1912_p11, %p1906_p0 }
  0x96   : > { %1916 = shalt.err (!%p1913_p4)
}
  0x97   : > { %s1917_s24 = scalar_lea.vmem %s2337_s22, 2048  ;;  %s2075_s9 = smov [#allocation2]  }
  0x98   : > { %p1918_p3 = scmp.ne.s32.totalorder %s2337_s22, %s1917_s24  ;;  %s1922_s13 = sshll.u32 %s2075_s9, 4  ;;  %s1923_s13 = int_to_ptr.vmem [resolvable:$false] %s1922_s13 }
  0x99   : > { %s1924_s16 = scalar_lea.vmem %s1923_s13, 4096  ;;  %p1925_p7 = scmp.lt.s32.totalorder %s2337_s22, %s1923_s13 }
  0x9a   : > { %p1920_p13 = pnand %p1918_p3, %p1904_p9  ;;  %p1926_p1 = scmp.lt.s32.totalorder %s1924_s16, %s1917_s24 }
  0x9c   : > { %p1921_p12 = pneg %p1920_p13  ;;  %p1927_p2 = por %p1926_p1, %p1925_p7 }
  0x9e   : > { %p1928_p6 = pnand %p1927_p2, %p1921_p12 }
  0xa0   : > { %1931 = shalt.err (!%p1928_p6)
}
  0xa1   : > { %s2917_s25 = smov 4   ;;  %s2918_s14 = smov 64  }
  0xa2   : > { %1687 = dma.hbm_to_vmem [thread:$0]  (!%p2333_p5), %s2331_s10, 2048, %s2337_s22, %s2339_s19, %s2918_s14, %s2918_s14, %s2917_s25  }
  0xa3   : > { %p2919_p4 = scmp.ne.s32.totalorder %s2909_s12, 0 }
  0xa4   : > { %s2373_s20 = sand.u32 (!%p2919_p4), 1, %s2058_s28  }
  0xa5   : > { %326 = sbr.rel (%p2919_p4) target bundleno = 598 (0x256), region = 44  ;;  %s1283_s24 = sshll.u32 (!%p2919_p4), %s2373_s20, 7 }
  0xa6   : > { %s329_s9 = scalar_lea.sflag (!%p2919_p4), [#allocation3], %s2373_s20  ;;  %s2379_s15 = scalar_lea.vmem (!%p2919_p4), [#allocation2], %s1283_s24 }
  0xac   : > { %2029 = dma.done.wait (%p2311_p8), %s329_s9, 2048  }
  0xad   : > { %2031 = vsyncadd (%p2311_p8), %s329_s9, 4294965248  ;;  %p2920_p7 = scmp.eq.s32.totalorder %s2148_s11, 0 }
  0xaf   : > { %2033 = dma.done.wait (%p2920_p7), [#allocation6], 32   ;;  %p2921_p12 = pmov %p2920_p7 }
  0xb0   : > { %p2922_p5 = pmov %p2920_p7 }
  0xb1   : > { %2035 = vsyncadd (%p2921_p12), [#allocation6], 4294967264 }
  0xb2   : > { %2037 = dma.done.wait (%p2922_p5), [#allocation9], 32   ;;  %p2923_p9 = pmov %p2922_p5 }
  0xb3   : > { %p2924_p0 = pmov %p2922_p5 }
  0xb4   : > { %2039 = vsyncadd (%p2923_p9), [#allocation9], 4294967264 }
  0xb5   : > { %2041 = dma.done.wait (%p2924_p0), [#allocation12], 1024   ;;  %p2925_p10 = pmov %p2924_p0 }
  0xb6   : > { %v1752_v0 = vld [vmem:[#allocation11] sm:$0xff]   ;;  %v1753_v1 = vld [vmem:[#allocation11 + $0x8] sm:$0xff]   ;;  %v1754_v2 = vld [vmem:[#allocation11 + $0x10] sm:$0xff]   ;;  %v467_v14 = vlaneseq  ;;  %s2615_s12 = scalar_lea.vmem [#allocation13], %s1283_s24  ;;  %p2926_p8 = scmp.ne.s32.totalorder %s2148_s11, 0 }
  0xb7   : > { %2043 = vsyncadd (%p2925_p10), [#allocation12], 4294966272  ;;  %1572 = vmatprep.subr.bf16.mxu0 %v1752_v0  ;;  %1620 = vmatprep.subr.bf16.mxu1 %v1752_v0  ;;  %v1755_v3 = vld [vmem:[#allocation11 + $0x18] sm:$0xff]   ;;  %v1756_v9 = vld [vmem:[#allocation11 + $0x20] sm:$0xff]  }
  0xb8   : > { %1573 = vmatpush3.bf16.msra.mxu0 %v1752_v0  ;;  %1628 = vmatpush3.bf16.msra.mxu1 %v1752_v0  ;;  %v388_v4 = vld [vmem:[#allocation5] sm:$0x1]  ;;  %v390_v5 = vld [vmem:[#allocation7] sm:$0x1]  ;;  %v1757_v12 = vld [vmem:[#allocation11 + $0x28] sm:$0xff]   ;;  %v2401_v16 = vshrl.u32 %v467_v14, 7 }
  0xb9   : > { %1574 = vmatprep.subr.bf16.mxu0 %v1753_v1  ;;  %1621 = vmatprep.subr.bf16.mxu1 %v1753_v1  ;;  %v2397_v6 = vmul.f32 0.001953125, %v388_v4  ;;  %v391_v7 = vmul.f32 0.001953125, %v390_v5  ;;  %v1758_v15 = vld [vmem:[#allocation11 + $0x30] sm:$0xff]   ;;  %v2404_v17 = vld [vmem:[%s2379_s15] sm:$0xff]   ;;  %v2410_v19 = vld [vmem:[%s2379_s15 + $0x8] sm:$0xff]  }
  0xba   : > { %v2407_v18 = vld [vmem:[%s2379_s15 + $0x40] sm:$0xff]   ;;  %v2413_v20 = vld [vmem:[%s2379_s15 + $0x48] sm:$0xff]   ;;  %v2416_v22 = vld [vmem:[%s2379_s15 + $0x10] sm:$0xff]   ;;  %v1376_v24 = vunpack.c.l.bf16 %v2404_v17  ;;  %v1377_v25 = vunpack.c.h.bf16 %v2404_v17  ;;  %v469_v26 = vsub.s32 0, %v2401_v16  ;;  %v1380_v31 = vunpack.c.l.bf16 %v2410_v19 }
  0xbb   : > { %v392_v8 = vmul.f32 %v2397_v6, %v2397_v6  ;;  %v1759_v21 = vld [vmem:[#allocation11 + $0x38] sm:$0xff]   ;;  %v2419_v23 = vld [vmem:[%s2379_s15 + $0x50] sm:$0xff]   ;;  %v1408_v27 = vunpack.c.l.bf16 %v2407_v18  ;;  %v2426_v28 = vld [vmem:[%s2379_s15 + $0x18] sm:$0xff]   ;;  %v1409_v30 = vunpack.c.h.bf16 %v2407_v18  ;;  %v1381_v32 = vunpack.c.h.bf16 %v2410_v19 }
  0xbc   : > { %1575 = vmatpush3.bf16.msra.mxu0 %v1753_v1  ;;  %1629 = vmatpush3.bf16.msra.mxu1 %v1753_v1  ;;  %v2429_v29 = vld [vmem:[%s2379_s15 + $0x58] sm:$0xff]   ;;  %v1412_v33 = vunpack.c.l.bf16 %v2413_v20  ;;  %v2436_v34 = vld [vmem:[%s2379_s15 + $0x20] sm:$0xff]   ;;  %v1413_v37 = vunpack.c.h.bf16 %v2413_v20  ;;  %v1384_v38 = vunpack.c.l.bf16 %v2416_v22  ;;  %v1385_v39 = vunpack.c.h.bf16 %v2416_v22  ;;  %v2446_v41 = vld [vmem:[%s2379_s15 + $0x28] sm:$0xff]  }
  0xbd   : > { %1576 = vmatprep.subr.bf16.mxu0 %v1754_v2  ;;  %1622 = vmatprep.subr.bf16.mxu1 %v1754_v2  ;;  %v393_v10 = vsub.f32 %v391_v7, %v392_v8  ;;  %v2439_v35 = vld [vmem:[%s2379_s15 + $0x60] sm:$0xff]   ;;  %v1416_v40 = vunpack.c.l.bf16 %v2419_v23  ;;  %v1417_v42 = vunpack.c.h.bf16 %v2419_v23  ;;  %v1388_v43 = vunpack.c.l.bf16 %v2426_v28  ;;  %v2453_v46 = vld [vmem:[%s2379_s15 + $0x68] sm:$0xff]   ;;  %v2456_v47 = vld [vmem:[%s2379_s15 + $0x30] sm:$0xff]  }
  0xbe   : > { %v395_v36 = vld [vmem:[#allocation8] sm:$0x1]  ;;  %v1389_v44 = vunpack.c.h.bf16 %v2426_v28  ;;  %v1420_v45 = vunpack.c.l.bf16 %v2429_v29  ;;  %v1421_v49 = vunpack.c.h.bf16 %v2429_v29  ;;  %v1392_v50 = vunpack.c.l.bf16 %v2436_v34  ;;  %v2463_v53 = vld [vmem:[%s2379_s15 + $0x70] sm:$0xff]   ;;  %v2469_v58 = vld [vmem:[%s2379_s15 + $0x38] sm:$0xff]  }
  0xbf   : > { %v394_v11 = vmax.f32 %v393_v10, 0.0  ;;  %v1393_v51 = vunpack.c.h.bf16 %v2436_v34  ;;  %v1424_v52 = vunpack.c.l.bf16 %v2439_v35  ;;  %v1425_v55 = vunpack.c.h.bf16 %v2439_v35  ;;  %v2472_v59 = vld [vmem:[%s2379_s15 + $0x78] sm:$0xff]   ;;  %v399_v60 = vld [vmem:[#allocation10] sm:$0x1] }
  0xc0   : > { %1577 = vmatpush3.bf16.msra.mxu0 %v1754_v2  ;;  %1630 = vmatpush3.bf16.msra.mxu1 %v1754_v2  ;;  %v1396_v56 = vunpack.c.l.bf16 %v2446_v41  ;;  %v1397_v57 = vunpack.c.h.bf16 %v2446_v41  ;;  %v1428_v61 = vunpack.c.l.bf16 %v2453_v46  ;;  %v1429_v62 = vunpack.c.h.bf16 %v2453_v46 }
  0xc1   : > { %1578 = vmatprep.subr.bf16.mxu0 %v1755_v3  ;;  %1623 = vmatprep.subr.bf16.mxu1 %v1755_v3  ;;  %v396_v13 = vadd.f32 1e-05, %v394_v11  ;;  %v1400_v63 = vunpack.c.l.bf16 %v2456_v47  ;;  %v1401_v0 = vunpack.c.h.bf16 %v2456_v47  ;;  %v1433_v4 = vunpack.c.h.bf16 %v2463_v53 }
  0xc2   : > { %v1404_v5 = vunpack.c.l.bf16 %v2469_v58  ;;  %v1405_v7 = vunpack.c.h.bf16 %v2469_v58  ;;  %v1436_v8 = vunpack.c.l.bf16 %v2472_v59 }
  0xc3   : > { %1760 = vrsqrt.f32 %v396_v13 }
  0xc4   : > { %1579 = vmatpush3.bf16.msra.mxu0 %v1755_v3  ;;  %1631 = vmatpush3.bf16.msra.mxu1 %v1755_v3  ;;  %v1432_v3 = vunpack.c.l.bf16 %v2463_v53 }
  0xc5   : > { %1580 = vmatprep.subr.bf16.mxu0 %v1756_v9  ;;  %1624 = vmatprep.subr.bf16.mxu1 %v1756_v9 }
  0xc8   : > { %1581 = vmatpush3.bf16.msra.mxu0 %v1756_v9  ;;  %1632 = vmatpush3.bf16.msra.mxu1 %v1756_v9  ;;  %v1437_v9 = vunpack.c.h.bf16 %v2472_v59 }
  0xc9   : > { %1582 = vmatprep.subr.bf16.mxu0 %v1757_v12  ;;  %1625 = vmatprep.subr.bf16.mxu1 %v1757_v12 }
  0xcc   : > { %1583 = vmatpush3.bf16.msra.mxu0 %v1757_v12  ;;  %1633 = vmatpush3.bf16.msra.mxu1 %v1757_v12 }
  0xcd   : > { %1584 = vmatprep.subr.bf16.mxu0 %v1758_v15  ;;  %1626 = vmatprep.subr.bf16.mxu1 %v1758_v15  ;;  %v1761_v48 = vpop.eup %1760 }
  0xce   : > { %v398_v54 = vmul.f32 %v1761_v48, %v395_v36 }
  0xd0   : > { %1585 = vmatpush3.bf16.msra.mxu0 %v1758_v15  ;;  %1634 = vmatpush3.bf16.msra.mxu1 %v1758_v15  ;;  %v400_v1 = vmul.f32 %v398_v54, %v2397_v6  ;;  %v2479_v2 = vrot.slane %v398_v54, %v469_v26 }
  0xd1   : > { %1586 = vmatprep.subr.bf16.mxu0 %v1759_v21  ;;  %1627 = vmatprep.subr.bf16.mxu1 %v1759_v21 }
  0xd2   : > { %v401_v10 = vsub.f32 %v399_v60, %v400_v1  ;;  %v472_v11 = vmul.f32 %v1376_v24, %v2479_v2  ;;  %v473_v12 = vmul.f32 %v1377_v25, %v2479_v2  ;;  %v488_v6 = vmul.f32 %v1408_v27, %v2479_v2 }
  0xd3   : > { %v489_v13 = vmul.f32 %v1409_v30, %v2479_v2  ;;  %v474_v14 = vmul.f32 %v1380_v31, %v2479_v2  ;;  %v475_v15 = vmul.f32 %v1381_v32, %v2479_v2  ;;  %v490_v16 = vmul.f32 %v1412_v33, %v2479_v2 }
  0xd4   : > { %1587 = vmatpush3.bf16.msra.mxu0 %v1759_v21  ;;  %1635 = vmatpush3.bf16.msra.mxu1 %v1759_v21  ;;  %v2494_v17 = vrot.slane %v401_v10, %v469_v26  ;;  %v491_v18 = vmul.f32 %v1413_v37, %v2479_v2  ;;  %v476_v19 = vmul.f32 %v1384_v38, %v2479_v2 }
  0xd5   : > { %v477_v20 = vmul.f32 %v1385_v39, %v2479_v2  ;;  %v492_v21 = vmul.f32 %v1416_v40, %v2479_v2  ;;  %v493_v22 = vmul.f32 %v1417_v42, %v2479_v2  ;;  %v478_v23 = vmul.f32 %v1388_v43, %v2479_v2 }
  0xd6   : > { %v479_v24 = vmul.f32 %v1389_v44, %v2479_v2  ;;  %v510_v25 = vadd.f32 %v2494_v17, %v472_v11  ;;  %v511_v27 = vadd.f32 %v2494_v17, %v473_v12  ;;  %v526_v26 = vadd.f32 %v2494_v17, %v488_v6 }
  0xd7   : > { %v527_v28 = vadd.f32 %v2494_v17, %v489_v13  ;;  %v512_v30 = vadd.f32 %v2494_v17, %v474_v14  ;;  %v513_v31 = vadd.f32 %v2494_v17, %v475_v15  ;;  %v528_v32 = vadd.f32 %v2494_v17, %v490_v16 }
  0xd8   : > { %v529_v33 = vadd.f32 %v2494_v17, %v491_v18  ;;  %v542_v36 = vmax.f32 %v510_v25, 0.0  ;;  %v543_v37 = vmax.f32 %v511_v27, 0.0  ;;  %v558_v38 = vmax.f32 %v526_v26, 0.0 }
  0xd9   : > { %v559_v39 = vmax.f32 %v527_v28, 0.0  ;;  %v544_v40 = vmax.f32 %v512_v30, 0.0  ;;  %v545_v42 = vmax.f32 %v513_v31, 0.0  ;;  %v560_v43 = vmax.f32 %v528_v32, 0.0 }
  0xda   : > { %v561_v44 = vmax.f32 %v529_v33, 0.0  ;;  %v574_v48 = vpack.c.bf16 %v543_v37, %v542_v36  ;;  %v514_v60 = vadd.f32 %v2494_v17, %v476_v19  ;;  %v515_v1 = vadd.f32 %v2494_v17, %v477_v20 }
  0xdb   : > { %v582_v54 = vpack.c.bf16 %v559_v39, %v558_v38  ;;  %v575_v10 = vpack.c.bf16 %v545_v42, %v544_v40  ;;  %v530_v12 = vadd.f32 %v2494_v17, %v492_v21  ;;  %v531_v6 = vadd.f32 %v2494_v17, %v493_v22 }
  0xdc   : > { %v583_v11 = vpack.c.bf16 %v561_v44, %v560_v43  ;;  %1588 = vmatprep.mubr.bf16.mxu0 %v574_v48  ;;  %v546_v13 = vmax.f32 %v514_v60, 0.0  ;;  %v547_v14 = vmax.f32 %v515_v1, 0.0  ;;  %v516_v15 = vadd.f32 %v2494_v17, %v478_v23 }
  0xdd   : > { %1604 = vmatprep.mubr.bf16.mxu1 %v582_v54  ;;  %v517_v16 = vadd.f32 %v2494_v17, %v479_v24  ;;  %1589 = vmatmul.mubr.bf16.vlgmr.msra.gmra.mrb[0].mxu0 %v575_v10  ;;  %v562_v18 = vmax.f32 %v530_v12, 0.0  ;;  %v563_v19 = vmax.f32 %v531_v6, 0.0  ;;  %v494_v20 = vmul.f32 %v1420_v45, %v2479_v2 }
  0xde   : > { %1605 = vmatmul.mubr.bf16.vlgmr.msra.gmra.mrb[0].mxu1 %v583_v11  ;;  %v495_v21 = vmul.f32 %v1421_v49, %v2479_v2  ;;  %v576_v22 = vpack.c.bf16 %v547_v14, %v546_v13  ;;  %v548_v25 = vmax.f32 %v516_v15, 0.0  ;;  %v480_v23 = vmul.f32 %v1392_v50, %v2479_v2 }
  0xdf   : > { %v549_v27 = vmax.f32 %v517_v16, 0.0  ;;  %v584_v24 = vpack.c.bf16 %v563_v19, %v562_v18  ;;  %v532_v26 = vadd.f32 %v2494_v17, %v494_v20  ;;  %v481_v45 = vmul.f32 %v1393_v51, %v2479_v2 }
  0xe0   : > { %v533_v28 = vadd.f32 %v2494_v17, %v495_v21  ;;  %1592 = vmatprep.mubr.bf16.mxu0 %v576_v22  ;;  %v518_v29 = vadd.f32 %v2494_v17, %v480_v23  ;;  %v496_v49 = vmul.f32 %v1424_v52, %v2479_v2  ;;  %v497_v50 = vmul.f32 %v1425_v55, %v2479_v2 }
  0xe1   : > { %v577_v30 = vpack.c.bf16 %v549_v27, %v548_v25  ;;  %1608 = vmatprep.mubr.bf16.mxu1 %v584_v24  ;;  %v564_v31 = vmax.f32 %v532_v26, 0.0  ;;  %v519_v33 = vadd.f32 %v2494_v17, %v481_v45  ;;  %v482_v34 = vmul.f32 %v1396_v56, %v2479_v2 }
  0xe2   : > { %v565_v32 = vmax.f32 %v533_v28, 0.0  ;;  %v550_v51 = vmax.f32 %v518_v29, 0.0  ;;  %v534_v36 = vadd.f32 %v2494_v17, %v496_v49  ;;  %v535_v37 = vadd.f32 %v2494_v17, %v497_v50 }
  0xe3   : > { %v483_v52 = vmul.f32 %v1397_v57, %v2479_v2  ;;  %v551_v55 = vmax.f32 %v519_v33, 0.0  ;;  %v520_v38 = vadd.f32 %v2494_v17, %v482_v34  ;;  %v498_v39 = vmul.f32 %v1428_v61, %v2479_v2 }
  0xe4   : > { %v585_v35 = vpack.c.bf16 %v565_v32, %v564_v31  ;;  %v566_v40 = vmax.f32 %v534_v36, 0.0  ;;  %v567_v42 = vmax.f32 %v535_v37, 0.0  ;;  %v499_v43 = vmul.f32 %v1429_v62, %v2479_v2 }
  0xe5   : > { %v521_v56 = vadd.f32 %v2494_v17, %v483_v52  ;;  %1593 = vmatmul.mubr.bf16.gmra.mrb[4].mxu0 %v577_v30  ;;  %v578_v41 = vpack.c.bf16 %v551_v55, %v550_v51  ;;  %v552_v57 = vmax.f32 %v520_v38, 0.0  ;;  %v536_v44 = vadd.f32 %v2494_v17, %v498_v39 }
  0xe6   : > { %1609 = vmatmul.mubr.bf16.gmra.mrb[4].mxu1 %v585_v35  ;;  %v484_v48 = vmul.f32 %v1400_v63, %v2479_v2  ;;  %v586_v54 = vpack.c.bf16 %v567_v42, %v566_v40  ;;  %v537_v60 = vadd.f32 %v2494_v17, %v499_v43  ;;  %v485_v1 = vmul.f32 %v1401_v0, %v2479_v2 }
  0xe7   : > { %v553_v61 = vmax.f32 %v521_v56, 0.0  ;;  %1596 = vmatprep.mubr.bf16.mxu0 %v578_v41  ;;  %v568_v46 = vmax.f32 %v536_v44, 0.0  ;;  %v500_v10 = vmul.f32 %v1432_v3, %v2479_v2  ;;  %v501_v63 = vmul.f32 %v1433_v4, %v2479_v2 }
  0xe8   : > { %v522_v62 = vadd.f32 %v2494_v17, %v484_v48  ;;  %1612 = vmatprep.mubr.bf16.mxu1 %v586_v54  ;;  %v569_v12 = vmax.f32 %v537_v60, 0.0  ;;  %v523_v6 = vadd.f32 %v2494_v17, %v485_v1  ;;  %v486_v47 = vmul.f32 %v1404_v5, %v2479_v2 }
  0xe9   : > { %v579_v11 = vpack.c.bf16 %v553_v61, %v552_v57  ;;  %v538_v13 = vadd.f32 %v2494_v17, %v500_v10  ;;  %v539_v14 = vadd.f32 %v2494_v17, %v501_v63  ;;  %v487_v3 = vmul.f32 %v1405_v7, %v2479_v2 }
  0xea   : > { %v554_v0 = vmax.f32 %v522_v62, 0.0  ;;  %v587_v53 = vpack.c.bf16 %v569_v12, %v568_v46  ;;  %v555_v4 = vmax.f32 %v523_v6, 0.0  ;;  %v524_v15 = vadd.f32 %v2494_v17, %v486_v47 }
  0xeb   : > { %v502_v16 = vmul.f32 %v1436_v8, %v2479_v2  ;;  %v570_v18 = vmax.f32 %v538_v13, 0.0  ;;  %v571_v19 = vmax.f32 %v539_v14, 0.0  ;;  %v525_v5 = vadd.f32 %v2494_v17, %v487_v3 }
  0xec   : > { %v503_v20 = vmul.f32 %v1437_v9, %v2479_v2  ;;  %v580_v21 = vpack.c.bf16 %v555_v4, %v554_v0  ;;  %v556_v22 = vmax.f32 %v524_v15, 0.0  ;;  %v2076_v15 = vmov (!%p2926_p8), 0.0  }
  0xed   : > { %v540_v58 = vadd.f32 %v2494_v17, %v502_v16  ;;  %1597 = vmatmul.mubr.bf16.gmra.mrb[8].mxu0 %v579_v11  ;;  %v588_v7 = vpack.c.bf16 %v571_v19, %v570_v18  ;;  %v557_v25 = vmax.f32 %v525_v5, 0.0  ;;  %979 = vst [vmem:[#allocation14] sm:$0x1] (!%p2926_p8), %v2076_v15  ;;  %980 = vst [vmem:[#allocation16] sm:$0x1] (!%p2926_p8), %v2076_v15 }
  0xee   : > { %1613 = vmatmul.mubr.bf16.gmra.mrb[8].mxu1 %v587_v53  ;;  %v541_v27 = vadd.f32 %v2494_v17, %v503_v20  ;;  %1600 = vmatprep.mubr.bf16.mxu0 %v580_v21 }
  0xef   : > { %v572_v8 = vmax.f32 %v540_v58, 0.0  ;;  %1616 = vmatprep.mubr.bf16.mxu1 %v588_v7  ;;  %v581_v24 = vpack.c.bf16 %v557_v25, %v556_v22 }
  0xf0   : > { %v573_v23 = vmax.f32 %v541_v27, 0.0 }
  0xf2   : > { %v589_v26 = vpack.c.bf16 %v573_v23, %v572_v8 }
  0xf5   : > { %1601 = vmatmul.mubr.bf16.gmra.mrb[12].mxu0 %v581_v24 }
  0xf6   : > { %1617 = vmatmul.mubr.bf16.gmra.mrb[12].mxu1 %v589_v26 }
 0x1b0   : > { %v2589_v59 = vpop.f32.mrb[0].mxu0 }
 0x1b1   : > { %v2591_v2 = vpop.f32.mrb[0].mxu1  ;;  %v2593_v9 = vpop.f32.mrb[1].mxu0 }
 0x1b2   : > { %v2595_v28 = vpop.f32.mrb[1].mxu1  ;;  %v2597_v45 = vpop.f32.mrb[2].mxu0 }
 0x1b3   : > { %v2599_v17 = vpop.f32.mrb[2].mxu1  ;;  %v1446_v30 = vpack.c.bf16 %v2597_v45, %v2589_v59  ;;  %v2605_v49 = vpop.f32.mrb[3].mxu0 }
 0x1b4   : > { %v1486_v29 = vpack.c.bf16 %v2599_v17, %v2591_v2  ;;  %v2607_v50 = vpop.f32.mrb[3].mxu1  ;;  %v1441_v31 = vpack.c.bf16 %v2605_v49, %v2593_v9 }
 0x1b5   : > { %v1481_v32 = vpack.c.bf16 %v2607_v50, %v2595_v28  ;;  %1533 = vst [vmem:[%s2615_s12 + $0x8] sm:$0xff] %v1446_v30  }
 0x1b6   : > { %1541 = vst [vmem:[%s2615_s12 + $0x48] sm:$0xff] %v1486_v29   ;;  %1442 = vst [vmem:[%s2615_s12] sm:$0xff] %v1441_v31  }
 0x1b7   : > { %1540 = vst [vmem:[%s2615_s12 + $0x40] sm:$0xff] %v1481_v32  }
 0x1b8   : > { %v2621_v33 = vpop.f32.mrb[4].mxu0 }
 0x1b9   : > { %v2623_v34 = vpop.f32.mrb[4].mxu1  ;;  %v2625_v51 = vpop.f32.mrb[5].mxu0 }
 0x1ba   : > { %v2627_v36 = vpop.f32.mrb[5].mxu1  ;;  %v2629_v37 = vpop.f32.mrb[6].mxu0 }
 0x1bb   : > { %v2631_v52 = vpop.f32.mrb[6].mxu1  ;;  %v1456_v35 = vpack.c.bf16 %v2629_v37, %v2621_v33  ;;  %v2637_v38 = vpop.f32.mrb[7].mxu0 }
 0x1bc   : > { %v1496_v55 = vpack.c.bf16 %v2631_v52, %v2623_v34  ;;  %v2639_v39 = vpop.f32.mrb[7].mxu1  ;;  %v1451_v40 = vpack.c.bf16 %v2637_v38, %v2625_v51 }
 0x1bd   : > { %v1491_v42 = vpack.c.bf16 %v2639_v39, %v2627_v36  ;;  %1535 = vst [vmem:[%s2615_s12 + $0x18] sm:$0xff] %v1456_v35  }
 0x1be   : > { %1543 = vst [vmem:[%s2615_s12 + $0x58] sm:$0xff] %v1496_v55   ;;  %1534 = vst [vmem:[%s2615_s12 + $0x10] sm:$0xff] %v1451_v40  }
 0x1bf   : > { %1542 = vst [vmem:[%s2615_s12 + $0x50] sm:$0xff] %v1491_v42  }
 0x1c0   : > { %v2649_v56 = vpop.f32.mrb[8].mxu0 }
 0x1c1   : > { %v2651_v43 = vpop.f32.mrb[8].mxu1  ;;  %v2653_v41 = vpop.f32.mrb[9].mxu0 }
 0x1c2   : > { %v2655_v57 = vpop.f32.mrb[9].mxu1  ;;  %v2657_v44 = vpop.f32.mrb[10].mxu0 }
 0x1c3   : > { %v2659_v48 = vpop.f32.mrb[10].mxu1  ;;  %v1466_v54 = vpack.c.bf16 %v2657_v44, %v2649_v56  ;;  %v2665_v60 = vpop.f32.mrb[11].mxu0 }
 0x1c4   : > { %v1506_v61 = vpack.c.bf16 %v2659_v48, %v2651_v43  ;;  %v2667_v1 = vpop.f32.mrb[11].mxu1  ;;  %v1461_v46 = vpack.c.bf16 %v2665_v60, %v2653_v41 }
 0x1c5   : > { %v1501_v62 = vpack.c.bf16 %v2667_v1, %v2655_v57  ;;  %1537 = vst [vmem:[%s2615_s12 + $0x28] sm:$0xff] %v1466_v54  }
 0x1c6   : > { %1545 = vst [vmem:[%s2615_s12 + $0x68] sm:$0xff] %v1506_v61   ;;  %1536 = vst [vmem:[%s2615_s12 + $0x20] sm:$0xff] %v1461_v46  }
 0x1c7   : > { %1544 = vst [vmem:[%s2615_s12 + $0x60] sm:$0xff] %v1501_v62  }
 0x1c8   : > { %v2677_v10 = vpop.f32.mrb[12].mxu0 }
 0x1c9   : > { %v2679_v63 = vpop.f32.mrb[12].mxu1  ;;  %v2681_v11 = vpop.f32.mrb[13].mxu0  ;;  %978 = sbr.rel (%p2926_p8) target bundleno = 464 (0x1d0), region = 72 }
 0x1ca   : > { %v2683_v12 = vpop.f32.mrb[13].mxu1  ;;  %v2685_v6 = vpop.f32.mrb[14].mxu0 }
 0x1cb   : > { %v2687_v47 = vpop.f32.mrb[14].mxu1  ;;  %v1476_v0 = vpack.c.bf16 %v2685_v6, %v2677_v10  ;;  %v2693_v14 = vpop.f32.mrb[15].mxu0 }
 0x1cc   : > { %v1516_v13 = vpack.c.bf16 %v2687_v47, %v2679_v63  ;;  %v2695_v3 = vpop.f32.mrb[15].mxu1  ;;  %v1471_v53 = vpack.c.bf16 %v2693_v14, %v2681_v11 }
 0x1cd   : > { %v1511_v4 = vpack.c.bf16 %v2695_v3, %v2683_v12  ;;  %1539 = vst [vmem:[%s2615_s12 + $0x38] sm:$0xff] %v1476_v0  }
 0x1ce   : > { %1547 = vst [vmem:[%s2615_s12 + $0x78] sm:$0xff] %v1516_v13   ;;  %1538 = vst [vmem:[%s2615_s12 + $0x30] sm:$0xff] %v1471_v53  }
 0x1cf   : > { %1546 = vst [vmem:[%s2615_s12 + $0x70] sm:$0xff] %v1511_v4  }
 0x1d0 PF: > { %v982_v16 = vadd.f32 %v2605_v49, %v2593_v9  ;;  %s1373_s19 = sshll.u32 %s2148_s11, 11  ;;  %s1107_s13 = sshll.u32 %s2615_s12, 4  ;;  %v1022_v5 = vmul.f32 %v2593_v9, %v2593_v9  ;;  %v1023_v20 = vmul.f32 %v2605_v49, %v2605_v49  ;;  %s2718_s13 = int_to_ptr.vmem [resolvable:$true] %s1107_s13 }
 0x1d1   : > { %s2714_s22 = scalar_lea.hbm %s2900_s6, %s1373_s19  ;;  %s1094_s16 = scalar_lea.sflag [#allocation4], %s2373_s20 }
 0x1d2   : > { %v983_v18 = vadd.f32 %v2589_v59, %v982_v16  ;;  %s1932_s25 = scalar_lea.vmem %s2718_s13, 2048  ;;  %p2927_p3 = scmp.ne.s32.totalorder %s2914_s21, 0 }
 0x1d3   : > { %p1933_p11 = scmp.ne.s32.totalorder %s2718_s13, %s1932_s25  ;;  %s2077_s14 = smov [#allocation13]  }
 0x1d4   : > { %v984_v19 = vadd.f32 %v2597_v45, %v983_v18  ;;  %s1936_s24 = sshll.u32 %s2077_s14, 4  ;;  %s1937_s24 = int_to_ptr.vmem [resolvable:$false] %s1936_s24 }
 0x1d5   : > { %p1934_p13 = pnand %p1933_p11, %p2927_p3  ;;  %s1938_s9 = scalar_lea.vmem %s1937_s24, 4096 }
 0x1d6   : > { %v985_v21 = vadd.f32 %v984_v19, %v2625_v51  ;;  %p1939_p2 = scmp.lt.s32.totalorder %s2718_s13, %s1937_s24  ;;  %p1940_p6 = scmp.lt.s32.totalorder %s1938_s9, %s1932_s25 }
 0x1d7   : > { %p1935_p1 = pneg %p1934_p13 }
 0x1d8   : > { %p1941_p4 = por %p1940_p6, %p1939_p2 }
 0x1da   : > { %p1942_p7 = pnand %p1941_p4, %p1935_p1 }
 0x1dc   : > { %1945 = shalt.err (!%p1942_p7)
}
 0x1dd   : > { %s1946_s15 = scalar_lea.hbm %s2714_s22, 2048  ;;  %s1950_s23 = scalar_lea.hbm %s2900_s6, 4096 }
 0x1de   : > { %p1947_p12 = scmp.ne.s32.totalorder %s2714_s22, %s1946_s15  ;;  %p1951_p0 = scmp.lt.u32.totalorder %s2714_s22, %s2900_s6 }
 0x1df   : > { %p1952_p10 = scmp.lt.u32.totalorder %s1950_s23, %s1946_s15  ;;  %p1954_p11 = scmp.lt.u32.totalorder %s1946_s15, %s2714_s22 }
 0x1e0   : > { %p1948_p5 = pnand %p1947_p12, %p2927_p3 }
 0x1e1   : > { %p1953_p8 = por %p1952_p10, %p1951_p0 }
 0x1e2   : > { %p1949_p9 = pneg %p1948_p5 }
 0x1e3   : > { %p1955_p13 = por %p1954_p11, %p1953_p8 }
 0x1e5   : > { %p1956_p1 = pnand %p1955_p13, %p1949_p9 }
 0x1e7   : > { %1959 = shalt.err (!%p1956_p1)
}
 0x1e8   : > { %s2078_s25 = smov 64   ;;  %s2079_s24 = smov 4   ;;  %v1024_v58 = vmul.f32 %v2589_v59, %v2589_v59  ;;  %v986_v7 = vadd.f32 %v985_v21, %v2637_v38  ;;  %v1025_v22 = vmul.f32 %v2597_v45, %v2597_v45  ;;  %v1054_v25 = vadd.f32 %v1023_v20, %v1022_v5 }
 0x1e9   : > { %1658 = dma.vmem_to_hbm [thread:$0]  (%p2927_p3), %s2718_s13, 2048, %s2714_s22, %s1094_s16, %s2078_s25, %s2078_s25, %s2079_s24   ;;  %v1026_v8 = vmul.f32 %v2625_v51, %v2625_v51  ;;  %v1027_v26 = vmul.f32 %v2637_v38, %v2637_v38  ;;  %v1028_v30 = vmul.f32 %v2621_v33, %v2621_v33  ;;  %v1029_v49 = vmul.f32 %v2629_v37, %v2629_v37 }
 0x1ea   : > { %v987_v27 = vadd.f32 %v2621_v33, %v986_v7  ;;  %v1055_v23 = vadd.f32 %v1054_v25, %v1024_v58  ;;  %v1030_v51 = vmul.f32 %v2653_v41, %v2653_v41  ;;  %v1031_v38 = vmul.f32 %v2665_v60, %v2665_v60  ;;  %s2080_s21 = smov [#allocation14]   ;;  %p2928_p2 = scmp.eq.s32.totalorder %s2148_s11, 1 }
 0x1eb   : > { %v1032_v42 = vmul.f32 %v2649_v56, %v2649_v56  ;;  %v1033_v61 = vmul.f32 %v2657_v44, %v2657_v44  ;;  %v1034_v62 = vmul.f32 %v2681_v11, %v2681_v11  ;;  %v1035_v13 = vmul.f32 %v2693_v14, %v2693_v14  ;;  %s1121_s20 = sshll.u32 %s2080_s21, 4  ;;  %s1122_s20 = int_to_ptr.vmem [resolvable:$true] %s1121_s20 }
 0x1ec   : > { %v988_v24 = vadd.f32 %v2629_v37, %v987_v27  ;;  %v1056_v9 = vadd.f32 %v1055_v23, %v1025_v22  ;;  %v1036_v4 = vmul.f32 %v2677_v10, %v2677_v10  ;;  %v1037_v16 = vmul.f32 %v2685_v6, %v2685_v6  ;;  %s1960_s22 = scalar_lea.vmem %s1122_s20, 16  ;;  %s1966_s13 = scalar_lea.vmem %s1122_s20, 32 }
 0x1ed   : > { %v1038_v19 = vmul.f32 %v2595_v28, %v2595_v28  ;;  %v1039_v20 = vmul.f32 %v2607_v50, %v2607_v50  ;;  %v1040_v58 = vmul.f32 %v2591_v2, %v2591_v2  ;;  %v1041_v22 = vmul.f32 %v2599_v17, %v2599_v17  ;;  %p1961_p3 = scmp.ne.s32.totalorder %s1122_s20, %s1960_s22  ;;  %p1967_p7 = scmp.lt.s32.totalorder %s1122_s20, %s1122_s20 }
 0x1ee   : > { %v989_v59 = vadd.f32 %v988_v24, %v2653_v41  ;;  %v1057_v29 = vadd.f32 %v1056_v9, %v1026_v8  ;;  %v1042_v27 = vmul.f32 %v2627_v36, %v2627_v36  ;;  %v1043_v23 = vmul.f32 %v2639_v39, %v2639_v39  ;;  %p1968_p12 = scmp.lt.s32.totalorder %s1966_s13, %s1960_s22 }
 0x1ef   : > { %p1962_p6 = pnand %p1961_p3, %p2928_p2 }
 0x1f0   : > { %v990_v45 = vadd.f32 %v989_v59, %v2665_v60  ;;  %v1058_v31 = vadd.f32 %v1057_v29, %v1027_v26  ;;  %v1044_v26 = vmul.f32 %v2623_v34, %v2623_v34  ;;  %v1045_v59 = vmul.f32 %v2631_v52, %v2631_v52  ;;  %p1969_p5 = por %p1968_p12, %p1967_p7 }
 0x1f1   : > { %v1046_v29 = vmul.f32 %v2655_v57, %v2655_v57  ;;  %p1963_p4 = pneg %p1962_p6 }
 0x1f2   : > { %v991_v32 = vadd.f32 %v2649_v56, %v990_v45  ;;  %v1059_v35 = vadd.f32 %v1058_v31, %v1028_v30 }
 0x1f3   : > { %p1970_p9 = pnand %p1969_p5, %p1963_p4 }
 0x1f4   : > { %v992_v55 = vadd.f32 %v2657_v44, %v991_v32  ;;  %v1060_v40 = vadd.f32 %v1059_v35, %v1029_v49  ;;  %v1047_v49 = vmul.f32 %v2667_v1, %v2667_v1  ;;  %v1048_v32 = vmul.f32 %v2651_v43, %v2651_v43 }
 0x1f5   : > { %v1049_v35 = vmul.f32 %v2659_v48, %v2659_v48 }
 0x1f6   : > { %v993_v33 = vadd.f32 %v992_v55, %v2681_v11  ;;  %v1061_v54 = vadd.f32 %v1060_v40, %v1030_v51 }
 0x1f8   : > { %v994_v37 = vadd.f32 %v993_v33, %v2693_v14  ;;  %v1062_v46 = vadd.f32 %v1061_v54, %v1031_v38  ;;  %v1050_v38 = vmul.f32 %v2683_v12, %v2683_v12  ;;  %v1051_v33 = vmul.f32 %v2695_v3, %v2695_v3 }
 0x1f9   : > { %v1052_v54 = vmul.f32 %v2679_v63, %v2679_v63 }
 0x1fa   : > { %v995_v41 = vadd.f32 %v2677_v10, %v994_v37  ;;  %v1063_v0 = vadd.f32 %v1062_v46, %v1032_v42 }
 0x1fc   : > { %v996_v60 = vadd.f32 %v2685_v6, %v995_v41  ;;  %v1064_v53 = vadd.f32 %v1063_v0, %v1033_v61 }
 0x1fe   : > { %v997_v56 = vadd.f32 %v996_v60, %v2595_v28  ;;  %v1065_v15 = vadd.f32 %v1064_v53, %v1034_v62 }
 0x200   : > { %v998_v44 = vadd.f32 %v997_v56, %v2607_v50  ;;  %v1066_v18 = vadd.f32 %v1065_v15, %v1035_v13  ;;  %v981_v13 = vld [vmem:[#allocation14] sm:$0x1] }
 0x202   : > { %v999_v11 = vadd.f32 %v2591_v2, %v998_v44  ;;  %v1067_v5 = vadd.f32 %v1066_v18, %v1036_v4 }
 0x204   : > { %v1000_v14 = vadd.f32 %v2599_v17, %v999_v11  ;;  %v1068_v21 = vadd.f32 %v1067_v5, %v1037_v16 }
 0x206   : > { %v1001_v10 = vadd.f32 %v1000_v14, %v2627_v36  ;;  %v1069_v7 = vadd.f32 %v1068_v21, %v1038_v19 }
 0x208   : > { %v1002_v6 = vadd.f32 %v1001_v10, %v2639_v39  ;;  %v1070_v25 = vadd.f32 %v1069_v7, %v1039_v20 }
 0x20a   : > { %v1003_v28 = vadd.f32 %v2623_v34, %v1002_v6  ;;  %v1071_v8 = vadd.f32 %v1070_v25, %v1040_v58 }
 0x20c   : > { %v1004_v50 = vadd.f32 %v2631_v52, %v1003_v28  ;;  %v1072_v24 = vadd.f32 %v1071_v8, %v1041_v22 }
 0x20e   : > { %v1005_v2 = vadd.f32 %v1004_v50, %v2655_v57  ;;  %v1073_v9 = vadd.f32 %v1072_v24, %v1042_v27 }
 0x210   : > { %v1006_v17 = vadd.f32 %v1005_v2, %v2667_v1  ;;  %v1074_v30 = vadd.f32 %v1073_v9, %v1043_v23 }
 0x212   : > { %v1007_v36 = vadd.f32 %v2651_v43, %v1006_v17  ;;  %v1075_v45 = vadd.f32 %v1074_v30, %v1044_v26 }
 0x214   : > { %v1008_v39 = vadd.f32 %v2659_v48, %v1007_v36  ;;  %v1076_v31 = vadd.f32 %v1075_v45, %v1045_v59  ;;  %v1053_v48 = vmul.f32 %v2687_v47, %v2687_v47 }
 0x216   : > { %v1009_v34 = vadd.f32 %v1008_v39, %v2683_v12  ;;  %v1077_v51 = vadd.f32 %v1076_v31, %v1046_v29 }
 0x218   : > { %v1010_v52 = vadd.f32 %v1009_v34, %v2695_v3  ;;  %v1078_v55 = vadd.f32 %v1077_v51, %v1047_v49 }
 0x21a   : > { %v1011_v57 = vadd.f32 %v2679_v63, %v1010_v52  ;;  %v1079_v40 = vadd.f32 %v1078_v55, %v1048_v32 }
 0x21c   : > { %v1012_v1 = vadd.f32 %v2687_v47, %v1011_v57  ;;  %v1080_v42 = vadd.f32 %v1079_v40, %v1049_v35 }
 0x21e   : > { %v1013_v43 = vrot.slane %v1012_v1, 4  ;;  %v1081_v37 = vadd.f32 %v1080_v42, %v1050_v38 }
 0x220   : > { %v1014_v61 = vadd.f32 %v1013_v43, %v1012_v1  ;;  %v1082_v46 = vadd.f32 %v1081_v37, %v1051_v33 }
 0x222   : > { %v1015_v41 = vrot.slane %v1014_v61, 2  ;;  %v1083_v62 = vadd.f32 %v1082_v46, %v1052_v54 }
 0x224   : > { %v1016_v12 = vadd.f32 %v1015_v41, %v1014_v61  ;;  %v1084_v0 = vadd.f32 %v1083_v62, %v1053_v48 }
 0x226   : > { %v1017_v60 = vrot.slane %v1016_v12, 1  ;;  %v1085_v53 = vrot.slane %v1084_v0, 4 }
 0x228   : > { %v1018_v3 = vadd.f32 %v1017_v60, %v1016_v12  ;;  %v1086_v56 = vadd.f32 %v1085_v53, %v1084_v0 }
 0x22a   : > { %v1019_v4 = vadd.f32 %v1018_v3, %v981_v13  ;;  %v1087_v63 = vrot.slane %v1086_v56, 2 }
 0x22c   : > { %1020 = vst [vmem:[#allocation14] sm:$0x1] %v1019_v4  ;;  %v1088_v15 = vadd.f32 %v1087_v63, %v1086_v56 }
 0x22d   : > { %1973 = shalt.err (!%p1970_p9)
}
 0x22e   : > { %s1974_s15 = scalar_lea.hbm %s2901_s7, 16  ;;  %p2929_p10 = pmov %p2928_p2 }
 0x22f   : > { %p1975_p0 = scmp.ne.s32.totalorder %s2901_s7, %s1974_s15  ;;  %p1980_p13 = scmp.lt.u32.totalorder %s1974_s15, %s2901_s7 }
 0x231   : > { %p1976_p8 = pnand %p1975_p0, %p2929_p10 }
 0x233   : > { %p1977_p11 = pneg %p1976_p8 }
 0x235   : > { %p1982_p1 = pnand %p1980_p13, %p1977_p11 }
 0x237   : > { %1985 = shalt.err (!%p1982_p1)
}
 0x238   : > { %p2930_p3 = pmov %p2928_p2  ;;  %v1089_v47 = vrot.slane %v1088_v15, 1  ;;  %v1021_v44 = vld [vmem:[#allocation16] sm:$0x1]  ;;  %s2081_s24 = smov [#allocation16]  }
 0x239   : > { %s1132_s21 = sshll.u32 %s2081_s24, 4  ;;  %s1133_s21 = int_to_ptr.vmem [resolvable:$true] %s1132_s21 }
 0x23a   : > { %1660 = dma.vmem_to_hbm [thread:$0]  (%p2930_p3), %s1122_s20, 16, %s2901_s7, [#allocation15]   ;;  %v1090_v16 = vadd.f32 %v1089_v47, %v1088_v15 }
 0x23b   : > { %s1986_s22 = scalar_lea.vmem %s1133_s21, 16  ;;  %p2931_p6 = pmov %p2930_p3 }
 0x23c   : > { %v1091_v18 = vadd.f32 %v1090_v16, %v1021_v44  ;;  %p1987_p2 = scmp.ne.s32.totalorder %s1133_s21, %s1986_s22  ;;  %s1992_s13 = scalar_lea.vmem %s1133_s21, 32 }
 0x23d   : > { %p1993_p12 = scmp.lt.s32.totalorder %s1133_s21, %s1133_s21  ;;  %p1994_p5 = scmp.lt.s32.totalorder %s1992_s13, %s1986_s22 }
 0x23e   : > { %1092 = vst [vmem:[#allocation16] sm:$0x1] %v1091_v18  ;;  %p1988_p4 = pnand %p1987_p2, %p2931_p6 }
 0x23f   : > { %p1995_p9 = por %p1994_p5, %p1993_p12 }
 0x240   : > { %p1989_p7 = pneg %p1988_p4 }
 0x242   : > { %p1996_p0 = pnand %p1995_p9, %p1989_p7 }
 0x244   : > { %1999 = shalt.err (!%p1996_p0)
}
 0x245   : > { %s2000_s9 = scalar_lea.hbm %s2902_s8, 16  ;;  %p2932_p8 = pmov %p2930_p3 }
 0x246   : > { %p2001_p10 = scmp.ne.s32.totalorder %s2902_s8, %s2000_s9  ;;  %p2006_p1 = scmp.lt.u32.totalorder %s2000_s9, %s2902_s8 }
 0x248   : > { %p2002_p11 = pnand %p2001_p10, %p2932_p8 }
 0x24a   : > { %p2003_p13 = pneg %p2002_p11 }
 0x24c   : > { %p2008_p3 = pnand %p2006_p1, %p2003_p13 }
 0x24e   : > { %2011 = shalt.err (!%p2008_p3)
}
 0x24f   : > { %p2933_p2 = pmov %p2931_p6 }
 0x251   : > { %1662 = dma.vmem_to_hbm [thread:$0]  (%p2933_p2), %s1133_s21, 16, %s2902_s8, [#allocation15]  }
 0x252   : > { %p2934_p6 = pmov %p2933_p2 }
 0x253   : > { %p2935_p4 = pmov %p2933_p2 }
 0x254   : > { %2045 = dma.done.wait (%p2934_p6), [#allocation15], 32  }
 0x255   : > { %2047 = vsyncadd (%p2935_p4), [#allocation15], 4294967264 }
 0x256 PF: > { %s1152_s25 = sand.u32 1, %s2054_s27   ;;  %p2936_p7 = scmp.ne.s32.totalorder %s2915_s26, 0 }
 0x257   : > { %p2937_p12 = scmp.ge.s32.totalorder %s2066_s30, 2  ;;  %s1153_s24 = scalar_lea.sflag [#allocation4], %s1152_s25 }
 0x259   : > { %p1689_p5 = pnand %p2937_p12, %p2936_p7 }
 0x25b   : > { %2049 = dma.done.wait (!%p1689_p5), %s1153_s24, 2048  }
 0x25c   : > { %2051 = vsyncadd (!%p1689_p5), %s1153_s24, 4294965248  ;;  %p26_p9 = scmp.ge.s32.totalorder %s2295_s18, 4   ;;  %s2938_s27 = smov %s2058_s28 }
 0x25d   : > { %s2939_s28 = smov %s2062_s29  ;;  %s2940_s29 = smov %s2307_s17 }
 0x25e   : > { %s2941_s30 = smov %s2295_s18  ;;  %28 = sbr.rel (!%p26_p9) target bundleno = 9 (0x9), region = 129 }
 0x265   :  { %1158 = vsyncpa [#allocation3], 1 }
 0x266   :  { %1160 = vsyncpa [#allocation3 + $0x1], 1 }
 0x267   :  { %1161 = vsyncpa [#allocation6], 1 }
 0x268   :  { %1162 = vsyncpa [#allocation9], 1 }
 0x269   :  { %1163 = vsyncpa [#allocation12], 1 }
 0x26a   :  { %1164 = vsyncpa [#allocation4], 1 }
 0x26b   :  { %1166 = vsyncpa [#allocation4 + $0x1], 1 }
 0x26c   :  { %1167 = vsyncpa [#allocation15], 1 }

// kernel: bottleneck_big_ci.9
= control target key start
LH: loop header
LB: loop body
LE: loop exit
PB: predicated region body
PF: predicated region fallthrough
CT: control target
= control target key end

     0   :  { %s1871_s0 = inlined_call_operand.hbm [shape: bf16[512,128], index: 0, kind: input, shape index: {}]   ;;  %s1872_s1 = inlined_call_operand.hbm [shape: f32[1,128], index: 1, kind: input, shape index: {}]   ;;  %s1873_s2 = inlined_call_operand.hbm [shape: f32[1,128], index: 2, kind: input, shape index: {}]   ;;  %s1874_s3 = inlined_call_operand.hbm [shape: f32[1,128], index: 3, kind: input, shape index: {}]   ;;  %s1875_s4 = inlined_call_operand.hbm [shape: f32[1,128], index: 4, kind: input, shape index: {}]   ;;  %s1876_s5 = inlined_call_operand.hbm [shape: f32[512,128], index: 5, kind: input, shape index: {}]   ;;  %s1877_s6 = inlined_call_operand.hbm [shape: f32[512,128], index: 6, kind: output, shape index: {}]  }
   0x1   :  { %1881 = sst [smem:[#allocation19_spill]] %s1871_s0 }
   0x2   :  { %1882 = sst [smem:[#allocation20_spill]] %s1872_s1 }
   0x3   :  { %1883 = sst [smem:[#allocation21_spill]] %s1873_s2 }
   0x4   :  { %11 = vsyncpa [#allocation3], 0 }
   0x5   :  { %13 = vsyncpa [#allocation3 + $0x1], 0 }
   0x6   :  { %14 = vsyncpa [#allocation6], 0 }
   0x7   :  { %15 = vsyncpa [#allocation9], 0 }
   0x8   :  { %16 = vsyncpa [#allocation12], 0 }
   0x9   :  { %18 = vsyncpa [#allocation12 + $0x1], 0 }
   0xa   :  { %19 = vsyncpa [#allocation4], 0 }
   0xb   :  { %21 = vsyncpa [#allocation4 + $0x1], 0  ;;  %s1301_s21 = smov 0   ;;  %s1303_s22 = smov 0  }
   0xc   :  { %s1305_s23 = smov 0   ;;  %s1307_s24 = smov 0  }
   0xd LB: > { %s1322_s25 = sadd.s32 4294967295, %s1251_s24   ;;  %s793_s26 = sadd.s32 4294967294, %s1251_s24   ;;  %s1251_s24 = sphi %s1307_s24, %s1909_s24   ;;  %s1247_s23 = sphi %s1305_s23, %s1908_s23   ;;  %s1243_s22 = sphi %s1303_s22, %s1907_s22   ;;  %s1239_s21 = sphi %s1301_s21, %s1906_s21  }
   0xe   : > { %p47_p0 = scmp.ne.s32.totalorder %s1243_s22, %s1239_s21  ;;  %p1878_p1 = scmp.eq.s32.totalorder %s1322_s25, 0 }
   0xf   : > { %p187_p3 = scmp.eq.s32.totalorder %s793_s26, 1  ;;  %p794_p5 = scmp.ge.s32.totalorder %s1251_s24, 1 }
  0x10   : > { %p1331_p4 = por %p1878_p1, %p47_p0  ;;  %p194_p7 = scmp.lt.s32.totalorder %s1251_s24, 3 }
  0x11   : > { %p1336_p6 = por %p187_p3, %p47_p0  ;;  %s1253_s30 = smov [#allocation5]  }
  0x12   : > { %s1884_s27 = scalar_select %p1331_p4, 1, 0 }
  0x13   : > { %s1885_s28 = scalar_select %p1336_p6, 1, 0 }
  0x14   : > { %p1341_p8 = pnand %p794_p5, %p194_p7  ;;  %s207_s7 = sshll.u32 %s1253_s30, 4  ;;  %s208_s7 = int_to_ptr.vmem [resolvable:$true] %s207_s7 }
  0x15   : > { %s1254_s8 = smov [#allocation8]   ;;  %s1255_s11 = smov [#allocation7]  }
  0x16   : > { %s1886_s29 = scalar_select %p1341_p8, 1, 0 }
  0x17   : > { %p923_p10 = pneg %p1341_p8  ;;  %s229_s9 = sshll.u32 %s1254_s8, 4  ;;  %s1354_s9 = int_to_ptr.vmem [resolvable:$true] %s229_s9 }
  0x18   : > { %s218_s12 = sshll.u32 %s1255_s11, 4  ;;  %s1888_s1 = sld [smem:[#allocation20_spill]]  ;;  %s1356_s12 = int_to_ptr.vmem [resolvable:$true] %s218_s12 }
  0x19   : > { %p1350_p11 = pnand %p923_p10, %p1878_p1 }
  0x1b   : > { %p1366_p13 = pneg %p1350_p11 }
  0x1e   : > { %s1001_s15 = scalar_lea.hbm %s1888_s1, 16 }
  0x1f   : > { %p1002_p12 = scmp.ne.s32.totalorder %s1888_s1, %s1001_s15  ;;  %p1008_p5 = scmp.lt.u32.totalorder %s1001_s15, %s1888_s1 }
  0x21   : > { %p1004_p0 = pnand %p1366_p13, %p1002_p12 }
  0x23   : > { %p1005_p3 = pneg %p1004_p0 }
  0x25   : > { %p1010_p7 = pnand %p1008_p5, %p1005_p3 }
  0x27   : > { %1013 = shalt.err (!%p1010_p7)
}
  0x28   : > { %s1014_s26 = scalar_lea.vmem %s208_s7, 16  ;;  %s1021_s30 = scalar_lea.vmem %s208_s7, 32 }
  0x29   : > { %p1015_p10 = scmp.ne.s32.totalorder %s208_s7, %s1014_s26  ;;  %p1022_p2 = scmp.lt.s32.totalorder %s208_s7, %s208_s7 }
  0x2a   : > { %p1023_p6 = scmp.lt.s32.totalorder %s1021_s30, %s1014_s26 }
  0x2b   : > { %p1017_p9 = pnand %p1015_p10, %p1366_p13 }
  0x2c   : > { %p1024_p4 = por %p1023_p6, %p1022_p2 }
  0x2d   : > { %p1018_p1 = pneg %p1017_p9 }
  0x2f   : > { %p1025_p8 = pnand %p1024_p4, %p1018_p1 }
  0x31   : > { %1028 = shalt.err (!%p1025_p8)
}
  0x32   : > { %926 = dma.hbm_to_vmem [thread:$0]  (!%p1350_p11), %s1888_s1, 16, %s208_s7, [#allocation6]  }
  0x33   : > { %s1029_s15 = scalar_lea.hbm %s1874_s3, 16 }
  0x34   : > { %p1030_p9 = scmp.ne.s32.totalorder %s1874_s3, %s1029_s15  ;;  %p1036_p1 = scmp.lt.u32.totalorder %s1029_s15, %s1874_s3 }
  0x36   : > { %p1032_p12 = pnand %p1030_p9, %p1366_p13 }
  0x38   : > { %p1033_p2 = pneg %p1032_p12 }
  0x3a   : > { %p1038_p4 = pnand %p1036_p1, %p1033_p2 }
  0x3c   : > { %1041 = shalt.err (!%p1038_p4)
}
  0x3d   : > { %s1042_s7 = scalar_lea.vmem %s1354_s9, 16  ;;  %s1049_s26 = scalar_lea.vmem %s1354_s9, 32 }
  0x3e   : > { %p1043_p6 = scmp.ne.s32.totalorder %s1354_s9, %s1042_s7  ;;  %p1050_p3 = scmp.lt.s32.totalorder %s1354_s9, %s1354_s9 }
  0x3f   : > { %p1051_p5 = scmp.lt.s32.totalorder %s1049_s26, %s1042_s7 }
  0x40   : > { %p1045_p8 = pnand %p1043_p6, %p1366_p13 }
  0x41   : > { %p1052_p7 = por %p1051_p5, %p1050_p3 }
  0x42   : > { %p1046_p0 = pneg %p1045_p8 }
  0x44   : > { %p1053_p10 = pnand %p1052_p7, %p1046_p0 }
  0x46   : > { %1056 = shalt.err (!%p1053_p10)
}
  0x47   : > { %932 = dma.hbm_to_vmem [thread:$0]  (!%p1350_p11), %s1874_s3, 16, %s1354_s9, [#allocation9]  }
  0x48   : > { %s1890_s2 = sld [smem:[#allocation21_spill]] }
  0x4e   : > { %s1057_s14 = scalar_lea.hbm %s1890_s2, 16 }
  0x4f   : > { %p1058_p9 = scmp.ne.s32.totalorder %s1890_s2, %s1057_s14  ;;  %p1064_p1 = scmp.lt.u32.totalorder %s1057_s14, %s1890_s2 }
  0x51   : > { %p1060_p12 = pnand %p1058_p9, %p1366_p13 }
  0x53   : > { %p1061_p2 = pneg %p1060_p12 }
  0x55   : > { %p1066_p4 = pnand %p1064_p1, %p1061_p2 }
  0x57   : > { %1069 = shalt.err (!%p1066_p4)
}
  0x58   : > { %s1070_s9 = scalar_lea.vmem %s1356_s12, 16  ;;  %s1077_s20 = scalar_lea.vmem %s1356_s12, 32 }
  0x59   : > { %p1071_p6 = scmp.ne.s32.totalorder %s1356_s12, %s1070_s9  ;;  %p1078_p3 = scmp.lt.s32.totalorder %s1356_s12, %s1356_s12 }
  0x5a   : > { %p1079_p5 = scmp.lt.s32.totalorder %s1077_s20, %s1070_s9 }
  0x5b   : > { %p1073_p8 = pnand %p1071_p6, %p1366_p13 }
  0x5c   : > { %p1080_p7 = por %p1079_p5, %p1078_p3 }
  0x5d   : > { %p1074_p0 = pneg %p1073_p8 }
  0x5f   : > { %p1081_p10 = pnand %p1080_p7, %p1074_p0 }
  0x61   : > { %1084 = shalt.err (!%p1081_p10)
}
  0x62   : > { %929 = dma.hbm_to_vmem [thread:$0]  (!%p1350_p11), %s1890_s2, 16, %s1356_s12, [#allocation6]  }
  0x63   : > { %s1256_s30 = smov [#allocation10]   ;;  %s1085_s14 = scalar_lea.hbm %s1875_s4, 16 }
  0x64   : > { %s240_s8 = sshll.u32 %s1256_s30, 4  ;;  %p1086_p9 = scmp.ne.s32.totalorder %s1875_s4, %s1085_s14  ;;  %s241_s8 = int_to_ptr.vmem [resolvable:$true] %s240_s8 }
  0x65   : > { %p1092_p1 = scmp.lt.u32.totalorder %s1085_s14, %s1875_s4 }
  0x66   : > { %p1088_p12 = pnand %p1086_p9, %p1366_p13 }
  0x68   : > { %p1089_p2 = pneg %p1088_p12 }
  0x6a   : > { %p1094_p4 = pnand %p1092_p1, %p1089_p2 }
  0x6c   : > { %1097 = shalt.err (!%p1094_p4)
}
  0x6d   : > { %s1098_s12 = scalar_lea.vmem %s241_s8, 16  ;;  %s1105_s9 = scalar_lea.vmem %s241_s8, 32 }
  0x6e   : > { %p1099_p6 = scmp.ne.s32.totalorder %s241_s8, %s1098_s12  ;;  %p1106_p3 = scmp.lt.s32.totalorder %s241_s8, %s241_s8 }
  0x6f   : > { %p1107_p5 = scmp.lt.s32.totalorder %s1105_s9, %s1098_s12 }
  0x70   : > { %p1101_p8 = pnand %p1099_p6, %p1366_p13 }
  0x71   : > { %p1108_p7 = por %p1107_p5, %p1106_p3 }
  0x72   : > { %p1102_p0 = pneg %p1101_p8 }
  0x74   : > { %p1109_p10 = pnand %p1108_p7, %p1102_p0 }
  0x76   : > { %1112 = shalt.err (!%p1109_p10)
}
  0x77   : > { %935 = dma.hbm_to_vmem [thread:$0]  (!%p1350_p11), %s1875_s4, 16, %s241_s8, [#allocation9]  }
  0x78   : > { %s1449_s18 = sadd.s32 1, %s1251_s24   ;;  %s34_s26 = sadd.s32 1, %s1247_s23 }
  0x79   : > { %s31_s10 = ssub.s32 %s1251_s24, %s1449_s18  ;;  %p41_p13 = scmp.ne.s32.totalorder %s1247_s23, %s1243_s22 }
  0x7a   : > { %p32_p9 = scmp.eq.s32.totalorder %s31_s10, 0  ;;  %p42_p12 = scmp.eq.s32.totalorder %s1251_s24, 0 }
  0x7b   : > { %p1891_p2 = scmp.eq.s32.totalorder %s1322_s25, 1  ;;  %p951_p4 = scmp.lt.s32.totalorder %s1251_s24, 2 }
  0x7c   : > { %s1465_s11 = scalar_select %p32_p9, %s1247_s23, %s34_s26  }
  0x7d   : > { %p1459_p1 = por %p1891_p2, %p41_p13  ;;  %p43_p6 = por %p42_p12, %p41_p13 }
  0x7e   : > { %s1468_s13 = sand.u32 1, %s1247_s23   ;;  %s819_s14 = sshll.u32 %s1251_s24, 11 }
  0x7f   : > { %s800_s8 = sshll.u32 %s1468_s13, 7  ;;  %s1893_s0 = sld [smem:[#allocation19_spill]] }
  0x80   : > { %s255_s19 = scalar_lea.vmem [#allocation2], %s800_s8  ;;  %p1479_p11 = pnand %p951_p4, %p43_p6 }
  0x81   : > { %s262_s12 = sshll.u32 %s255_s19, 4  ;;  %s252_s20 = scalar_lea.sflag [#allocation3], %s1468_s13  ;;  %s1477_s12 = int_to_ptr.vmem [resolvable:$true] %s262_s12 }
  0x82   : > { %p1115_p0 = pneg %p1479_p11 }
  0x85   : > { %s1475_s17 = scalar_lea.hbm %s1893_s0, %s819_s14  ;;  %s1118_s8 = scalar_lea.hbm %s1893_s0, 4096 }
  0x86   : > { %s1113_s7 = scalar_lea.hbm %s1475_s17, 2048  ;;  %p1119_p7 = scmp.lt.u32.totalorder %s1475_s17, %s1893_s0 }
  0x87   : > { %p1114_p8 = scmp.ne.s32.totalorder %s1475_s17, %s1113_s7  ;;  %p1120_p10 = scmp.lt.u32.totalorder %s1118_s8, %s1113_s7 }
  0x88   : > { %p1122_p9 = scmp.lt.u32.totalorder %s1113_s7, %s1475_s17 }
  0x89   : > { %p1116_p3 = pnand %p1115_p0, %p1114_p8  ;;  %p1121_p13 = por %p1120_p10, %p1119_p7 }
  0x8b   : > { %p1117_p5 = pneg %p1116_p3  ;;  %p1123_p12 = por %p1122_p9, %p1121_p13 }
  0x8d   : > { %p1124_p2 = pnand %p1123_p12, %p1117_p5 }
  0x8f   : > { %1127 = shalt.err (!%p1124_p2)
}
  0x90   : > { %s1128_s16 = scalar_lea.vmem %s1477_s12, 2048  ;;  %s1257_s19 = smov [#allocation2]  }
  0x91   : > { %p1129_p4 = scmp.ne.s32.totalorder %s1477_s12, %s1128_s16  ;;  %s1133_s26 = sshll.u32 %s1257_s19, 4  ;;  %s1134_s26 = int_to_ptr.vmem [resolvable:$false] %s1133_s26 }
  0x92   : > { %s1135_s10 = scalar_lea.vmem %s1134_s26, 4096  ;;  %p1136_p3 = scmp.lt.s32.totalorder %s1477_s12, %s1134_s26 }
  0x93   : > { %p1131_p6 = pnand %p1129_p4, %p1115_p0  ;;  %p1137_p7 = scmp.lt.s32.totalorder %s1135_s10, %s1128_s16 }
  0x95   : > { %p1132_p8 = pneg %p1131_p6  ;;  %p1138_p10 = por %p1137_p7, %p1136_p3 }
  0x97   : > { %p1139_p13 = pnand %p1138_p10, %p1132_p8 }
  0x99   : > { %1142 = shalt.err (!%p1139_p13)
}
  0x9a   : > { %s1258_s7 = smov 64   ;;  %s1259_s8 = smov 4  }
  0x9b   : > { %939 = dma.hbm_to_vmem [thread:$0]  (!%p1479_p11), %s1475_s17, 2048, %s1477_s12, %s252_s20, %s1258_s7, %s1258_s7, %s1259_s8  }
  0x9c   : > { %s803_s14 = sshll.u32 %s1468_s13, 8  ;;  %s820_s15 = sshll.u32 %s1251_s24, 12 }
  0x9d   : > { %s1516_s26 = scalar_lea.hbm %s1876_s5, %s820_s15  ;;  %s276_s10 = scalar_lea.vmem [#allocation11], %s803_s14 }
  0x9e   : > { %s283_s0 = sshll.u32 %s276_s10, 4  ;;  %s273_s1 = scalar_lea.sflag [#allocation12], %s1468_s13  ;;  %s1518_s0 = int_to_ptr.vmem [resolvable:$true] %s283_s0 }
  0x9f   : > { %s1143_s2 = scalar_lea.hbm %s1516_s26, 4096  ;;  %s1148_s20 = scalar_lea.hbm %s1876_s5, 8192 }
  0xa0   : > { %p1144_p5 = scmp.ne.s32.totalorder %s1516_s26, %s1143_s2  ;;  %p1149_p2 = scmp.lt.u32.totalorder %s1516_s26, %s1876_s5 }
  0xa1   : > { %p1150_p4 = scmp.lt.u32.totalorder %s1148_s20, %s1143_s2  ;;  %p1152_p8 = scmp.lt.u32.totalorder %s1143_s2, %s1516_s26 }
  0xa2   : > { %p1146_p9 = pnand %p1144_p5, %p1115_p0 }
  0xa3   : > { %p1151_p6 = por %p1150_p4, %p1149_p2 }
  0xa4   : > { %p1147_p12 = pneg %p1146_p9 }
  0xa5   : > { %p1153_p3 = por %p1152_p8, %p1151_p6 }
  0xa7   : > { %p1154_p7 = pnand %p1153_p3, %p1147_p12 }
  0xa9   : > { %1157 = shalt.err (!%p1154_p7)
}
  0xaa   : > { %s1158_s14 = scalar_lea.vmem %s1518_s0, 4096  ;;  %s1260_s15 = smov [#allocation11]  }
  0xab   : > { %p1159_p10 = scmp.ne.s32.totalorder %s1518_s0, %s1158_s14  ;;  %s1163_s19 = sshll.u32 %s1260_s15, 4  ;;  %s1164_s19 = int_to_ptr.vmem [resolvable:$false] %s1163_s19 }
  0xac   : > { %s1165_s16 = scalar_lea.vmem %s1164_s19, 8192  ;;  %p1166_p9 = scmp.lt.s32.totalorder %s1518_s0, %s1164_s19 }
  0xad   : > { %p1161_p13 = pnand %p1159_p10, %p1115_p0  ;;  %p1167_p2 = scmp.lt.s32.totalorder %s1165_s16, %s1158_s14 }
  0xaf   : > { %p1162_p5 = pneg %p1161_p13  ;;  %p1168_p4 = por %p1167_p2, %p1166_p9 }
  0xb1   : > { %p1169_p6 = pnand %p1168_p4, %p1162_p5 }
  0xb3   : > { %1172 = shalt.err (!%p1169_p6)
}
  0xb4   : > { %s1261_s2 = smov 128   ;;  %s1262_s10 = smov 8  }
  0xb5   : > { %942 = dma.hbm_to_vmem [thread:$0]  (!%p1479_p11), %s1516_s26, 4096, %s1518_s0, %s273_s1, %s1261_s2, %s1261_s2, %s1262_s10  }
  0xb6   : > { %p1895_p0 = scmp.ne.s32.totalorder %s1886_s29, 0 }
  0xb7   : > { %s1549_s17 = sand.u32 (!%p1895_p0), 1, %s1243_s22   ;;  %p1896_p12 = scmp.ne.s32.totalorder (!%p1895_p0), %s1884_s27, 0 }
  0xb8   : > { %295 = sbr.rel (%p1895_p0) target bundleno = 280 (0x118), region = 44  ;;  %s807_s12 = sshll.u32 (!%p1895_p0), %s1549_s17, 7 }
  0xb9   : > { %s298_s20 = scalar_lea.sflag (!%p1895_p0), [#allocation3], %s1549_s17  ;;  %s1553_s7 = scalar_lea.vmem (!%p1895_p0), [#allocation2], %s807_s12 }
  0xbf   : > { %1218 = dma.done.wait (%p1896_p12), %s298_s20, 2048  }
  0xc0   : > { %1220 = vsyncadd (%p1896_p12), %s298_s20, 4294965248  ;;  %p1897_p11 = scmp.eq.s32.totalorder %s1322_s25, 0 }
  0xc2   : > { %1222 = dma.done.wait (%p1897_p11), [#allocation6], 32   ;;  %p1898_p8 = pmov %p1897_p11 }
  0xc4   : > { %1224 = vsyncadd (%p1898_p8), [#allocation6], 4294967264  ;;  %p1899_p3 = pmov %p1898_p8 }
  0xc6   : > { %1226 = dma.done.wait (%p1899_p3), [#allocation9], 32   ;;  %p1900_p7 = pmov %p1899_p3 }
  0xc7   : > { %s812_s0 = sshll.u32 %s1549_s17, 8  ;;  %s323_s1 = scalar_lea.sflag [#allocation12], %s1549_s17 }
  0xc8   : > { %1228 = vsyncadd (%p1900_p7), [#allocation9], 4294967264  ;;  %s1571_s29 = scalar_lea.vmem [#allocation11], %s812_s0 }
  0xc9   : > { %1230 = dma.done.wait (%p1896_p12), %s323_s1, 4096  }
  0xca   : > { %1232 = vsyncadd (%p1896_p12), %s323_s1, 4294963200  ;;  %v363_v0 = vld [vmem:[#allocation5] sm:$0x1]  ;;  %v365_v1 = vld [vmem:[#allocation7] sm:$0x1]  ;;  %v442_v8 = vlaneseq  ;;  %s1688_s27 = scalar_lea.vmem [#allocation13], %s812_s0 }
  0xcb   : > { %v364_v2 = vmul.f32 0.001953125, %v363_v0  ;;  %v366_v3 = vmul.f32 0.001953125, %v365_v1  ;;  %v823_v10 = vld [vmem:[%s1553_s7] sm:$0xff]   ;;  %v886_v11 = vld [vmem:[%s1553_s7 + $0x8] sm:$0xff]   ;;  %v887_v12 = vld [vmem:[%s1553_s7 + $0x10] sm:$0xff]   ;;  %s821_s13 = sshll.u32 %s1322_s25, 12 }
  0xcc   : > { %v1577_v9 = vshrl.u32 %v442_v8, 7  ;;  %v1583_v13 = vld [vmem:[%s1553_s7 + $0x18] sm:$0xff]   ;;  %v1586_v14 = vld [vmem:[%s1553_s7 + $0x20] sm:$0xff]   ;;  %v1589_v15 = vld [vmem:[%s1553_s7 + $0x28] sm:$0xff]   ;;  %v824_v16 = vunpack.c.l.bf16 %v823_v10  ;;  %v825_v18 = vunpack.c.h.bf16 %v823_v10  ;;  %v828_v19 = vunpack.c.l.bf16 %v886_v11  ;;  %s659_s9 = sshll.u32 %s1688_s27, 4  ;;  %s1821_s8 = scalar_lea.hbm %s1877_s6, %s821_s13  ;;  %s1823_s9 = int_to_ptr.vmem [resolvable:$true] %s659_s9 }
  0xcd   : > { %v367_v4 = vmul.f32 %v364_v2, %v364_v2  ;;  %v1593_v20 = vld [vmem:[%s1553_s7 + $0x30] sm:$0xff]   ;;  %v1596_v21 = vld [vmem:[%s1553_s7 + $0x38] sm:$0xff]   ;;  %v829_v22 = vunpack.c.h.bf16 %v886_v11  ;;  %v832_v23 = vunpack.c.l.bf16 %v887_v12  ;;  %v833_v24 = vunpack.c.h.bf16 %v887_v12  ;;  %v1600_v26 = vld [vmem:[%s1553_s7 + $0x40] sm:$0xff]   ;;  %s646_s14 = scalar_lea.sflag [#allocation4], %s1549_s17  ;;  %s1173_s15 = scalar_lea.vmem %s1823_s9, 4096 }
  0xce   : > { %v444_v17 = vsub.s32 0, %v1577_v9  ;;  %v836_v25 = vunpack.c.l.bf16 %v1583_v13  ;;  %v1603_v27 = vld [vmem:[%s1553_s7 + $0x48] sm:$0xff]   ;;  %v370_v28 = vld [vmem:[#allocation8] sm:$0x1]  ;;  %v837_v29 = vunpack.c.h.bf16 %v1583_v13  ;;  %v840_v30 = vunpack.c.l.bf16 %v1586_v14  ;;  %v1610_v33 = vld [vmem:[%s1553_s7 + $0x50] sm:$0xff]   ;;  %p1174_p10 = scmp.ne.s32.totalorder %s1823_s9, %s1173_s15  ;;  %s1263_s19 = smov [#allocation13]  }
  0xcf   : > { %v368_v5 = vsub.f32 %v366_v3, %v367_v4  ;;  %v841_v31 = vunpack.c.h.bf16 %v1586_v14  ;;  %v844_v32 = vunpack.c.l.bf16 %v1589_v15  ;;  %v845_v34 = vunpack.c.h.bf16 %v1589_v15  ;;  %v1617_v38 = vld [vmem:[%s1553_s7 + $0x58] sm:$0xff]   ;;  %v1620_v39 = vld [vmem:[%s1553_s7 + $0x60] sm:$0xff]   ;;  %v1627_v45 = vld [vmem:[%s1553_s7 + $0x68] sm:$0xff]   ;;  %s1177_s16 = sshll.u32 %s1263_s19, 4  ;;  %s1178_s16 = int_to_ptr.vmem [resolvable:$false] %s1177_s16 }
  0xd0   : > { %v848_v35 = vunpack.c.l.bf16 %v1593_v20  ;;  %v849_v36 = vunpack.c.h.bf16 %v1593_v20  ;;  %v852_v37 = vunpack.c.l.bf16 %v1596_v21  ;;  %v853_v41 = vunpack.c.h.bf16 %v1596_v21  ;;  %v1633_v50 = vld [vmem:[%s1553_s7 + $0x70] sm:$0xff]   ;;  %v1636_v51 = vld [vmem:[%s1553_s7 + $0x78] sm:$0xff]   ;;  %v374_v52 = vld [vmem:[#allocation10] sm:$0x1]  ;;  %p1175_p13 = pnand %p1174_p10, %p1459_p1  ;;  %s1179_s2 = scalar_lea.vmem %s1178_s16, 8192 }
  0xd1   : > { %v369_v6 = vmax.f32 %v368_v5, 0.0  ;;  %v856_v42 = vunpack.c.l.bf16 %v1600_v26  ;;  %v857_v43 = vunpack.c.h.bf16 %v1600_v26  ;;  %v860_v44 = vunpack.c.l.bf16 %v1603_v27  ;;  %v517_v10 = vld [vmem:[%s1571_s29] sm:$0xff]  ;;  %v518_v11 = vld [vmem:[%s1571_s29 + $0x8] sm:$0xff]  ;;  %v519_v15 = vld [vmem:[%s1571_s29 + $0x10] sm:$0xff]  ;;  %p1180_p9 = scmp.lt.s32.totalorder %s1823_s9, %s1178_s16  ;;  %p1181_p2 = scmp.lt.s32.totalorder %s1179_s2, %s1173_s15 }
  0xd2   : > { %v861_v47 = vunpack.c.h.bf16 %v1603_v27  ;;  %v864_v48 = vunpack.c.l.bf16 %v1610_v33  ;;  %v865_v49 = vunpack.c.h.bf16 %v1610_v33  ;;  %v868_v53 = vunpack.c.l.bf16 %v1617_v38  ;;  %v525_v63 = vld [vmem:[%s1571_s29 + $0x40] sm:$0xff]  ;;  %v526_v62 = vld [vmem:[%s1571_s29 + $0x48] sm:$0xff]  ;;  %v536_v26 = vld [vmem:[%s1571_s29 + $0x98] sm:$0xff]  ;;  %p1176_p5 = pneg %p1175_p13 }
  0xd3   : > { %v371_v7 = vadd.f32 1e-05, %v369_v6  ;;  %v869_v54 = vunpack.c.h.bf16 %v1617_v38  ;;  %v872_v55 = vunpack.c.l.bf16 %v1620_v39  ;;  %v873_v56 = vunpack.c.h.bf16 %v1620_v39  ;;  %v544_v39 = vld [vmem:[%s1571_s29 + $0xd8] sm:$0xff]  ;;  %p1182_p4 = por %p1181_p2, %p1180_p9 }
  0xd4   : > { %v876_v59 = vunpack.c.l.bf16 %v1627_v45  ;;  %v877_v60 = vunpack.c.h.bf16 %v1627_v45  ;;  %v880_v61 = vunpack.c.l.bf16 %v1633_v50 }
  0xd5   : > { %999 = vrsqrt.f32 %v371_v7  ;;  %p1183_p6 = pnand %p1182_p4, %p1176_p5 }
  0xdf   : > { %v1000_v40 = vpop.eup %999 }
  0xe0   : > { %v373_v46 = vmul.f32 %v1000_v40, %v370_v28 }
  0xe2   : > { %v375_v57 = vmul.f32 %v373_v46, %v364_v2  ;;  %v1642_v58 = vrot.slane %v373_v46, %v444_v17 }
  0xe4   : > { %v376_v1 = vsub.f32 %v374_v52, %v375_v57  ;;  %v447_v2 = vmul.f32 %v824_v16, %v1642_v58  ;;  %v448_v3 = vmul.f32 %v825_v18, %v1642_v58  ;;  %v449_v4 = vmul.f32 %v828_v19, %v1642_v58  ;;  %v520_v16 = vld [vmem:[%s1571_s29 + $0x18] sm:$0xff]  ;;  %v521_v18 = vld [vmem:[%s1571_s29 + $0x20] sm:$0xff] }
  0xe5   : > { %v450_v5 = vmul.f32 %v829_v22, %v1642_v58  ;;  %v451_v6 = vmul.f32 %v832_v23, %v1642_v58  ;;  %v452_v7 = vmul.f32 %v833_v24, %v1642_v58  ;;  %v453_v8 = vmul.f32 %v836_v25, %v1642_v58 }
  0xe6   : > { %v1657_v9 = vrot.slane %v376_v1, %v444_v17  ;;  %v454_v12 = vmul.f32 %v837_v29, %v1642_v58  ;;  %v455_v13 = vmul.f32 %v840_v30, %v1642_v58  ;;  %v456_v14 = vmul.f32 %v841_v31, %v1642_v58  ;;  %v522_v29 = vld [vmem:[%s1571_s29 + $0x28] sm:$0xff]  ;;  %v523_v30 = vld [vmem:[%s1571_s29 + $0x30] sm:$0xff]  ;;  %v524_v31 = vld [vmem:[%s1571_s29 + $0x38] sm:$0xff] }
  0xe7   : > { %v457_v19 = vmul.f32 %v844_v32, %v1642_v58  ;;  %v458_v20 = vmul.f32 %v845_v34, %v1642_v58  ;;  %v459_v17 = vmul.f32 %v848_v35, %v1642_v58  ;;  %v460_v22 = vmul.f32 %v849_v36, %v1642_v58 }
  0xe8   : > { %v485_v23 = vadd.f32 %v1657_v9, %v447_v2  ;;  %v486_v24 = vadd.f32 %v1657_v9, %v448_v3  ;;  %v487_v25 = vadd.f32 %v1657_v9, %v449_v4  ;;  %v488_v28 = vadd.f32 %v1657_v9, %v450_v5 }
  0xe9   : > { %v489_v40 = vadd.f32 %v1657_v9, %v451_v6  ;;  %v490_v32 = vadd.f32 %v1657_v9, %v452_v7  ;;  %v491_v34 = vadd.f32 %v1657_v9, %v453_v8  ;;  %v492_v35 = vadd.f32 %v1657_v9, %v454_v12 }
  0xea   : > { %v549_v36 = vadd.f32 %v517_v10, %v485_v23  ;;  %v550_v46 = vadd.f32 %v518_v11, %v486_v24  ;;  %v551_v52 = vadd.f32 %v519_v15, %v487_v25  ;;  %v552_v57 = vadd.f32 %v520_v16, %v488_v28  ;;  %v527_v15 = vld [vmem:[%s1571_s29 + $0x50] sm:$0xff]  ;;  %v528_v16 = vld [vmem:[%s1571_s29 + $0x58] sm:$0xff]  ;;  %v529_v28 = vld [vmem:[%s1571_s29 + $0x60] sm:$0xff] }
  0xeb   : > { %v553_v1 = vadd.f32 %v521_v18, %v489_v40  ;;  %v554_v2 = vadd.f32 %v522_v29, %v490_v32  ;;  %v555_v3 = vadd.f32 %v523_v30, %v491_v34  ;;  %v556_v4 = vadd.f32 %v524_v31, %v492_v35  ;;  %v530_v29 = vld [vmem:[%s1571_s29 + $0x68] sm:$0xff]  ;;  %v531_v32 = vld [vmem:[%s1571_s29 + $0x70] sm:$0xff]  ;;  %v532_v34 = vld [vmem:[%s1571_s29 + $0x78] sm:$0xff] }
  0xec   : > { %v581_v5 = vmax.f32 %v549_v36, 0.0  ;;  %v582_v6 = vmax.f32 %v550_v46, 0.0  ;;  %v583_v0 = vmax.f32 %v551_v52, 0.0  ;;  %v584_v7 = vmax.f32 %v552_v57, 0.0 }
  0xed   : > { %v585_v8 = vmax.f32 %v553_v1, 0.0  ;;  %v586_v10 = vmax.f32 %v554_v2, 0.0  ;;  %v587_v11 = vmax.f32 %v555_v3, 0.0  ;;  %v588_v12 = vmax.f32 %v556_v4, 0.0  ;;  %v533_v2 = vld [vmem:[%s1571_s29 + $0x80] sm:$0xff] }
  0xee   : > { %613 = vst [vmem:[%s1688_s27] sm:$0xff] %v581_v5  ;;  %614 = vst [vmem:[%s1688_s27 + $0x8] sm:$0xff] %v582_v6  ;;  %v493_v18 = vadd.f32 %v1657_v9, %v455_v13  ;;  %v494_v23 = vadd.f32 %v1657_v9, %v456_v14  ;;  %v495_v24 = vadd.f32 %v1657_v9, %v457_v19 }
  0xef   : > { %615 = vst [vmem:[%s1688_s27 + $0x10] sm:$0xff] %v583_v0  ;;  %616 = vst [vmem:[%s1688_s27 + $0x18] sm:$0xff] %v584_v7  ;;  %v496_v25 = vadd.f32 %v1657_v9, %v458_v20  ;;  %v497_v30 = vadd.f32 %v1657_v9, %v459_v17  ;;  %v498_v0 = vadd.f32 %v1657_v9, %v460_v22  ;;  %v534_v7 = vld [vmem:[%s1571_s29 + $0x88] sm:$0xff] }
  0xf0   : > { %617 = vst [vmem:[%s1688_s27 + $0x20] sm:$0xff] %v585_v8  ;;  %618 = vst [vmem:[%s1688_s27 + $0x28] sm:$0xff] %v586_v10  ;;  %v461_v13 = vmul.f32 %v852_v37, %v1642_v58  ;;  %v462_v14 = vmul.f32 %v853_v41, %v1642_v58  ;;  %v557_v19 = vadd.f32 %v525_v63, %v493_v18  ;;  %v535_v8 = vld [vmem:[%s1571_s29 + $0x90] sm:$0xff] }
  0xf1   : > { %619 = vst [vmem:[%s1688_s27 + $0x30] sm:$0xff] %v587_v11  ;;  %620 = vst [vmem:[%s1688_s27 + $0x38] sm:$0xff] %v588_v12  ;;  %v558_v20 = vadd.f32 %v526_v62, %v494_v23  ;;  %v559_v31 = vadd.f32 %v527_v15, %v495_v24  ;;  %v560_v40 = vadd.f32 %v528_v16, %v496_v25  ;;  %v537_v12 = vld [vmem:[%s1571_s29 + $0xa0] sm:$0xff]  ;;  %v538_v15 = vld [vmem:[%s1571_s29 + $0xa8] sm:$0xff] }
  0xf2   : > { %v561_v17 = vadd.f32 %v529_v28, %v497_v30  ;;  %v562_v22 = vadd.f32 %v530_v29, %v498_v0  ;;  %v499_v35 = vadd.f32 %v1657_v9, %v461_v13  ;;  %v500_v37 = vadd.f32 %v1657_v9, %v462_v14  ;;  %v539_v28 = vld [vmem:[%s1571_s29 + $0xb0] sm:$0xff]  ;;  %v540_v29 = vld [vmem:[%s1571_s29 + $0xb8] sm:$0xff] }
  0xf3   : > { %v589_v36 = vmax.f32 %v557_v19, 0.0  ;;  %v590_v21 = vmax.f32 %v558_v20, 0.0  ;;  %v591_v41 = vmax.f32 %v559_v31, 0.0  ;;  %v592_v62 = vmax.f32 %v560_v40, 0.0 }
  0xf4   : > { %v593_v63 = vmax.f32 %v561_v17, 0.0  ;;  %v594_v46 = vmax.f32 %v562_v22, 0.0  ;;  %v563_v52 = vadd.f32 %v531_v32, %v499_v35  ;;  %v564_v57 = vadd.f32 %v532_v34, %v500_v37  ;;  %v541_v17 = vld [vmem:[%s1571_s29 + $0xc0] sm:$0xff] }
  0xf5   : > { %621 = vst [vmem:[%s1688_s27 + $0x40] sm:$0xff] %v589_v36  ;;  %622 = vst [vmem:[%s1688_s27 + $0x48] sm:$0xff] %v590_v21  ;;  %v463_v1 = vmul.f32 %v856_v42, %v1642_v58  ;;  %v464_v3 = vmul.f32 %v857_v43, %v1642_v58  ;;  %v465_v4 = vmul.f32 %v860_v44, %v1642_v58  ;;  %v542_v21 = vld [vmem:[%s1571_s29 + $0xc8] sm:$0xff] }
  0xf6   : > { %623 = vst [vmem:[%s1688_s27 + $0x50] sm:$0xff] %v591_v41  ;;  %624 = vst [vmem:[%s1688_s27 + $0x58] sm:$0xff] %v592_v62  ;;  %v466_v5 = vmul.f32 %v861_v47, %v1642_v58  ;;  %v595_v42 = vmax.f32 %v563_v52, 0.0  ;;  %v596_v6 = vmax.f32 %v564_v57, 0.0  ;;  %v467_v43 = vmul.f32 %v864_v48, %v1642_v58  ;;  %v543_v41 = vld [vmem:[%s1571_s29 + $0xd0] sm:$0xff]  ;;  %v545_v52 = vld [vmem:[%s1571_s29 + $0xe0] sm:$0xff] }
  0xf7   : > { %625 = vst [vmem:[%s1688_s27 + $0x60] sm:$0xff] %v593_v63  ;;  %626 = vst [vmem:[%s1688_s27 + $0x68] sm:$0xff] %v594_v46  ;;  %v468_v44 = vmul.f32 %v865_v49, %v1642_v58  ;;  %v501_v27 = vadd.f32 %v1657_v9, %v463_v1  ;;  %v502_v47 = vadd.f32 %v1657_v9, %v464_v3  ;;  %v546_v57 = vld [vmem:[%s1571_s29 + $0xe8] sm:$0xff]  ;;  %v1902_v1 = vunpack.c.l.bf16 %v1636_v51 }
  0xf8   : > { %v503_v10 = vadd.f32 %v1657_v9, %v465_v4  ;;  %v504_v11 = vadd.f32 %v1657_v9, %v466_v5  ;;  %627 = vst [vmem:[%s1688_s27 + $0x70] sm:$0xff] %v595_v42  ;;  %628 = vst [vmem:[%s1688_s27 + $0x78] sm:$0xff] %v596_v6  ;;  %v505_v48 = vadd.f32 %v1657_v9, %v467_v43  ;;  %v1903_v3 = vunpack.c.h.bf16 %v1636_v51 }
  0xf9   : > { %v506_v16 = vadd.f32 %v1657_v9, %v468_v44  ;;  %v469_v33 = vmul.f32 %v868_v53, %v1642_v58  ;;  %v470_v49 = vmul.f32 %v869_v54, %v1642_v58  ;;  %v565_v18 = vadd.f32 %v533_v2, %v501_v27 }
  0xfa   : > { %v566_v23 = vadd.f32 %v534_v7, %v502_v47  ;;  %v567_v24 = vadd.f32 %v535_v8, %v503_v10  ;;  %v568_v25 = vadd.f32 %v536_v26, %v504_v11  ;;  %v569_v30 = vadd.f32 %v537_v12, %v505_v48  ;;  %v547_v8 = vld [vmem:[%s1571_s29 + $0xf0] sm:$0xff]  ;;  %v548_v26 = vld [vmem:[%s1571_s29 + $0xf8] sm:$0xff] }
  0xfb   : > { %v570_v0 = vadd.f32 %v538_v15, %v506_v16  ;;  %v507_v13 = vadd.f32 %v1657_v9, %v469_v33  ;;  %v508_v53 = vadd.f32 %v1657_v9, %v470_v49  ;;  %v597_v14 = vmax.f32 %v565_v18, 0.0 }
  0xfc   : > { %v598_v38 = vmax.f32 %v566_v23, 0.0  ;;  %v599_v54 = vmax.f32 %v567_v24, 0.0  ;;  %v600_v19 = vmax.f32 %v568_v25, 0.0  ;;  %v601_v20 = vmax.f32 %v569_v30, 0.0 }
  0xfd   : > { %v602_v31 = vmax.f32 %v570_v0, 0.0  ;;  %v571_v40 = vadd.f32 %v539_v28, %v507_v13  ;;  %v572_v32 = vadd.f32 %v540_v29, %v508_v53  ;;  %629 = vst [vmem:[%s1688_s27 + $0x80] sm:$0xff] %v597_v14  ;;  %v471_v34 = vmul.f32 %v872_v55, %v1642_v58 }
  0xfe   : > { %630 = vst [vmem:[%s1688_s27 + $0x88] sm:$0xff] %v598_v38  ;;  %631 = vst [vmem:[%s1688_s27 + $0x90] sm:$0xff] %v599_v54  ;;  %v472_v22 = vmul.f32 %v873_v56, %v1642_v58  ;;  %v473_v35 = vmul.f32 %v876_v59, %v1642_v58  ;;  %v474_v37 = vmul.f32 %v877_v60, %v1642_v58  ;;  %v1901_v59 = vunpack.c.h.bf16 %v1633_v50 }
  0xff   : > { %632 = vst [vmem:[%s1688_s27 + $0x98] sm:$0xff] %v600_v19  ;;  %633 = vst [vmem:[%s1688_s27 + $0xa0] sm:$0xff] %v601_v20  ;;  %v603_v55 = vmax.f32 %v571_v40, 0.0  ;;  %v604_v36 = vmax.f32 %v572_v32, 0.0  ;;  %v475_v56 = vmul.f32 %v880_v61, %v1642_v58  ;;  %v509_v45 = vadd.f32 %v1657_v9, %v471_v34 }
 0x100   : > { %634 = vst [vmem:[%s1688_s27 + $0xa8] sm:$0xff] %v602_v31  ;;  %v476_v62 = vmul.f32 %v1901_v59, %v1642_v58  ;;  %v510_v60 = vadd.f32 %v1657_v9, %v472_v22  ;;  %v511_v63 = vadd.f32 %v1657_v9, %v473_v35  ;;  %v512_v46 = vadd.f32 %v1657_v9, %v474_v37 }
 0x101   : > { %635 = vst [vmem:[%s1688_s27 + $0xb0] sm:$0xff] %v603_v55  ;;  %636 = vst [vmem:[%s1688_s27 + $0xb8] sm:$0xff] %v604_v36  ;;  %v513_v61 = vadd.f32 %v1657_v9, %v475_v56  ;;  %v477_v2 = vmul.f32 %v1902_v1, %v1642_v58  ;;  %v478_v4 = vmul.f32 %v1903_v3, %v1642_v58 }
 0x102   : > { %v514_v50 = vadd.f32 %v1657_v9, %v476_v62  ;;  %v573_v5 = vadd.f32 %v541_v17, %v509_v45  ;;  %v574_v42 = vadd.f32 %v542_v21, %v510_v60  ;;  %v575_v6 = vadd.f32 %v543_v41, %v511_v63 }
 0x103   : > { %v576_v7 = vadd.f32 %v544_v39, %v512_v46  ;;  %v577_v43 = vadd.f32 %v545_v52, %v513_v61  ;;  %v515_v27 = vadd.f32 %v1657_v9, %v477_v2  ;;  %v516_v47 = vadd.f32 %v1657_v9, %v478_v4 }
 0x104   : > { %v578_v44 = vadd.f32 %v546_v57, %v514_v50  ;;  %v605_v51 = vmax.f32 %v573_v5, 0.0  ;;  %v606_v58 = vmax.f32 %v574_v42, 0.0  ;;  %v607_v10 = vmax.f32 %v575_v6, 0.0 }
 0x105   : > { %v608_v11 = vmax.f32 %v576_v7, 0.0  ;;  %v609_v12 = vmax.f32 %v577_v43, 0.0  ;;  %v579_v48 = vadd.f32 %v547_v8, %v515_v27  ;;  %v580_v16 = vadd.f32 %v548_v26, %v516_v47 }
 0x106   : > { %v610_v15 = vmax.f32 %v578_v44, 0.0  ;;  %637 = vst [vmem:[%s1688_s27 + $0xc0] sm:$0xff] %v605_v51  ;;  %638 = vst [vmem:[%s1688_s27 + $0xc8] sm:$0xff] %v606_v58 }
 0x107   : > { %639 = vst [vmem:[%s1688_s27 + $0xd0] sm:$0xff] %v607_v10  ;;  %640 = vst [vmem:[%s1688_s27 + $0xd8] sm:$0xff] %v608_v11  ;;  %v611_v9 = vmax.f32 %v579_v48, 0.0  ;;  %v612_v33 = vmax.f32 %v580_v16, 0.0 }
 0x108   : > { %641 = vst [vmem:[%s1688_s27 + $0xe0] sm:$0xff] %v609_v12  ;;  %642 = vst [vmem:[%s1688_s27 + $0xe8] sm:$0xff] %v610_v15 }
 0x109   : > { %643 = vst [vmem:[%s1688_s27 + $0xf0] sm:$0xff] %v611_v9  ;;  %644 = vst [vmem:[%s1688_s27 + $0xf8] sm:$0xff] %v612_v33 }
 0x10a   : > { %1186 = shalt.err (!%p1183_p6)
}
 0x10b   : > { %s1187_s10 = scalar_lea.hbm %s1821_s8, 4096  ;;  %s1191_s7 = scalar_lea.hbm %s1877_s6, 8192 }
 0x10c   : > { %p1188_p0 = scmp.ne.s32.totalorder %s1821_s8, %s1187_s10  ;;  %p1192_p8 = scmp.lt.u32.totalorder %s1821_s8, %s1877_s6 }
 0x10d   : > { %p1193_p3 = scmp.lt.u32.totalorder %s1191_s7, %s1187_s10  ;;  %p1195_p10 = scmp.lt.u32.totalorder %s1187_s10, %s1821_s8 }
 0x10e   : > { %p1189_p12 = pnand %p1188_p0, %p1459_p1 }
 0x10f   : > { %p1194_p7 = por %p1193_p3, %p1192_p8 }
 0x110   : > { %p1190_p11 = pneg %p1189_p12 }
 0x111   : > { %p1196_p13 = por %p1195_p10, %p1194_p7 }
 0x113   : > { %p1197_p5 = pnand %p1196_p13, %p1190_p11 }
 0x115   : > { %1200 = shalt.err (!%p1197_p5)
}
 0x116   : > { %s1264_s29 = smov 128   ;;  %s1265_s27 = smov 8  }
 0x117   : > { %921 = dma.vmem_to_hbm [thread:$0]  (%p1459_p1), %s1823_s9, 4096, %s1821_s8, %s646_s14, %s1264_s29, %s1264_s29, %s1265_s27  }
 0x118 PF: > { %s674_s13 = sand.u32 1, %s1239_s21   ;;  %p1904_p9 = scmp.ne.s32.totalorder %s1885_s28, 0 }
 0x119   : > { %p1905_p2 = scmp.ge.s32.totalorder %s1251_s24, 2  ;;  %s675_s25 = scalar_lea.sflag [#allocation4], %s674_s13 }
 0x11b   : > { %p944_p4 = pnand %p1905_p2, %p1904_p9 }
 0x11d   : > { %1234 = dma.done.wait (!%p944_p4), %s675_s25, 4096  }
 0x11e   : > { %1236 = vsyncadd (!%p944_p4), %s675_s25, 4294963200  ;;  %p24_p6 = scmp.ge.s32.totalorder %s1449_s18, 4   ;;  %s1906_s21 = smov %s1243_s22 }
 0x11f   : > { %s1907_s22 = smov %s1247_s23  ;;  %s1908_s23 = smov %s1465_s11 }
 0x120   : > { %s1909_s24 = smov %s1449_s18  ;;  %26 = sbr.rel (!%p24_p6) target bundleno = 13 (0xd), region = 118 }
 0x127   :  { %680 = vsyncpa [#allocation3], 1 }
 0x128   :  { %682 = vsyncpa [#allocation3 + $0x1], 1 }
 0x129   :  { %683 = vsyncpa [#allocation6], 1 }
 0x12a   :  { %684 = vsyncpa [#allocation9], 1 }
 0x12b   :  { %685 = vsyncpa [#allocation12], 1 }
 0x12c   :  { %687 = vsyncpa [#allocation12 + $0x1], 1 }
 0x12d   :  { %688 = vsyncpa [#allocation4], 1 }
 0x12e   :  { %690 = vsyncpa [#allocation4 + $0x1], 1 }

// kernel: bottleneck_big_ci.7
= control target key start
LH: loop header
LB: loop body
LE: loop exit
PB: predicated region body
PF: predicated region fallthrough
CT: control target
= control target key end

     0   :  { %10 = vsyncpa [#allocation4], 0  ;;  %s6232_s0 = inlined_call_operand.hbm [shape: bf16[2,18,16,384], index: 0, kind: input, shape index: {}]   ;;  %s6233_s1 = inlined_call_operand.hbm [shape: bf16[3,384,128], index: 1, kind: input, shape index: {}]   ;;  %s6234_s2 = inlined_call_operand.hbm [shape: bf16[512,128], index: 2, kind: output, shape index: {0}]   ;;  %s6235_s3 = inlined_call_operand.hbm [shape: f32[1,128], index: 3, kind: output, shape index: {1}]   ;;  %s6236_s4 = inlined_call_operand.hbm [shape: f32[1,128], index: 4, kind: output, shape index: {2}]  }
   0x1   :  { %12 = vsyncpa [#allocation4 + $0x1], 0 }
   0x2   :  { %13 = vsyncpa [#allocation7], 0 }
   0x3   :  { %14 = vsyncpa [#allocation5], 0 }
   0x4   :  { %16 = vsyncpa [#allocation5 + $0x1], 0 }
   0x5   :  { %17 = vsyncpa [#allocation10], 0  ;;  %s5233_s15 = smov 0   ;;  %s5235_s16 = smov 0  }
   0x6   :  { %s5237_s17 = smov 0   ;;  %s5239_s18 = smov 0  }
   0x7 LB: > { %s5254_s19 = sadd.s32 4294967295, %s5194_s18   ;;  %s3505_s20 = sadd.s32 4294967294, %s5194_s18   ;;  %s5194_s18 = sphi %s5239_s18, %s6268_s18   ;;  %s5190_s17 = sphi %s5237_s17, %s6267_s17   ;;  %s5186_s16 = sphi %s5235_s16, %s6266_s16   ;;  %s5182_s15 = sphi %s5233_s15, %s6265_s15  }
   0x8   : > { %p43_p0 = scmp.ne.s32.totalorder %s5186_s16, %s5182_s15  ;;  %p6237_p1 = scmp.eq.s32.totalorder %s5254_s19, 0 }
   0x9   : > { %p94_p3 = scmp.eq.s32.totalorder %s3505_s20, 1  ;;  %p3506_p5 = scmp.ge.s32.totalorder %s5194_s18, 1 }
   0xa   : > { %p5263_p4 = por %p6237_p1, %p43_p0  ;;  %p143_p7 = scmp.lt.s32.totalorder %s5194_s18, 3 }
   0xb   : > { %p5268_p6 = por %p94_p3, %p43_p0  ;;  %s5196_s24 = smov [#allocation6]  }
   0xc   : > { %s6240_s21 = scalar_select %p5263_p4, 1, 0 }
   0xd   : > { %s6241_s22 = scalar_select %p5268_p6, 1, 0 }
   0xe   : > { %p5274_p9 = pnand %p3506_p5, %p143_p7  ;;  %s155_s25 = sshll.u32 %s5196_s24, 4  ;;  %s5278_s25 = int_to_ptr.vmem [resolvable:$true] %s155_s25 }
   0xf   : > { %s5290_s27 = sadd.s32 1, %s5194_s18   ;;  %s30_s28 = sadd.s32 1, %s5190_s17 }
  0x10   : > { %s6242_s23 = scalar_select %p5274_p9, 1, 0 }
  0x11   : > { %p4774_p10 = pneg %p5274_p9  ;;  %s27_s29 = ssub.s32 %s5194_s18, %s5290_s27 }
  0x12   : > { %s5010_s6 = scalar_lea.hbm %s6233_s1, 9216 }
  0x13   : > { %p5285_p12 = pnand %p4774_p10, %p6237_p1  ;;  %p5011_p13 = scmp.ne.s32.totalorder %s6233_s1, %s5010_s6 }
  0x14   : > { %p5017_p7 = scmp.lt.u32.totalorder %s5010_s6, %s6233_s1 }
  0x15   : > { %p5012_p0 = pneg %p5285_p12 }
  0x17   : > { %p5013_p3 = pnand %p5012_p0, %p5011_p13 }
  0x19   : > { %p5014_p5 = pneg %p5013_p3 }
  0x1b   : > { %p5019_p10 = pnand %p5017_p7, %p5014_p5 }
  0x1d   : > { %5022 = shalt.err (!%p5019_p10)
}
  0x1e   : > { %s5023_s11 = scalar_lea.vmem %s5278_s25, 9216  ;;  %p5031_p2 = scmp.lt.s32.totalorder %s5278_s25, %s5278_s25 }
  0x1f   : > { %p5024_p11 = scmp.ne.s32.totalorder %s5278_s25, %s5023_s11  ;;  %p5032_p6 = scmp.lt.s32.totalorder %s5023_s11, %s5023_s11 }
  0x21   : > { %p5026_p8 = pnand %p5024_p11, %p5012_p0  ;;  %p5033_p4 = por %p5032_p6, %p5031_p2 }
  0x23   : > { %p5027_p1 = pneg %p5026_p8 }
  0x25   : > { %p5034_p9 = pnand %p5033_p4, %p5027_p1 }
  0x27   : > { %5037 = shalt.err (!%p5034_p9)
}
  0x28   : > { %s5197_s12 = smov 64   ;;  %s5198_s13 = smov 4  }
  0x29   : > { %4777 = dma.hbm_to_vmem [thread:$0]  (!%p5285_p12), %s6233_s1, 9216, %s5278_s25, [#allocation7], %s5197_s12, %s5197_s12, %s5198_s13  }
  0x2a   : > { %p28_p2 = scmp.eq.s32.totalorder %s27_s29, 0  ;;  %p37_p1 = scmp.ne.s32.totalorder %s5190_s17, %s5186_s16 }
  0x2b   : > { %p38_p4 = scmp.eq.s32.totalorder %s5194_s18, 0  ;;  %p4787_p6 = scmp.lt.s32.totalorder %s5194_s18, 2 }
  0x2c   : > { %s5321_s24 = scalar_select %p28_p2, %s5190_s17, %s30_s28  }
  0x2d   : > { %p39_p8 = por %p38_p4, %p37_p1  ;;  %p6244_p9 = scmp.eq.s32.totalorder %s5254_s19, 1 }
  0x2e   : > { %s169_s5 = sand.u32 1, %s5190_s17   ;;  %s4756_s6 = smul.u32 6912, %s5194_s18 }
  0x2f   : > { %p5325_p11 = por %p6244_p9, %p37_p1  ;;  %s4755_s7 = smul.u32 432, %s169_s5 }
  0x30   : > { %s5334_s9 = scalar_lea.hbm %s6232_s0, %s4756_s6  ;;  %p5336_p12 = pnand %p4787_p6, %p39_p8 }
  0x31   : > { %s173_s28 = scalar_lea.vmem [#allocation3], %s4755_s7  ;;  %s5342_s10 = scalar_lea.sflag [#allocation4], %s169_s5 }
  0x32   : > { %s180_s29 = sshll.u32 %s173_s28, 4  ;;  %s5038_s11 = scalar_lea.hbm %s5334_s9, 6912  ;;  %s5340_s29 = int_to_ptr.vmem [resolvable:$true] %s180_s29 }
  0x33   : > { %p5039_p13 = scmp.ne.s32.totalorder %s5334_s9, %s5038_s11  ;;  %p5040_p0 = pneg %p5336_p12 }
  0x34   : > { %s5043_s14 = scalar_lea.hbm %s6232_s0, 13824  ;;  %p5044_p7 = scmp.lt.u32.totalorder %s5334_s9, %s6232_s0 }
  0x35   : > { %p5041_p3 = pnand %p5040_p0, %p5039_p13  ;;  %p5045_p10 = scmp.lt.u32.totalorder %s5043_s14, %s5038_s11 }
  0x36   : > { %p5047_p1 = scmp.lt.u32.totalorder %s5038_s11, %s5334_s9 }
  0x37   : > { %p5042_p5 = pneg %p5041_p3  ;;  %p5046_p2 = por %p5045_p10, %p5044_p7 }
  0x39   : > { %p5048_p4 = por %p5047_p1, %p5046_p2 }
  0x3b   : > { %p5049_p6 = pnand %p5048_p4, %p5042_p5 }
  0x3d   : > { %5052 = shalt.err (!%p5049_p6)
}
  0x3e   : > { %s5053_s5 = scalar_lea.vmem %s5340_s29, 6912  ;;  %s5199_s7 = smov [#allocation3]  }
  0x3f   : > { %p5054_p8 = scmp.ne.s32.totalorder %s5340_s29, %s5053_s5  ;;  %s5058_s26 = sshll.u32 %s5199_s7, 4  ;;  %s5059_s26 = int_to_ptr.vmem [resolvable:$false] %s5058_s26 }
  0x40   : > { %s5060_s8 = scalar_lea.vmem %s5059_s26, 13824  ;;  %p5061_p3 = scmp.lt.s32.totalorder %s5340_s29, %s5059_s26 }
  0x41   : > { %p5056_p9 = pnand %p5054_p8, %p5040_p0  ;;  %p5062_p7 = scmp.lt.s32.totalorder %s5060_s8, %s5053_s5 }
  0x43   : > { %p5057_p13 = pneg %p5056_p9  ;;  %p5063_p10 = por %p5062_p7, %p5061_p3 }
  0x45   : > { %p5064_p2 = pnand %p5063_p10, %p5057_p13 }
  0x47   : > { %5067 = shalt.err (!%p5064_p2)
}
  0x48   : > { %s5200_s28 = smov 192   ;;  %s5201_s11 = smov 12  }
  0x49   : > { %4781 = dma.hbm_to_vmem [thread:$0]  (!%p5336_p12), %s5334_s9, 6912, %s5340_s29, %s5342_s10, %s5200_s28, %s5200_s28, %s5201_s11  }
  0x4a   : > { %p6247_p0 = scmp.ne.s32.totalorder %s6242_s23, 0 }
  0x4c   : > { %192 = sbr.rel (%p6247_p0) target bundleno = 761 (0x2f9), region = 28 }
  0x53   : > { %s5373_s12 = sand.u32 1, %s5186_s16   ;;  %p6248_p5 = scmp.ne.s32.totalorder %s6240_s21, 0 }
  0x54   : > { %s4757_s13 = smul.u32 432, %s5373_s12  ;;  %s195_s14 = scalar_lea.sflag [#allocation4], %s5373_s12 }
  0x56   : > { %s5377_s20 = scalar_lea.vmem [#allocation3], %s4757_s13 }
  0x57   : > { %5165 = dma.done.wait (%p6248_p5), %s195_s14, 6912  }
  0x58   : > { %5167 = vsyncadd (%p6248_p5), %s195_s14, 4294960384  ;;  %p6249_p12 = scmp.eq.s32.totalorder %s5254_s19, 0 }
  0x5a   : > { %5169 = dma.done.wait (%p6249_p12), [#allocation7], 9216   ;;  %p6250_p1 = pmov %p6249_p12 }
  0x5b   : > { %v4836_v0 = vld [vmem:[#allocation6 + $0x40] sm:$0xff]   ;;  %v4839_v3 = vld [vmem:[#allocation6 + $0x48] sm:$0xff]   ;;  %v4842_v6 = vld [vmem:[#allocation6 + $0x50] sm:$0xff]   ;;  %s3512_s21 = sshll.u32 %s5373_s12, 7  ;;  %p6255_p4 = scmp.ne.s32.totalorder %s5254_s19, 0 }
  0x5c   : > { %5171 = vsyncadd (%p6250_p1), [#allocation7], 4294958080  ;;  %v5387_v1 = vld [vmem:[#allocation6 + $0x80] sm:$0xff]   ;;  %4027 = vmatprep.subr.bf16.mxu0 %v4836_v0  ;;  %v5391_v4 = vld [vmem:[#allocation6 + $0x88] sm:$0xff]   ;;  %s5915_s23 = scalar_lea.vmem [#allocation8], %s3512_s21 }
  0x5d   : > { %v4838_v2 = vld [vmem:[#allocation6] sm:$0xff]   ;;  %4579 = vmatprep.subr.bf16.mxu1 %v5387_v1  ;;  %v4841_v5 = vld [vmem:[#allocation6 + $0x8] sm:$0xff]   ;;  %v5394_v7 = vld [vmem:[#allocation6 + $0x90] sm:$0xff]  }
  0x5e   : > { %4028 = vmatpush3.bf16.msra.mxu0 %v4838_v2  ;;  %4587 = vmatpush3.bf16.msra.mxu1 %v5387_v1  ;;  %v4844_v8 = vld [vmem:[#allocation6 + $0x10] sm:$0xff]   ;;  %v4845_v9 = vld [vmem:[#allocation6 + $0x58] sm:$0xff]   ;;  %v4848_v12 = vld [vmem:[#allocation6 + $0x60] sm:$0xff]  }
  0x5f   : > { %4029 = vmatprep.subr.bf16.mxu0 %v4839_v3  ;;  %4580 = vmatprep.subr.bf16.mxu1 %v5391_v4  ;;  %v5398_v10 = vld [vmem:[#allocation6 + $0x98] sm:$0xff]   ;;  %v5402_v13 = vld [vmem:[#allocation6 + $0xa0] sm:$0xff]   ;;  %v4851_v15 = vld [vmem:[#allocation6 + $0x68] sm:$0xff]  }
  0x60   : > { %v4847_v11 = vld [vmem:[#allocation6 + $0x18] sm:$0xff]   ;;  %v4850_v14 = vld [vmem:[#allocation6 + $0x20] sm:$0xff]   ;;  %v5406_v16 = vld [vmem:[#allocation6 + $0xa8] sm:$0xff]  }
  0x61   : > { %v4853_v17 = vld [vmem:[#allocation6 + $0x28] sm:$0xff]   ;;  %v4854_v18 = vld [vmem:[#allocation6 + $0x70] sm:$0xff]   ;;  %v4857_v21 = vld [vmem:[#allocation6 + $0x78] sm:$0xff]  }
  0x62   : > { %4030 = vmatpush3.bf16.msra.mxu0 %v4841_v5  ;;  %4588 = vmatpush3.bf16.msra.mxu1 %v5391_v4  ;;  %v5410_v19 = vld [vmem:[#allocation6 + $0xb0] sm:$0xff]   ;;  %v5413_v22 = vld [vmem:[#allocation6 + $0xb8] sm:$0xff]   ;;  %v4865_v26 = vld [vmem:[#allocation6 + $0x100] sm:$0xff]  }
  0x63   : > { %4031 = vmatprep.subr.bf16.mxu0 %v4842_v6  ;;  %4581 = vmatprep.subr.bf16.mxu1 %v5394_v7  ;;  %v4856_v20 = vld [vmem:[#allocation6 + $0x30] sm:$0xff]   ;;  %v4859_v25 = vld [vmem:[#allocation6 + $0x38] sm:$0xff]   ;;  %v4866_v29 = vld [vmem:[#allocation6 + $0xc0] sm:$0xff]  }
  0x64   : > { %v4862_v23 = vld [vmem:[%s5377_s20 + $0x4] ss:$12 sps:$4 sm:$0xff]   ;;  %v4863_v24 = vld [vmem:[%s5377_s20 + $0xc8] ss:$12 sps:$4 sm:$0xff]   ;;  %v4860_v27 = vld [vmem:[%s5377_s20] ss:$12 sps:$4 sm:$0xff]  }
  0x65   : > { %837 = vmatprep.mubr.bf16.mxu0 %v4862_v23  ;;  %4467 = vmatprep.mubr.bf16.mxu1 %v4863_v24  ;;  %v4864_v28 = vld [vmem:[%s5377_s20 + $0xe0] ss:$12 sps:$4 sm:$0xff]   ;;  %v5425_v31 = vld [vmem:[%s5377_s20 + $0x1c] ss:$12 sps:$4 sm:$0xff]   ;;  %v4871_v32 = vld [vmem:[%s5377_s20 + $0xf8] ss:$12 sps:$4 sm:$0xff]  }
  0x66   : > { %4032 = vmatpush3.bf16.msra.mxu0 %v4844_v8  ;;  %4589 = vmatpush3.bf16.msra.mxu1 %v5394_v7  ;;  %v4867_v30 = vld [vmem:[#allocation6 + $0x108] sm:$0xff]   ;;  %v4874_v35 = vld [vmem:[#allocation6 + $0x110] sm:$0xff]   ;;  %v4876_v38 = vld [vmem:[#allocation6 + $0x118] sm:$0xff]  }
  0x67   : > { %4033 = vmatprep.subr.bf16.mxu0 %v4845_v9  ;;  %4582 = vmatprep.subr.bf16.mxu1 %v5398_v10  ;;  %v4868_v33 = vld [vmem:[#allocation6 + $0xc8] sm:$0xff]   ;;  %v4875_v37 = vld [vmem:[#allocation6 + $0xd0] sm:$0xff]   ;;  %v4877_v41 = vld [vmem:[#allocation6 + $0xd8] sm:$0xff]  }
  0x68   : > { %v5431_v34 = vld [vmem:[%s5377_s20 + $0x18] ss:$12 sps:$4 sm:$0xff]   ;;  %v4873_v36 = vld [vmem:[%s5377_s20 + $0x110] ss:$12 sps:$4 sm:$0xff]   ;;  %v5436_v39 = vld [vmem:[%s5377_s20 + $0x34] ss:$12 sps:$4 sm:$0xff]  }
  0x69   : > { %v4880_v40 = vld [vmem:[%s5377_s20 + $0x128] ss:$12 sps:$4 sm:$0xff]   ;;  %v5444_v42 = vld [vmem:[%s5377_s20 + $0x30] ss:$12 sps:$4 sm:$0xff]   ;;  %v4882_v43 = vld [vmem:[%s5377_s20 + $0x140] ss:$12 sps:$4 sm:$0xff]  }
  0x6a   : > { %4034 = vmatpush3.bf16.msra.mxu0 %v4847_v11  ;;  %4590 = vmatpush3.bf16.msra.mxu1 %v5398_v10  ;;  %v4883_v44 = vld [vmem:[#allocation6 + $0x120] sm:$0xff]   ;;  %v4885_v46 = vld [vmem:[#allocation6 + $0x128] sm:$0xff]   ;;  %v4892_v50 = vld [vmem:[#allocation6 + $0x130] sm:$0xff]  }
  0x6b   : > { %4035 = vmatprep.subr.bf16.mxu0 %v4848_v12  ;;  %4583 = vmatprep.subr.bf16.mxu1 %v5402_v13  ;;  %v4884_v45 = vld [vmem:[#allocation6 + $0xe0] sm:$0xff]   ;;  %v5450_v47 = vld [vmem:[%s5377_s20 + $0x4c] ss:$12 sps:$4 sm:$0xff]   ;;  %v4893_v53 = vld [vmem:[#allocation6 + $0xf0] sm:$0xff]  }
  0x6c   : > { %v4889_v48 = vld [vmem:[%s5377_s20 + $0x158] ss:$12 sps:$4 sm:$0xff]   ;;  %v5457_v51 = vld [vmem:[%s5377_s20 + $0x48] ss:$12 sps:$4 sm:$0xff]   ;;  %v4891_v52 = vld [vmem:[%s5377_s20 + $0x170] ss:$12 sps:$4 sm:$0xff]  }
  0x6d   : > { %v4886_v49 = vld [vmem:[#allocation6 + $0xe8] sm:$0xff]   ;;  %v5463_v54 = vld [vmem:[%s5377_s20 + $0x64] ss:$12 sps:$4 sm:$0xff]   ;;  %v4894_v55 = vld [vmem:[#allocation6 + $0x138] sm:$0xff]  }
  0x6e   : > { %4036 = vmatpush3.bf16.msra.mxu0 %v4850_v14  ;;  %4591 = vmatpush3.bf16.msra.mxu1 %v5402_v13  ;;  %v4895_v56 = vld [vmem:[#allocation6 + $0xf8] sm:$0xff]   ;;  %v4899_v57 = vld [vmem:[#allocation6 + $0x140] sm:$0xff]   ;;  %v4906_v60 = vld [vmem:[#allocation6 + $0x148] sm:$0xff]  }
  0x6f   : > { %4037 = vmatprep.subr.bf16.mxu0 %v4851_v15  ;;  %4584 = vmatprep.subr.bf16.mxu1 %v5406_v16  ;;  %v5471_v58 = vld [vmem:[%s5377_s20 + $0x60] ss:$12 sps:$4 sm:$0xff]   ;;  %v5475_v59 = vld [vmem:[%s5377_s20 + $0x7c] ss:$12 sps:$4 sm:$0xff]   ;;  %v5484_v62 = vld [vmem:[%s5377_s20 + $0x78] ss:$12 sps:$4 sm:$0xff]  }
  0x70   : > { %v4913_v61 = vld [vmem:[#allocation6 + $0x150] sm:$0xff]   ;;  %v4920_v0 = vld [vmem:[#allocation6 + $0x158] sm:$0xff]   ;;  %v4940_v2 = vld [vmem:[#allocation6 + $0x1c0] sm:$0xff]  }
  0x71   : > { %v5488_v63 = vld [vmem:[%s5377_s20 + $0x94] ss:$12 sps:$4 sm:$0xff]   ;;  %v5495_v3 = vld [vmem:[%s5377_s20 + $0x90] ss:$12 sps:$4 sm:$0xff]   ;;  %v5525_v12 = vld [vmem:[%s5377_s20 + $0xd8] ss:$12 sps:$4 sm:$0xff]  }
  0x72   : > { %4038 = vmatpush3.bf16.msra.mxu0 %v4853_v17  ;;  %4592 = vmatpush3.bf16.msra.mxu1 %v5406_v16  ;;  %v4934_v5 = vld [vmem:[#allocation6 + $0x168] sm:$0xff]   ;;  %v4942_v6 = vld [vmem:[#allocation6 + $0x170] sm:$0xff]   ;;  %v4955_v9 = vld [vmem:[#allocation6 + $0x178] sm:$0xff]  }
  0x73   : > { %4039 = vmatprep.subr.bf16.mxu0 %v4854_v18  ;;  %4585 = vmatprep.subr.bf16.mxu1 %v5410_v19  ;;  %v5508_v8 = vld [vmem:[%s5377_s20 + $0xc4] ss:$12 sps:$4 sm:$0xff]   ;;  %v5518_v11 = vld [vmem:[%s5377_s20 + $0xdc] ss:$12 sps:$4 sm:$0xff]   ;;  %v5581_v24 = vld [vmem:[%s5377_s20 + $0x16c] ss:$12 sps:$4 sm:$0xff]  }
  0x74   : > { %v5530_v14 = vld [vmem:[#allocation6 + $0x200] sm:$0xff]  }
  0x75   : > { %v5538_v15 = vld [vmem:[%s5377_s20 + $0xf0] ss:$12 sps:$4 sm:$0xff]   ;;  %v5548_v17 = vld [vmem:[%s5377_s20 + $0x108] ss:$12 sps:$4 sm:$0xff]  }
  0x76   : > { %4040 = vmatpush3.bf16.msra.mxu0 %v4856_v20  ;;  %4593 = vmatpush3.bf16.msra.mxu1 %v5410_v19  ;;  %v5551_v18 = vld [vmem:[%s5377_s20 + $0x124] ss:$12 sps:$4 sm:$0xff]   ;;  %v5561_v20 = vld [vmem:[%s5377_s20 + $0x13c] ss:$12 sps:$4 sm:$0xff]  }
  0x77   : > { %4041 = vmatprep.subr.bf16.mxu0 %v4857_v21  ;;  %4586 = vmatprep.subr.bf16.mxu1 %v5413_v22  ;;  %v5568_v21 = vld [vmem:[%s5377_s20 + $0x138] ss:$12 sps:$4 sm:$0xff]   ;;  %v5578_v23 = vld [vmem:[%s5377_s20 + $0x150] ss:$12 sps:$4 sm:$0xff]  }
  0x7a   : > { %4042 = vmatpush3.bf16.msra.mxu0 %v4859_v25  ;;  %4594 = vmatpush3.bf16.msra.mxu1 %v5413_v22  ;;  %v5588_v25 = vld [vmem:[%s5377_s20 + $0x168] ss:$12 sps:$4 sm:$0xff]  }
  0x7b   : > { %4435 = vmatprep.subr.bf16.mxu0 %v5387_v1  ;;  %4163 = vmatprep.subr.bf16.mxu1 %v4865_v26  ;;  %v4938_v26 = vld [vmem:[%s5377_s20 + $0x8] ss:$12 sps:$4 sm:$0xff]  }
  0x7d   : > { %838 = vmatmul.mubr.bf16.vlgmr.msra.gmra.mrb[0].mxu0 %v4860_v27  ;;  %4468 = vmatmul.mubr.bf16.vlgmr.msra.gmra.mrb[0].mxu1 %v4864_v28  ;;  %v4939_v27 = vld [vmem:[%s5377_s20 + $0x20] ss:$12 sps:$4 sm:$0xff]  }
  0x7e   : > { %4436 = vmatpush3.bf16.msra.mxu0 %v5387_v1  ;;  %4164 = vmatpush3.bf16.msra.mxu1 %v4866_v29  ;;  %v4927_v1 = vld [vmem:[#allocation6 + $0x160] sm:$0xff]  }
  0x7f   : > { %4165 = vmatprep.subr.bf16.mxu1 %v4867_v30  ;;  %845 = vmatprep.mubr.bf16.mxu0 %v5425_v31  ;;  %v4941_v28 = vld [vmem:[#allocation6 + $0x180] sm:$0xff]   ;;  %v4943_v30 = vld [vmem:[#allocation6 + $0x1c8] sm:$0xff]  }
  0x80   : > { %4471 = vmatprep.mubr.bf16.mxu1 %v4871_v32  ;;  %4437 = vmatprep.subr.bf16.mxu0 %v5391_v4  ;;  %v4945_v29 = vld [vmem:[%s5377_s20 + $0x38] ss:$12 sps:$4 sm:$0xff]  }
  0x81   : > { %v4947_v32 = vld [vmem:[#allocation6 + $0x1d0] sm:$0xff]  }
  0x82   : > { %4166 = vmatpush3.bf16.msra.mxu1 %v4868_v33  ;;  %4438 = vmatpush3.bf16.msra.mxu0 %v5391_v4  ;;  %v5498_v4 = vld [vmem:[%s5377_s20 + $0xac] ss:$12 sps:$4 sm:$0xff]   ;;  %v4946_v33 = vld [vmem:[%s5377_s20 + $0x50] ss:$12 sps:$4 sm:$0xff]  }
  0x83   : > { %4167 = vmatprep.subr.bf16.mxu1 %v4874_v35  ;;  %4439 = vmatprep.subr.bf16.mxu0 %v5394_v7  ;;  %v4951_v35 = vld [vmem:[%s5377_s20 + $0x68] ss:$12 sps:$4 sm:$0xff]  }
  0x85   : > { %846 = vmatmul.mubr.bf16.gmra.mrb[4].mxu0 %v5431_v34  ;;  %4472 = vmatmul.mubr.bf16.gmra.mrb[4].mxu1 %v4873_v36  ;;  %v4949_v36 = vld [vmem:[#allocation6 + $0x1d8] sm:$0xff]  }
  0x86   : > { %4168 = vmatpush3.bf16.msra.mxu1 %v4875_v37  ;;  %853 = vmatprep.mubr.bf16.mxu0 %v5436_v39  ;;  %v4950_v37 = vld [vmem:[#allocation6 + $0x198] sm:$0xff]  }
  0x87   : > { %4169 = vmatprep.subr.bf16.mxu1 %v4876_v38  ;;  %4475 = vmatprep.mubr.bf16.mxu1 %v4880_v40  ;;  %v4953_v38 = vld [vmem:[#allocation6 + $0x1e0] sm:$0xff]  }
  0x88   : > { %4440 = vmatpush3.bf16.msra.mxu0 %v5394_v7  ;;  %v5505_v7 = vld [vmem:[%s5377_s20 + $0xa8] ss:$12 sps:$4 sm:$0xff]   ;;  %v4952_v40 = vld [vmem:[%s5377_s20 + $0x80] ss:$12 sps:$4 sm:$0xff]  }
  0x89   : > { %4441 = vmatprep.subr.bf16.mxu0 %v5398_v10 }
  0x8a   : > { %4170 = vmatpush3.bf16.msra.mxu1 %v4877_v41  ;;  %v4954_v41 = vld [vmem:[#allocation6 + $0x1a0] sm:$0xff]  }
  0x8b   : > { %4171 = vmatprep.subr.bf16.mxu1 %v4883_v44  ;;  %v4956_v44 = vld [vmem:[#allocation6 + $0x1e8] sm:$0xff]  }
  0x8c   : > { %4442 = vmatpush3.bf16.msra.mxu0 %v5398_v10  ;;  %v5515_v10 = vld [vmem:[%s5377_s20 + $0xc0] ss:$12 sps:$4 sm:$0xff]  }
  0x8d   : > { %854 = vmatmul.mubr.bf16.gmra.mrb[8].mxu0 %v5444_v42  ;;  %4476 = vmatmul.mubr.bf16.gmra.mrb[8].mxu1 %v4882_v43  ;;  %v4958_v43 = vld [vmem:[%s5377_s20 + $0x98] ss:$12 sps:$4 sm:$0xff]  }
  0x8e   : > { %4172 = vmatpush3.bf16.msra.mxu1 %v4884_v45  ;;  %861 = vmatprep.mubr.bf16.mxu0 %v5450_v47  ;;  %v5605_v45 = vld [vmem:[%s5377_s20 + $0x184] ss:$12 sps:$4 sm:$0xff]  }
  0x8f   : > { %4173 = vmatprep.subr.bf16.mxu1 %v4885_v46  ;;  %4479 = vmatprep.mubr.bf16.mxu1 %v4889_v48  ;;  %v4957_v46 = vld [vmem:[#allocation6 + $0x1a8] sm:$0xff]   ;;  %v4963_v48 = vld [vmem:[#allocation6 + $0x1f0] sm:$0xff]  }
  0x90   : > { %4443 = vmatprep.subr.bf16.mxu0 %v5402_v13 }
  0x91   : > { %4444 = vmatpush3.bf16.msra.mxu0 %v5402_v13  ;;  %v5528_v13 = vld [vmem:[%s5377_s20 + $0xf4] ss:$12 sps:$4 sm:$0xff]  }
  0x92   : > { %4174 = vmatpush3.bf16.msra.mxu1 %v4886_v49  ;;  %4445 = vmatprep.subr.bf16.mxu0 %v5406_v16  ;;  %v4961_v49 = vld [vmem:[%s5377_s20 + $0xb0] ss:$12 sps:$4 sm:$0xff]  }
  0x93   : > { %4175 = vmatprep.subr.bf16.mxu1 %v4892_v50  ;;  %v5611_v50 = vld [vmem:[%s5377_s20 + $0x180] ss:$12 sps:$4 sm:$0xff]  }
  0x95   : > { %862 = vmatmul.mubr.bf16.gmra.mrb[12].mxu0 %v5457_v51  ;;  %4480 = vmatmul.mubr.bf16.gmra.mrb[12].mxu1 %v4891_v52  ;;  %v4964_v52 = vld [vmem:[#allocation6 + $0x1b0] sm:$0xff]  }
  0x96   : > { %4176 = vmatpush3.bf16.msra.mxu1 %v4893_v53  ;;  %869 = vmatprep.mubr.bf16.mxu0 %v5463_v54  ;;  %v4967_v53 = vld [vmem:[%s5377_s20 + $0x20] ss:$12 sps:$4 sm:$0xff]  }
  0x97   : > { %4177 = vmatprep.subr.bf16.mxu1 %v4894_v55  ;;  %1769 = vmatprep.mubr.bf16.mxu1 %v5425_v31  ;;  %v4944_v31 = vld [vmem:[#allocation6 + $0x188] sm:$0xff]   ;;  %v4965_v55 = vld [vmem:[#allocation6 + $0x1f8] sm:$0xff]  }
  0x98   : > { %4446 = vmatpush3.bf16.msra.mxu0 %v5406_v16  ;;  %v5541_v16 = vld [vmem:[%s5377_s20 + $0x10c] ss:$12 sps:$4 sm:$0xff]  }
  0x99   : > { %4447 = vmatprep.subr.bf16.mxu0 %v5410_v19 }
  0x9a   : > { %4178 = vmatpush3.bf16.msra.mxu1 %v4895_v56  ;;  %v4966_v56 = vld [vmem:[#allocation6 + $0x1b8] sm:$0xff]  }
  0x9b   : > { %4483 = vmatprep.subr.bf16.mxu1 %v4899_v57 }
  0x9c   : > { %4448 = vmatpush3.bf16.msra.mxu0 %v5410_v19  ;;  %v5558_v19 = vld [vmem:[%s5377_s20 + $0x120] ss:$12 sps:$4 sm:$0xff]  }
  0x9d   : > { %870 = vmatmul.mubr.bf16.gmra.mrb[16].mxu0 %v5471_v58  ;;  %1770 = vmatmul.mubr.bf16.vlgmr.msra.gmra.mrb[16].mxu1 %v5431_v34  ;;  %v4948_v34 = vld [vmem:[#allocation6 + $0x190] sm:$0xff]  }
  0x9e   : > { %4484 = vmatpush3.bf16.msra.mxu1 %v4899_v57  ;;  %877 = vmatprep.mubr.bf16.mxu0 %v5475_v59  ;;  %v4968_v57 = vld [vmem:[%s5377_s20 + $0x38] ss:$12 sps:$4 sm:$0xff]  }
  0x9f   : > { %1777 = vmatprep.mubr.bf16.mxu1 %v5436_v39  ;;  %4485 = vmatprep.subr.bf16.mxu1 %v4906_v60 }
  0xa0   : > { %4449 = vmatprep.subr.bf16.mxu0 %v5413_v22 }
  0xa1   : > { %4450 = vmatpush3.bf16.msra.mxu0 %v5413_v22  ;;  %v5571_v22 = vld [vmem:[%s5377_s20 + $0x154] ss:$12 sps:$4 sm:$0xff]  }
  0xa2   : > { %4486 = vmatpush3.bf16.msra.mxu1 %v4906_v60  ;;  %4299 = vmatprep.subr.bf16.mxu0 %v4940_v2  ;;  %v4970_v60 = vld [vmem:[%s5377_s20 + $0x50] ss:$12 sps:$4 sm:$0xff]   ;;  %v4973_v2 = vld [vmem:[%s5377_s20 + $0x80] ss:$12 sps:$4 sm:$0xff]  }
  0xa3   : > { %4487 = vmatprep.subr.bf16.mxu1 %v4913_v61 }
  0xa5   : > { %878 = vmatmul.mubr.bf16.gmra.mrb[20].mxu0 %v5484_v62  ;;  %1778 = vmatmul.mubr.bf16.gmra.mrb[20].mxu1 %v5444_v42 }
  0xa6   : > { %885 = vmatprep.mubr.bf16.mxu0 %v5488_v63  ;;  %1785 = vmatprep.mubr.bf16.mxu1 %v5450_v47 }
  0xa7   : > { %4488 = vmatpush3.bf16.msra.mxu1 %v4913_v61  ;;  %v4972_v61 = vld [vmem:[#allocation6 + $0x208] sm:$0xff]  }
  0xa8   : > { %4489 = vmatprep.subr.bf16.mxu1 %v4920_v0 }
  0xab   : > { %4490 = vmatpush3.bf16.msra.mxu1 %v4920_v0  ;;  %v4975_v0 = vld [vmem:[#allocation6 + $0x210] sm:$0xff]  }
  0xac   : > { %4491 = vmatprep.subr.bf16.mxu1 %v4927_v1 }
  0xad   : > { %886 = vmatmul.mubr.bf16.gmra.mrb[24].mxu0 %v5495_v3  ;;  %1786 = vmatmul.mubr.bf16.gmra.mrb[24].mxu1 %v5457_v51 }
  0xae   : > { %893 = vmatprep.mubr.bf16.mxu0 %v5498_v4  ;;  %1793 = vmatprep.mubr.bf16.mxu1 %v5463_v54 }
  0xaf   : > { %4492 = vmatpush3.bf16.msra.mxu1 %v4927_v1  ;;  %v4971_v1 = vld [vmem:[%s5377_s20 + $0x68] ss:$12 sps:$4 sm:$0xff]  }
  0xb0   : > { %4493 = vmatprep.subr.bf16.mxu1 %v4934_v5 }
  0xb3   : > { %4494 = vmatpush3.bf16.msra.mxu1 %v4934_v5  ;;  %v4976_v5 = vld [vmem:[%s5377_s20 + $0xb0] ss:$12 sps:$4 sm:$0xff]  }
  0xb4   : > { %4495 = vmatprep.subr.bf16.mxu1 %v4942_v6 }
  0xb5   : > { %894 = vmatmul.mubr.bf16.gmra.mrb[28].mxu0 %v5505_v7  ;;  %1794 = vmatmul.mubr.bf16.gmra.mrb[28].mxu1 %v5471_v58 }
  0xb6   : > { %901 = vmatprep.mubr.bf16.mxu0 %v5508_v8  ;;  %1801 = vmatprep.mubr.bf16.mxu1 %v5475_v59 }
  0xb7   : > { %4496 = vmatpush3.bf16.msra.mxu1 %v4942_v6  ;;  %v4984_v6 = vld [vmem:[#allocation6 + $0x228] sm:$0xff]  }
  0xb8   : > { %4497 = vmatprep.subr.bf16.mxu1 %v4955_v9 }
  0xbb   : > { %4498 = vmatpush3.bf16.msra.mxu1 %v4955_v9  ;;  %v4979_v9 = vld [vmem:[%s5377_s20 + $0xe0] ss:$12 sps:$4 sm:$0xff]  }
  0xbc   : > { %4531 = vmatprep.subr.bf16.mxu1 %v5530_v14 }
  0xbd   : > { %902 = vmatmul.mubr.bf16.gmra.mrb[32].mxu0 %v5515_v10  ;;  %1802 = vmatmul.mubr.bf16.gmra.mrb[32].mxu1 %v5484_v62 }
  0xbe   : > { %909 = vmatprep.mubr.bf16.mxu0 %v5518_v11  ;;  %1809 = vmatprep.mubr.bf16.mxu1 %v5488_v63 }
  0xc5   : > { %910 = vmatmul.mubr.bf16.gmra.mrb[36].mxu0 %v5525_v12  ;;  %1810 = vmatmul.mubr.bf16.gmra.mrb[36].mxu1 %v5495_v3 }
  0xc6   : > { %917 = vmatprep.mubr.bf16.mxu0 %v5528_v13  ;;  %1817 = vmatprep.mubr.bf16.mxu1 %v5498_v4 }
  0xcd   : > { %918 = vmatmul.mubr.bf16.gmra.mrb[40].mxu0 %v5538_v15  ;;  %1818 = vmatmul.mubr.bf16.gmra.mrb[40].mxu1 %v5505_v7 }
  0xce   : > { %925 = vmatprep.mubr.bf16.mxu0 %v5541_v16  ;;  %1825 = vmatprep.mubr.bf16.mxu1 %v5508_v8 }
  0xd5   : > { %926 = vmatmul.mubr.bf16.gmra.mrb[44].mxu0 %v5548_v17  ;;  %1826 = vmatmul.mubr.bf16.gmra.mrb[44].mxu1 %v5515_v10 }
  0xd6   : > { %933 = vmatprep.mubr.bf16.mxu0 %v5551_v18  ;;  %1833 = vmatprep.mubr.bf16.mxu1 %v5518_v11 }
  0xdd   : > { %934 = vmatmul.mubr.bf16.gmra.mrb[48].mxu0 %v5558_v19  ;;  %1834 = vmatmul.mubr.bf16.gmra.mrb[48].mxu1 %v5525_v12 }
  0xde   : > { %941 = vmatprep.mubr.bf16.mxu0 %v5561_v20  ;;  %1841 = vmatprep.mubr.bf16.mxu1 %v5528_v13 }
  0xe5   : > { %942 = vmatmul.mubr.bf16.gmra.mrb[52].mxu0 %v5568_v21  ;;  %1842 = vmatmul.mubr.bf16.gmra.mrb[52].mxu1 %v5538_v15 }
  0xe6   : > { %949 = vmatprep.mubr.bf16.mxu0 %v5571_v22  ;;  %1849 = vmatprep.mubr.bf16.mxu1 %v5541_v16 }
  0xed   : > { %950 = vmatmul.mubr.bf16.gmra.mrb[56].mxu0 %v5578_v23  ;;  %1850 = vmatmul.mubr.bf16.gmra.mrb[56].mxu1 %v5548_v17 }
  0xee   : > { %957 = vmatprep.mubr.bf16.mxu0 %v5581_v24  ;;  %1857 = vmatprep.mubr.bf16.mxu1 %v5551_v18 }
  0xf5   : > { %958 = vmatmul.mubr.bf16.gmra.mrb[60].mxu0 %v5588_v25  ;;  %1858 = vmatmul.mubr.bf16.gmra.mrb[60].mxu1 %v5558_v19 }
  0xf6   : > { %4451 = vmatprep.mubr.bf16.mxu0 %v4938_v26  ;;  %1865 = vmatprep.mubr.bf16.mxu1 %v5561_v20  ;;  %v4983_v26 = vld [vmem:[%s5377_s20 + $0x128] ss:$12 sps:$4 sm:$0xff]  }
  0xfd   : > { %4452 = vmatmul.mubr.bf16.vlgmr.msra.gmra.mrb[64].mxu0 %v4939_v27  ;;  %1866 = vmatmul.mubr.bf16.gmra.mrb[64].mxu1 %v5568_v21  ;;  %v4985_v27 = vld [vmem:[%s5377_s20 + $0x140] ss:$12 sps:$4 sm:$0xff]  }
  0xfe   : > { %4300 = vmatpush3.bf16.msra.mxu0 %v4941_v28  ;;  %4455 = vmatprep.mubr.bf16.mxu0 %v4945_v29  ;;  %v4989_v28 = vld [vmem:[%s5377_s20 + $0x188] ss:$12 sps:$4 sm:$0xff]  }
  0xff   : > { %4301 = vmatprep.subr.bf16.mxu0 %v4943_v30  ;;  %1873 = vmatprep.mubr.bf16.mxu1 %v5571_v22 }
 0x102   : > { %4302 = vmatpush3.bf16.msra.mxu0 %v4944_v31 }
 0x103   : > { %4303 = vmatprep.subr.bf16.mxu0 %v4947_v32 }
 0x105   : > { %4456 = vmatmul.mubr.bf16.gmra.mrb[68].mxu0 %v4946_v33  ;;  %1874 = vmatmul.mubr.bf16.gmra.mrb[68].mxu1 %v5578_v23 }
 0x106   : > { %4304 = vmatpush3.bf16.msra.mxu0 %v4948_v34  ;;  %4459 = vmatprep.mubr.bf16.mxu0 %v4951_v35  ;;  %v4993_v35 = vld [vmem:[%s5377_s20 + $0x68] ss:$12 sps:$4 sm:$0xff]  }
 0x107   : > { %4305 = vmatprep.subr.bf16.mxu0 %v4949_v36  ;;  %1881 = vmatprep.mubr.bf16.mxu1 %v5581_v24 }
 0x10a   : > { %4306 = vmatpush3.bf16.msra.mxu0 %v4950_v37 }
 0x10b   : > { %4307 = vmatprep.subr.bf16.mxu0 %v4953_v38  ;;  %v4994_v38 = vld [vmem:[%s5377_s20 + $0x80] ss:$12 sps:$4 sm:$0xff]  }
 0x10d   : > { %4460 = vmatmul.mubr.bf16.gmra.mrb[72].mxu0 %v4952_v40  ;;  %1882 = vmatmul.mubr.bf16.gmra.mrb[72].mxu1 %v5588_v25 }
 0x10e   : > { %4308 = vmatpush3.bf16.msra.mxu0 %v4954_v41  ;;  %4463 = vmatprep.mubr.bf16.mxu0 %v4958_v43  ;;  %v4995_v43 = vld [vmem:[%s5377_s20 + $0x98] ss:$12 sps:$4 sm:$0xff]  }
 0x10f   : > { %4309 = vmatprep.subr.bf16.mxu0 %v4956_v44  ;;  %1889 = vmatprep.mubr.bf16.mxu1 %v5605_v45 }
 0x112   : > { %4310 = vmatpush3.bf16.msra.mxu0 %v4957_v46 }
 0x113   : > { %4311 = vmatprep.subr.bf16.mxu0 %v4963_v48  ;;  %v4996_v48 = vld [vmem:[%s5377_s20 + $0xb0] ss:$12 sps:$4 sm:$0xff]  }
 0x115   : > { %4464 = vmatmul.mubr.bf16.gmra.mrb[76].mxu0 %v4961_v49  ;;  %1890 = vmatmul.mubr.bf16.gmra.mrb[76].mxu1 %v5611_v50 }
 0x116   : > { %4312 = vmatpush3.bf16.msra.mxu0 %v4964_v52  ;;  %4499 = vmatprep.mubr.bf16.mxu1 %v4967_v53  ;;  %v4997_v53 = vld [vmem:[%s5377_s20 + $0xc8] ss:$12 sps:$4 sm:$0xff]  }
 0x117   : > { %4313 = vmatprep.subr.bf16.mxu0 %v4965_v55  ;;  %2701 = vmatprep.mubr.bf16.mxu0 %v5436_v39  ;;  %v4978_v39 = vld [vmem:[#allocation6 + $0x218] sm:$0xff]  }
 0x11a   : > { %4314 = vmatpush3.bf16.msra.mxu0 %v4966_v56 }
 0x11d   : > { %4500 = vmatmul.mubr.bf16.vlgmr.msra.gmra.mrb[80].mxu1 %v4968_v57  ;;  %2702 = vmatmul.mubr.bf16.vlgmr.msra.gmra.mrb[80].mxu0 %v5444_v42  ;;  %v4981_v42 = vld [vmem:[#allocation6 + $0x220] sm:$0xff]  }
 0x11e   : > { %4532 = vmatpush3.bf16.msra.mxu1 %v5530_v14  ;;  %4503 = vmatprep.mubr.bf16.mxu1 %v4970_v60  ;;  %v4990_v14 = vld [vmem:[#allocation6 + $0x238] sm:$0xff]  }
 0x11f   : > { %2709 = vmatprep.mubr.bf16.mxu0 %v5450_v47  ;;  %4533 = vmatprep.subr.bf16.mxu1 %v4972_v61  ;;  %v4974_v47 = vld [vmem:[%s5377_s20 + $0x98] ss:$12 sps:$4 sm:$0xff]  }
 0x122   : > { %4534 = vmatpush3.bf16.msra.mxu1 %v4972_v61  ;;  %v4998_v61 = vld [vmem:[%s5377_s20 + $0xe0] ss:$12 sps:$4 sm:$0xff]  }
 0x123   : > { %4535 = vmatprep.subr.bf16.mxu1 %v4975_v0 }
 0x125   : > { %4504 = vmatmul.mubr.bf16.gmra.mrb[84].mxu1 %v4971_v1  ;;  %2710 = vmatmul.mubr.bf16.gmra.mrb[84].mxu0 %v5457_v51  ;;  %v4987_v51 = vld [vmem:[#allocation6 + $0x230] sm:$0xff]  }
 0x126   : > { %4507 = vmatprep.mubr.bf16.mxu1 %v4973_v2  ;;  %2717 = vmatprep.mubr.bf16.mxu0 %v5463_v54  ;;  %v4977_v54 = vld [vmem:[%s5377_s20 + $0xc8] ss:$12 sps:$4 sm:$0xff]  }
 0x127   : > { %4536 = vmatpush3.bf16.msra.mxu1 %v4975_v0 }
 0x128   : > { %4537 = vmatprep.subr.bf16.mxu1 %v4978_v39 }
 0x12b   : > { %4538 = vmatpush3.bf16.msra.mxu1 %v4978_v39 }
 0x12c   : > { %4539 = vmatprep.subr.bf16.mxu1 %v4981_v42 }
 0x12d   : > { %4508 = vmatmul.mubr.bf16.gmra.mrb[88].mxu1 %v4974_v47  ;;  %2718 = vmatmul.mubr.bf16.gmra.mrb[88].mxu0 %v5471_v58  ;;  %v4980_v58 = vld [vmem:[%s5377_s20 + $0xf8] ss:$12 sps:$4 sm:$0xff]  }
 0x12e   : > { %4511 = vmatprep.mubr.bf16.mxu1 %v4976_v5  ;;  %2725 = vmatprep.mubr.bf16.mxu0 %v5475_v59  ;;  %v4982_v59 = vld [vmem:[%s5377_s20 + $0x110] ss:$12 sps:$4 sm:$0xff]  }
 0x12f   : > { %4540 = vmatpush3.bf16.msra.mxu1 %v4981_v42  ;;  %v4999_v42 = vld [vmem:[%s5377_s20 + $0xf8] ss:$12 sps:$4 sm:$0xff]  }
 0x130   : > { %4541 = vmatprep.subr.bf16.mxu1 %v4984_v6 }
 0x133   : > { %4542 = vmatpush3.bf16.msra.mxu1 %v4984_v6 }
 0x134   : > { %4543 = vmatprep.subr.bf16.mxu1 %v4987_v51 }
 0x135   : > { %4512 = vmatmul.mubr.bf16.gmra.mrb[92].mxu1 %v4977_v54  ;;  %2726 = vmatmul.mubr.bf16.gmra.mrb[92].mxu0 %v5484_v62  ;;  %v4986_v62 = vld [vmem:[%s5377_s20 + $0x158] ss:$12 sps:$4 sm:$0xff]  }
 0x136   : > { %4515 = vmatprep.mubr.bf16.mxu1 %v4979_v9  ;;  %2733 = vmatprep.mubr.bf16.mxu0 %v5488_v63  ;;  %v4988_v63 = vld [vmem:[%s5377_s20 + $0x170] ss:$12 sps:$4 sm:$0xff]  }
 0x137   : > { %4544 = vmatpush3.bf16.msra.mxu1 %v4987_v51 }
 0x138   : > { %4545 = vmatprep.subr.bf16.mxu1 %v4990_v14 }
 0x13b   : > { %4546 = vmatpush3.bf16.msra.mxu1 %v4990_v14  ;;  %v5000_v14 = vld [vmem:[%s5377_s20 + $0x110] ss:$12 sps:$4 sm:$0xff]  }
 0x13d   : > { %4516 = vmatmul.mubr.bf16.gmra.mrb[0].mxu1 %v4980_v58  ;;  %2734 = vmatmul.mubr.bf16.gmra.mrb[96].mxu0 %v5495_v3 }
 0x13e   : > { %4519 = vmatprep.mubr.bf16.mxu1 %v4982_v59  ;;  %2741 = vmatprep.mubr.bf16.mxu0 %v5498_v4 }
 0x145   : > { %4520 = vmatmul.mubr.bf16.gmra.mrb[4].mxu1 %v4983_v26  ;;  %2742 = vmatmul.mubr.bf16.gmra.mrb[100].mxu0 %v5505_v7  ;;  %v4991_v7 = vld [vmem:[%s5377_s20 + $0x38] ss:$12 sps:$4 sm:$0xff]  }
 0x146   : > { %4523 = vmatprep.mubr.bf16.mxu1 %v4985_v27  ;;  %2749 = vmatprep.mubr.bf16.mxu0 %v5508_v8 }
 0x14d   : > { %4524 = vmatmul.mubr.bf16.gmra.mrb[8].mxu1 %v4986_v62  ;;  %2750 = vmatmul.mubr.bf16.gmra.mrb[104].mxu0 %v5515_v10  ;;  %v5001_v62 = vld [vmem:[%s5377_s20 + $0x128] ss:$12 sps:$4 sm:$0xff]  }
 0x14e   : > { %4527 = vmatprep.mubr.bf16.mxu1 %v4988_v63  ;;  %2757 = vmatprep.mubr.bf16.mxu0 %v5518_v11  ;;  %v4992_v11 = vld [vmem:[%s5377_s20 + $0x50] ss:$12 sps:$4 sm:$0xff]  }
 0x150   : > { %v4043_v3 = vpop.f32.mrb[0].mxu0 }
 0x151   : > { %v4044_v4 = vpop.f32.mrb[1].mxu0 }
 0x152   : > { %v5646_v29 = vadd.f32 %v4044_v4, %v4043_v3  ;;  %v4046_v30 = vpop.f32.mrb[2].mxu0 }
 0x153   : > { %v4047_v31 = vpop.f32.mrb[3].mxu0 }
 0x154   : > { %v5649_v32 = vadd.f32 %v4047_v31, %v4046_v30  ;;  %v5002_v31 = vld [vmem:[%s5377_s20 + $0x140] ss:$12 sps:$4 sm:$0xff]  }
 0x155   : > { %4528 = vmatmul.mubr.bf16.gmra.mrb[12].mxu1 %v4989_v28  ;;  %2758 = vmatmul.mubr.bf16.gmra.mrb[108].mxu0 %v5525_v12 }
 0x156   : > { %2765 = vmatprep.mubr.bf16.mxu0 %v5528_v13  ;;  %4547 = vmatprep.mubr.bf16.mxu1 %v4991_v7 }
 0x158   : > { %v4049_v8 = vpop.f32.mrb[4].mxu0 }
 0x159   : > { %v4050_v10 = vpop.f32.mrb[5].mxu0 }
 0x15a   : > { %v5654_v33 = vadd.f32 %v4050_v10, %v4049_v8  ;;  %v4052_v34 = vpop.f32.mrb[6].mxu0 }
 0x15b   : > { %v4053_v36 = vpop.f32.mrb[7].mxu0 }
 0x15c   : > { %v5657_v37 = vadd.f32 %v4053_v36, %v4052_v34 }
 0x15d   : > { %2766 = vmatmul.mubr.bf16.gmra.mrb[112].mxu0 %v5538_v15  ;;  %4548 = vmatmul.mubr.bf16.vlgmr.msra.gmra.mrb[80].mxu1 %v4992_v11 }
 0x15e   : > { %2773 = vmatprep.mubr.bf16.mxu0 %v5541_v16  ;;  %4551 = vmatprep.mubr.bf16.mxu1 %v4993_v35  ;;  %v5003_v35 = vld [vmem:[%s5377_s20 + $0x158] ss:$12 sps:$4 sm:$0xff]  }
 0x160   : > { %v4055_v12 = vpop.f32.mrb[8].mxu0 }
 0x161   : > { %v4056_v13 = vpop.f32.mrb[9].mxu0 }
 0x162   : > { %v5662_v40 = vadd.f32 %v4056_v13, %v4055_v12  ;;  %v4058_v41 = vpop.f32.mrb[10].mxu0 }
 0x163   : > { %v4059_v44 = vpop.f32.mrb[11].mxu0 }
 0x164   : > { %v5665_v46 = vadd.f32 %v4059_v44, %v4058_v41  ;;  %v5004_v44 = vld [vmem:[%s5377_s20 + $0x170] ss:$12 sps:$4 sm:$0xff]  }
 0x165   : > { %2774 = vmatmul.mubr.bf16.gmra.mrb[116].mxu0 %v5548_v17  ;;  %4552 = vmatmul.mubr.bf16.gmra.mrb[84].mxu1 %v4994_v38 }
 0x166   : > { %2781 = vmatprep.mubr.bf16.mxu0 %v5551_v18  ;;  %4555 = vmatprep.mubr.bf16.mxu1 %v4995_v43 }
 0x168   : > { %v4061_v15 = vpop.f32.mrb[12].mxu0 }
 0x169   : > { %v4062_v16 = vpop.f32.mrb[13].mxu0 }
 0x16a   : > { %v5670_v49 = vadd.f32 %v4062_v16, %v4061_v15  ;;  %v4064_v52 = vpop.f32.mrb[14].mxu0 }
 0x16b   : > { %v4065_v55 = vpop.f32.mrb[15].mxu0 }
 0x16c   : > { %v5673_v56 = vadd.f32 %v4065_v55, %v4064_v52  ;;  %v5007_v55 = vld [vmem:[%s5377_s20 + $0x188] ss:$12 sps:$4 sm:$0xff]  }
 0x16d   : > { %2782 = vmatmul.mubr.bf16.gmra.mrb[120].mxu0 %v5558_v19  ;;  %4556 = vmatmul.mubr.bf16.gmra.mrb[88].mxu1 %v4996_v48 }
 0x16e   : > { %2789 = vmatprep.mubr.bf16.mxu0 %v5561_v20  ;;  %4559 = vmatprep.mubr.bf16.mxu1 %v4997_v53  ;;  %v5005_v53 = vld [vmem:[%s5377_s20 + $0x19c] ss:$12 sps:$4 sm:$0xff]  }
 0x170   : > { %v4067_v17 = vpop.f32.mrb[16].mxu0  ;;  %v4179_v18 = vpop.f32.mrb[16].mxu1 }
 0x171   : > { %v4068_v57 = vpop.f32.mrb[17].mxu0  ;;  %v4180_v60 = vpop.f32.mrb[17].mxu1 }
 0x172   : > { %v5678_v0 = vadd.f32 %v4068_v57, %v4067_v17  ;;  %v4070_v1 = vpop.f32.mrb[18].mxu0  ;;  %v5680_v2 = vadd.f32 %v4180_v60, %v4179_v18  ;;  %v4182_v39 = vpop.f32.mrb[18].mxu1 }
 0x173   : > { %v4071_v47 = vpop.f32.mrb[19].mxu0  ;;  %v4183_v5 = vpop.f32.mrb[19].mxu1 }
 0x174   : > { %v5683_v19 = vadd.f32 %v4071_v47, %v4070_v1  ;;  %v5685_v20 = vadd.f32 %v4183_v5, %v4182_v39  ;;  %v5008_v39 = vld [vmem:[%s5377_s20 + $0x198] ss:$12 sps:$4 sm:$0xff]  }
 0x175   : > { %2790 = vmatmul.mubr.bf16.gmra.mrb[124].mxu0 %v5568_v21  ;;  %4560 = vmatmul.mubr.bf16.gmra.mrb[92].mxu1 %v4998_v61 }
 0x176   : > { %2797 = vmatprep.mubr.bf16.mxu0 %v5571_v22  ;;  %4563 = vmatprep.mubr.bf16.mxu1 %v4999_v42  ;;  %v5009_v42 = vld [vmem:[%s5377_s20 + $0x1a0] ss:$12 sps:$4 sm:$0xff]  }
 0x178   : > { %v4073_v6 = vpop.f32.mrb[20].mxu0  ;;  %v4185_v51 = vpop.f32.mrb[20].mxu1 }
 0x179   : > { %v4074_v54 = vpop.f32.mrb[21].mxu0  ;;  %v4186_v9 = vpop.f32.mrb[21].mxu1 }
 0x17a   : > { %v5690_v58 = vadd.f32 %v4074_v54, %v4073_v6  ;;  %v4076_v59 = vpop.f32.mrb[22].mxu0  ;;  %v5692_v26 = vadd.f32 %v4186_v9, %v4185_v51  ;;  %v4188_v27 = vpop.f32.mrb[22].mxu1 }
 0x17b   : > { %v4077_v63 = vpop.f32.mrb[23].mxu0  ;;  %v4189_v3 = vpop.f32.mrb[23].mxu1 }
 0x17c   : > { %v5695_v21 = vadd.f32 %v4077_v63, %v4076_v59  ;;  %v5697_v22 = vadd.f32 %v4189_v3, %v4188_v27 }
 0x17d   : > { %2798 = vmatmul.mubr.bf16.gmra.mrb[128].mxu0 %v5578_v23  ;;  %4564 = vmatmul.mubr.bf16.gmra.mrb[0].mxu1 %v5000_v14 }
 0x17e   : > { %2805 = vmatprep.mubr.bf16.mxu0 %v5581_v24  ;;  %4567 = vmatprep.mubr.bf16.mxu1 %v5001_v62 }
 0x180   : > { %v4079_v4 = vpop.f32.mrb[24].mxu0  ;;  %v4191_v28 = vpop.f32.mrb[24].mxu1 }
 0x181   : > { %v4080_v30 = vpop.f32.mrb[25].mxu0  ;;  %v4192_v7 = vpop.f32.mrb[25].mxu1 }
 0x182   : > { %v5702_v8 = vadd.f32 %v4080_v30, %v4079_v4  ;;  %v4082_v10 = vpop.f32.mrb[26].mxu0  ;;  %v5704_v11 = vadd.f32 %v4192_v7, %v4191_v28  ;;  %v4194_v34 = vpop.f32.mrb[26].mxu1 }
 0x183   : > { %v4083_v36 = vpop.f32.mrb[27].mxu0  ;;  %v4195_v12 = vpop.f32.mrb[27].mxu1 }
 0x184   : > { %v5707_v23 = vadd.f32 %v4083_v36, %v4082_v10  ;;  %v5709_v24 = vadd.f32 %v4195_v12, %v4194_v34 }
 0x185   : > { %2806 = vmatmul.mubr.bf16.gmra.mrb[132].mxu0 %v5588_v25  ;;  %4568 = vmatmul.mubr.bf16.gmra.mrb[4].mxu1 %v5002_v31 }
 0x186   : > { %2813 = vmatprep.mubr.bf16.mxu0 %v5605_v45  ;;  %4571 = vmatprep.mubr.bf16.mxu1 %v5003_v35 }
 0x188   : > { %v4085_v13 = vpop.f32.mrb[28].mxu0  ;;  %v4197_v38 = vpop.f32.mrb[28].mxu1 }
 0x189   : > { %v4086_v41 = vpop.f32.mrb[29].mxu0  ;;  %v4198_v43 = vpop.f32.mrb[29].mxu1 }
 0x18a   : > { %v5714_v15 = vadd.f32 %v4086_v41, %v4085_v13  ;;  %v4088_v16 = vpop.f32.mrb[30].mxu0  ;;  %v5716_v48 = vadd.f32 %v4198_v43, %v4197_v38  ;;  %v4200_v52 = vpop.f32.mrb[30].mxu1 }
 0x18b   : > { %v4089_v25 = vpop.f32.mrb[31].mxu0  ;;  %v4201_v17 = vpop.f32.mrb[31].mxu1 }
 0x18c   : > { %v5720_v18 = vadd.f32 %v4089_v25, %v4088_v16  ;;  %v5722_v45 = vadd.f32 %v4201_v17, %v4200_v52 }
 0x18d   : > { %2814 = vmatmul.mubr.bf16.gmra.mrb[136].mxu0 %v5611_v50  ;;  %4572 = vmatmul.mubr.bf16.gmra.mrb[8].mxu1 %v5004_v44 }
 0x18e   : > { %2821 = vmatprep.mubr.bf16.mxu0 %v5005_v53  ;;  %4575 = vmatprep.mubr.bf16.mxu1 %v5007_v55 }
 0x190   : > { %v4091_v57 = vpop.f32.mrb[32].mxu0  ;;  %v4203_v60 = vpop.f32.mrb[32].mxu1 }
 0x191   : > { %v4092_v61 = vpop.f32.mrb[33].mxu0  ;;  %v4204_v1 = vpop.f32.mrb[33].mxu1 }
 0x192   : > { %v4093_v47 = vadd.f32 %v4092_v61, %v4091_v57  ;;  %v4094_v5 = vpop.f32.mrb[34].mxu0  ;;  %v5727_v6 = vadd.f32 %v4204_v1, %v4203_v60  ;;  %v4206_v51 = vpop.f32.mrb[34].mxu1 }
 0x193   : > { %v4095_v54 = vpop.f32.mrb[35].mxu0  ;;  %v4207_v9 = vpop.f32.mrb[35].mxu1 }
 0x194   : > { %v4096_v14 = vadd.f32 %v4095_v54, %v4094_v5  ;;  %v5729_v59 = vadd.f32 %v4207_v9, %v4206_v51 }
 0x195   : > { %2822 = vmatmul.mubr.bf16.gmra.mrb[140].mxu0 %v5008_v39  ;;  %4576 = vmatmul.mubr.bf16.gmra.mrb[12].mxu1 %v5009_v42 }
 0x198   : > { %v4097_v50 = vpop.f32.mrb[36].mxu0  ;;  %v4209_v27 = vpop.f32.mrb[36].mxu1 }
 0x199   : > { %v4098_v62 = vpop.f32.mrb[37].mxu0  ;;  %v4210_v63 = vpop.f32.mrb[37].mxu1 }
 0x19a   : > { %v4099_v3 = vadd.f32 %v4098_v62, %v4097_v50  ;;  %v4100_v4 = vpop.f32.mrb[38].mxu0  ;;  %v5731_v28 = vadd.f32 %v4210_v63, %v4209_v27  ;;  %v4212_v30 = vpop.f32.mrb[38].mxu1 }
 0x19b   : > { %v4101_v7 = vpop.f32.mrb[39].mxu0  ;;  %v4213_v31 = vpop.f32.mrb[39].mxu1 }
 0x19c   : > { %v4102_v10 = vadd.f32 %v4101_v7, %v4100_v4  ;;  %v5733_v34 = vadd.f32 %v4213_v31, %v4212_v30 }
 0x1a0   : > { %v4103_v35 = vpop.f32.mrb[40].mxu0  ;;  %v4215_v36 = vpop.f32.mrb[40].mxu1 }
 0x1a1   : > { %v4104_v12 = vpop.f32.mrb[41].mxu0  ;;  %v4216_v13 = vpop.f32.mrb[41].mxu1 }
 0x1a2   : > { %v4105_v38 = vadd.f32 %v4104_v12, %v4103_v35  ;;  %v4106_v41 = vpop.f32.mrb[42].mxu0  ;;  %v5735_v43 = vadd.f32 %v4216_v13, %v4215_v36  ;;  %v4218_v44 = vpop.f32.mrb[42].mxu1 }
 0x1a3   : > { %v4107_v16 = vpop.f32.mrb[43].mxu0  ;;  %v4219_v52 = vpop.f32.mrb[43].mxu1 }
 0x1a4   : > { %v4108_v53 = vadd.f32 %v4107_v16, %v4106_v41  ;;  %v5737_v55 = vadd.f32 %v4219_v52, %v4218_v44 }
 0x1a8   : > { %v4109_v25 = vpop.f32.mrb[44].mxu0  ;;  %v4221_v17 = vpop.f32.mrb[44].mxu1 }
 0x1a9   : > { %v4110_v57 = vpop.f32.mrb[45].mxu0  ;;  %v4222_v60 = vpop.f32.mrb[45].mxu1 }
 0x1aa   : > { %v4111_v61 = vadd.f32 %v4110_v57, %v4109_v25  ;;  %v4112_v1 = vpop.f32.mrb[46].mxu0  ;;  %v5739_v39 = vadd.f32 %v4222_v60, %v4221_v17  ;;  %v4224_v42 = vpop.f32.mrb[46].mxu1 }
 0x1ab   : > { %v4113_v5 = vpop.f32.mrb[47].mxu0  ;;  %v4225_v51 = vpop.f32.mrb[47].mxu1 }
 0x1ac   : > { %v4114_v54 = vadd.f32 %v4113_v5, %v4112_v1  ;;  %v5741_v9 = vadd.f32 %v4225_v51, %v4224_v42 }
 0x1b0   : > { %v4115_v50 = vpop.f32.mrb[48].mxu0  ;;  %v4227_v27 = vpop.f32.mrb[48].mxu1 }
 0x1b1   : > { %v4116_v62 = vpop.f32.mrb[49].mxu0  ;;  %v4228_v63 = vpop.f32.mrb[49].mxu1 }
 0x1b2   : > { %v5743_v4 = vadd.f32 %v4116_v62, %v4115_v50  ;;  %v4229_v30 = vadd.f32 %v4228_v63, %v4227_v27  ;;  %v4118_v7 = vpop.f32.mrb[50].mxu0  ;;  %v4230_v31 = vpop.f32.mrb[50].mxu1 }
 0x1b3   : > { %v4119_v35 = vpop.f32.mrb[51].mxu0  ;;  %v4231_v36 = vpop.f32.mrb[51].mxu1 }
 0x1b4   : > { %v5745_v12 = vadd.f32 %v4229_v30, %v4093_v47  ;;  %v5747_v13 = vadd.f32 %v4119_v35, %v4118_v7  ;;  %v4232_v41 = vadd.f32 %v4231_v36, %v4230_v31 }
 0x1b6   : > { %v5749_v44 = vadd.f32 %v4232_v41, %v4096_v14 }
 0x1b8   : > { %v4121_v16 = vpop.f32.mrb[52].mxu0  ;;  %v4233_v52 = vpop.f32.mrb[52].mxu1 }
 0x1b9   : > { %v4122_v25 = vpop.f32.mrb[53].mxu0  ;;  %v4234_v17 = vpop.f32.mrb[53].mxu1 }
 0x1ba   : > { %v5751_v57 = vadd.f32 %v4122_v25, %v4121_v16  ;;  %v4235_v60 = vadd.f32 %v4234_v17, %v4233_v52  ;;  %v4124_v1 = vpop.f32.mrb[54].mxu0  ;;  %v4236_v42 = vpop.f32.mrb[54].mxu1 }
 0x1bb   : > { %v4125_v5 = vpop.f32.mrb[55].mxu0  ;;  %v4237_v51 = vpop.f32.mrb[55].mxu1 }
 0x1bc   : > { %v5753_v50 = vadd.f32 %v4235_v60, %v4099_v3  ;;  %v5755_v47 = vadd.f32 %v4125_v5, %v4124_v1  ;;  %v4238_v27 = vadd.f32 %v4237_v51, %v4236_v42 }
 0x1be   : > { %v5757_v62 = vadd.f32 %v4238_v27, %v4102_v10 }
 0x1c0   : > { %6251 = vst [vmem:[#allocation16_spill] sm:$0xff] %v5757_v62  ;;  %v4127_v14 = vpop.f32.mrb[56].mxu0  ;;  %v4239_v63 = vpop.f32.mrb[56].mxu1 }
 0x1c1   : > { %v4128_v30 = vpop.f32.mrb[57].mxu0  ;;  %v4240_v7 = vpop.f32.mrb[57].mxu1 }
 0x1c2   : > { %v5759_v31 = vadd.f32 %v4128_v30, %v4127_v14  ;;  %v4241_v35 = vadd.f32 %v4240_v7, %v4239_v63  ;;  %v4130_v36 = vpop.f32.mrb[58].mxu0  ;;  %v4242_v41 = vpop.f32.mrb[58].mxu1 }
 0x1c3   : > { %v4131_v16 = vpop.f32.mrb[59].mxu0  ;;  %v4243_v52 = vpop.f32.mrb[59].mxu1 }
 0x1c4   : > { %v5761_v25 = vadd.f32 %v4241_v35, %v4105_v38  ;;  %v5763_v3 = vadd.f32 %v4131_v16, %v4130_v36  ;;  %v4244_v17 = vadd.f32 %v4243_v52, %v4242_v41 }
 0x1c6   : > { %v5765_v60 = vadd.f32 %v4244_v17, %v4108_v53 }
 0x1c8   : > { %6252 = vst [vmem:[#allocation17_spill] sm:$0xff] %v5765_v60  ;;  %v4133_v10 = vpop.f32.mrb[60].mxu0  ;;  %v4245_v1 = vpop.f32.mrb[60].mxu1 }
 0x1c9   : > { %v4134_v42 = vpop.f32.mrb[61].mxu0  ;;  %v4246_v5 = vpop.f32.mrb[61].mxu1 }
 0x1ca   : > { %v5767_v51 = vadd.f32 %v4134_v42, %v4133_v10  ;;  %v4247_v27 = vadd.f32 %v4246_v5, %v4245_v1  ;;  %v4136_v14 = vpop.f32.mrb[62].mxu0  ;;  %v4248_v63 = vpop.f32.mrb[62].mxu1 }
 0x1cb   : > { %v4137_v30 = vpop.f32.mrb[63].mxu0  ;;  %v4249_v7 = vpop.f32.mrb[63].mxu1 }
 0x1cc   : > { %v5769_v62 = vadd.f32 %v4247_v27, %v4111_v61  ;;  %v5771_v38 = vadd.f32 %v4137_v30, %v4136_v14  ;;  %v4250_v35 = vadd.f32 %v4249_v7, %v4248_v63 }
 0x1ce   : > { %v5773_v36 = vadd.f32 %v4250_v35, %v4114_v54 }
 0x1d0   : > { %v4453_v53 = vpop.f32.mrb[64].mxu0  ;;  %v4251_v41 = vpop.f32.mrb[64].mxu1 }
 0x1d1   : > { %v1009_v16 = vadd.f32 %v4453_v53, %v5654_v33  ;;  %v1000_v52 = vpop.f32.mrb[65].mxu0  ;;  %v4252_v17 = vpop.f32.mrb[65].mxu1 }
 0x1d2   : > { %v1001_v10 = vadd.f32 %v5646_v29, %v1000_v52  ;;  %v4253_v1 = vadd.f32 %v4252_v17, %v4251_v41  ;;  %v4454_v42 = vpop.f32.mrb[66].mxu0  ;;  %v4254_v5 = vpop.f32.mrb[66].mxu1 }
 0x1d3   : > { %v5778_v60 = vadd.f32 %v5692_v26, %v1009_v16  ;;  %v1012_v61 = vadd.f32 %v4454_v42, %v5657_v37  ;;  %v1003_v27 = vpop.f32.mrb[67].mxu0  ;;  %v4255_v14 = vpop.f32.mrb[67].mxu1 }
 0x1d4   : > { %v5782_v54 = vadd.f32 %v5680_v2, %v1001_v10  ;;  %v5785_v63 = vadd.f32 %v4253_v1, %v5743_v4  ;;  %v1004_v33 = vadd.f32 %v5649_v32, %v1003_v27  ;;  %v4256_v30 = vadd.f32 %v4255_v14, %v4254_v5 }
 0x1d5   : > { %v5789_v29 = vadd.f32 %v5697_v22, %v1012_v61 }
 0x1d6   : > { %v5792_v7 = vadd.f32 %v5685_v20, %v1004_v33  ;;  %v5795_v26 = vadd.f32 %v4256_v30, %v5747_v13 }
 0x1d8   : > { %v4457_v37 = vpop.f32.mrb[68].mxu0  ;;  %v4257_v35 = vpop.f32.mrb[68].mxu1 }
 0x1d9   : > { %v1025_v2 = vadd.f32 %v4457_v37, %v5670_v49  ;;  %v1016_v53 = vpop.f32.mrb[69].mxu0  ;;  %v4258_v41 = vpop.f32.mrb[69].mxu1 }
 0x1da   : > { %v1017_v4 = vadd.f32 %v5662_v40, %v1016_v53  ;;  %v4259_v16 = vadd.f32 %v4258_v41, %v4257_v35  ;;  %v4458_v32 = vpop.f32.mrb[70].mxu0  ;;  %v4260_v52 = vpop.f32.mrb[70].mxu1 }
 0x1db   : > { %v5800_v22 = vadd.f32 %v5716_v48, %v1025_v2  ;;  %v1028_v20 = vadd.f32 %v4458_v32, %v5673_v56  ;;  %v1019_v17 = vpop.f32.mrb[71].mxu0  ;;  %v4261_v10 = vpop.f32.mrb[71].mxu1 }
 0x1dc   : > { %v5804_v13 = vadd.f32 %v5704_v11, %v1017_v4  ;;  %v5807_v1 = vadd.f32 %v4259_v16, %v5751_v57  ;;  %v1020_v49 = vadd.f32 %v5665_v46, %v1019_v17  ;;  %v4262_v42 = vadd.f32 %v4261_v10, %v4260_v52 }
 0x1dd   : > { %v5811_v40 = vadd.f32 %v5722_v45, %v1028_v20 }
 0x1de   : > { %v5814_v5 = vadd.f32 %v5709_v24, %v1020_v49  ;;  %v5817_v48 = vadd.f32 %v4262_v42, %v5755_v47 }
 0x1e0   : > { %v4461_v56 = vpop.f32.mrb[72].mxu0  ;;  %v4263_v61 = vpop.f32.mrb[72].mxu1 }
 0x1e1   : > { %v1041_v11 = vadd.f32 %v4461_v56, %v5690_v58  ;;  %v1032_v27 = vpop.f32.mrb[73].mxu0  ;;  %v4264_v14 = vpop.f32.mrb[73].mxu1 }
 0x1e2   : > { %v1033_v57 = vadd.f32 %v5678_v0, %v1032_v27  ;;  %v4265_v33 = vadd.f32 %v4264_v14, %v4263_v61  ;;  %v4462_v46 = vpop.f32.mrb[74].mxu0  ;;  %v4266_v30 = vpop.f32.mrb[74].mxu1 }
 0x1e3   : > { %v5822_v45 = vadd.f32 %v5731_v28, %v1041_v11  ;;  %v1044_v24 = vadd.f32 %v4462_v46, %v5695_v21  ;;  %v1035_v37 = vpop.f32.mrb[75].mxu0  ;;  %v4267_v35 = vpop.f32.mrb[75].mxu1 }
 0x1e4   : > { %v5826_v47 = vadd.f32 %v5727_v6, %v1033_v57  ;;  %v5829_v2 = vadd.f32 %v4265_v33, %v5759_v31  ;;  %v1036_v58 = vadd.f32 %v5683_v19, %v1035_v37  ;;  %v4268_v53 = vadd.f32 %v4267_v35, %v4266_v30 }
 0x1e5   : > { %v5833_v0 = vadd.f32 %v5733_v34, %v1044_v24 }
 0x1e6   : > { %v4640_v41 = vadd.f32 %v5729_v59, %v1036_v58  ;;  %v5837_v28 = vadd.f32 %v4268_v53, %v5763_v3 }
 0x1e8   : > { %v4465_v21 = vpop.f32.mrb[76].mxu0  ;;  %v4269_v4 = vpop.f32.mrb[76].mxu1 }
 0x1e9   : > { %v1057_v16 = vadd.f32 %v4465_v21, %v5714_v15  ;;  %v1048_v6 = vpop.f32.mrb[77].mxu0  ;;  %v4270_v32 = vpop.f32.mrb[77].mxu1 }
 0x1ea   : > { %v1049_v31 = vadd.f32 %v5702_v8, %v1048_v6  ;;  %v4271_v52 = vadd.f32 %v4270_v32, %v4269_v4  ;;  %v4466_v20 = vpop.f32.mrb[78].mxu0  ;;  %v4272_v19 = vpop.f32.mrb[78].mxu1 }
 0x1eb   : > { %v5842_v17 = vadd.f32 %v5739_v39, %v1057_v16  ;;  %v1060_v34 = vadd.f32 %v4466_v20, %v5720_v18  ;;  %v1051_v59 = vpop.f32.mrb[79].mxu0  ;;  %v4273_v10 = vpop.f32.mrb[79].mxu1 }
 0x1ec   : > { %v4648_v3 = vadd.f32 %v5735_v43, %v1049_v31  ;;  %v5847_v49 = vadd.f32 %v4271_v52, %v5767_v51  ;;  %v1052_v15 = vadd.f32 %v5707_v23, %v1051_v59  ;;  %v4274_v42 = vadd.f32 %v4273_v10, %v4272_v19 }
 0x1ed   : > { %v5851_v8 = vadd.f32 %v5741_v9, %v1060_v34 }
 0x1ee   : > { %v4656_v56 = vadd.f32 %v5737_v55, %v1052_v15  ;;  %v5855_v39 = vadd.f32 %v4274_v42, %v5771_v38 }
 0x1f0   : > { %v4315_v61 = vpop.f32.mrb[80].mxu0 }
 0x1f1   : > { %v4316_v18 = vpop.f32.mrb[81].mxu0 }
 0x1f2   : > { %v4317_v11 = vadd.f32 %v4316_v18, %v4315_v61  ;;  %v4318_v27 = vpop.f32.mrb[82].mxu0 }
 0x1f3   : > { %v4319_v14 = vpop.f32.mrb[83].mxu0 }
 0x1f4   : > { %v4320_v43 = vadd.f32 %v4319_v14, %v4318_v27  ;;  %v5858_v51 = vadd.f32 %v5782_v54, %v4317_v11 }
 0x1f6   : > { %v5861_v23 = vadd.f32 %v5792_v7, %v4320_v43 }
 0x1f8   : > { %v4321_v57 = vpop.f32.mrb[84].mxu0 }
 0x1f9   : > { %v4322_v9 = vpop.f32.mrb[85].mxu0 }
 0x1fa   : > { %v4323_v33 = vadd.f32 %v4322_v9, %v4321_v57  ;;  %v4324_v46 = vpop.f32.mrb[86].mxu0 }
 0x1fb   : > { %v4325_v55 = vpop.f32.mrb[87].mxu0 }
 0x1fc   : > { %v4326_v30 = vadd.f32 %v4325_v55, %v4324_v46  ;;  %v4597_v38 = vadd.f32 %v5778_v60, %v4323_v33 }
 0x1fe   : > { %v4605_v24 = vadd.f32 %v5789_v29, %v4326_v30 }
 0x200   : > { %v4327_v37 = vpop.f32.mrb[88].mxu0 }
 0x201   : > { %v4328_v35 = vpop.f32.mrb[89].mxu0 }
 0x202   : > { %v4329_v58 = vadd.f32 %v4328_v35, %v4327_v37  ;;  %v4330_v53 = vpop.f32.mrb[90].mxu0 }
 0x203   : > { %v4331_v21 = vpop.f32.mrb[91].mxu0 }
 0x204   : > { %v4332_v54 = vadd.f32 %v4331_v21, %v4330_v53  ;;  %v5866_v4 = vadd.f32 %v5804_v13, %v4329_v58 }
 0x206   : > { %v5869_v7 = vadd.f32 %v5814_v5, %v4332_v54 }
 0x208   : > { %v4333_v16 = vpop.f32.mrb[92].mxu0 }
 0x209   : > { %v4334_v6 = vpop.f32.mrb[93].mxu0 }
 0x20a   : > { %v4335_v32 = vadd.f32 %v4334_v6, %v4333_v16  ;;  %v4336_v31 = vpop.f32.mrb[94].mxu0 }
 0x20b   : > { %v4337_v52 = vpop.f32.mrb[95].mxu0 }
 0x20c   : > { %v4338_v60 = vadd.f32 %v4337_v52, %v4336_v31  ;;  %v4613_v29 = vadd.f32 %v5800_v22, %v4335_v32 }
 0x20e   : > { %v5873_v20 = vadd.f32 %v5811_v40, %v4338_v60 }
 0x210   : > { %v4339_v19 = vpop.f32.mrb[96].mxu0 }
 0x211   : > { %v4340_v34 = vpop.f32.mrb[97].mxu0 }
 0x212   : > { %v4341_v59 = vadd.f32 %v4340_v34, %v4339_v19  ;;  %v4342_v10 = vpop.f32.mrb[98].mxu0 }
 0x213   : > { %v4343_v13 = vpop.f32.mrb[99].mxu0 }
 0x214   : > { %v4344_v15 = vadd.f32 %v4343_v13, %v4342_v10  ;;  %v5876_v5 = vadd.f32 %v5826_v47, %v4341_v59 }
 0x216   : > { %v5878_v42 = vadd.f32 %v4640_v41, %v4344_v15 }
 0x218   : > { %v4345_v61 = vpop.f32.mrb[100].mxu0 }
 0x219   : > { %v4346_v18 = vpop.f32.mrb[101].mxu0 }
 0x21a   : > { %v4347_v11 = vadd.f32 %v4346_v18, %v4345_v61  ;;  %v4348_v27 = vpop.f32.mrb[102].mxu0 }
 0x21b   : > { %v4349_v14 = vpop.f32.mrb[103].mxu0 }
 0x21c   : > { %v4350_v22 = vadd.f32 %v4349_v14, %v4348_v27  ;;  %v4629_v40 = vadd.f32 %v5822_v45, %v4347_v11 }
 0x21e   : > { %v5882_v43 = vadd.f32 %v5833_v0, %v4350_v22 }
 0x220   : > { %v4351_v57 = vpop.f32.mrb[104].mxu0 }
 0x221   : > { %v4352_v9 = vpop.f32.mrb[105].mxu0 }
 0x222   : > { %v4353_v33 = vadd.f32 %v4352_v9, %v4351_v57  ;;  %v4354_v46 = vpop.f32.mrb[106].mxu0 }
 0x223   : > { %v4355_v55 = vpop.f32.mrb[107].mxu0 }
 0x224   : > { %v4356_v47 = vadd.f32 %v4355_v55, %v4354_v46  ;;  %v5884_v41 = vadd.f32 %v4648_v3, %v4353_v33 }
 0x226   : > { %v5886_v30 = vadd.f32 %v4656_v56, %v4356_v47  ;;  %v6253_v47 = vld [vmem:[#allocation16_spill] sm:$0xff] }
 0x228   : > { %v4357_v37 = vpop.f32.mrb[108].mxu0 }
 0x229   : > { %v4358_v35 = vpop.f32.mrb[109].mxu0 }
 0x22a   : > { %v4359_v58 = vadd.f32 %v4358_v35, %v4357_v37  ;;  %v4360_v53 = vpop.f32.mrb[110].mxu0 }
 0x22b   : > { %v4361_v21 = vpop.f32.mrb[111].mxu0 }
 0x22c   : > { %v4362_v45 = vadd.f32 %v4361_v21, %v4360_v53  ;;  %v5889_v0 = vadd.f32 %v5842_v17, %v4359_v58 }
 0x22e   : > { %v5892_v54 = vadd.f32 %v5851_v8, %v4362_v45 }
 0x230   : > { %v4363_v16 = vpop.f32.mrb[112].mxu0  ;;  %v4549_v6 = vpop.f32.mrb[80].mxu1 }
 0x231   : > { %v5894_v32 = vadd.f32 %v4597_v38, %v4549_v6  ;;  %v4364_v3 = vpop.f32.mrb[113].mxu0  ;;  %v2864_v31 = vpop.f32.mrb[81].mxu1 }
 0x232   : > { %v4365_v56 = vadd.f32 %v4364_v3, %v4363_v16  ;;  %v5898_v52 = vadd.f32 %v5858_v51, %v2864_v31  ;;  %v4366_v60 = vpop.f32.mrb[114].mxu0  ;;  %v4550_v19 = vpop.f32.mrb[82].mxu1 }
 0x233   : > { %v5900_v34 = vadd.f32 %v4605_v24, %v4550_v19  ;;  %v4367_v17 = vpop.f32.mrb[115].mxu0  ;;  %v2867_v59 = vpop.f32.mrb[83].mxu1 }
 0x234   : > { %v4368_v10 = vadd.f32 %v4367_v17, %v4366_v60  ;;  %v5903_v8 = vadd.f32 %v5861_v23, %v2867_v59  ;;  %v5906_v38 = vadd.f32 %v5745_v12, %v4365_v56  ;;  %v6254_v17 = vld [vmem:[#allocation17_spill] sm:$0xff] }
 0x235   : > { %v3940_v13 = vpack.c.bf16 %v5900_v34, %v5894_v32 }
 0x236   : > { %v3935_v51 = vpack.c.bf16 %v5903_v8, %v5898_v52  ;;  %v5913_v15 = vadd.f32 %v5749_v44, %v4368_v10 }
 0x237   : > { %4012 = vst [vmem:[%s5915_s23 + $0x8] sm:$0xff] %v3940_v13  }
 0x238   : > { %3936 = vst [vmem:[%s5915_s23] sm:$0xff] %v3935_v51   ;;  %v4369_v23 = vpop.f32.mrb[116].mxu0  ;;  %v4553_v24 = vpop.f32.mrb[84].mxu1 }
 0x239   : > { %v5919_v61 = vadd.f32 %v4613_v29, %v4553_v24  ;;  %v4370_v12 = vpop.f32.mrb[117].mxu0  ;;  %v2880_v18 = vpop.f32.mrb[85].mxu1 }
 0x23a   : > { %v4371_v11 = vadd.f32 %v4370_v12, %v4369_v23  ;;  %v5922_v27 = vadd.f32 %v5866_v4, %v2880_v18  ;;  %v4372_v44 = vpop.f32.mrb[118].mxu0  ;;  %v4554_v14 = vpop.f32.mrb[86].mxu1 }
 0x23b   : > { %v5925_v22 = vadd.f32 %v5873_v20, %v4554_v14  ;;  %v4373_v57 = vpop.f32.mrb[119].mxu0  ;;  %v2883_v9 = vpop.f32.mrb[87].mxu1 }
 0x23c   : > { %v4374_v33 = vadd.f32 %v4373_v57, %v4372_v44  ;;  %v5928_v46 = vadd.f32 %v5869_v7, %v2883_v9  ;;  %v4660_v29 = vadd.f32 %v5753_v50, %v4371_v11 }
 0x23d   : > { %v3950_v55 = vpack.c.bf16 %v5925_v22, %v5919_v61 }
 0x23e   : > { %v3945_v4 = vpack.c.bf16 %v5928_v46, %v5922_v27  ;;  %v4666_v37 = vadd.f32 %v6253_v47, %v4374_v33 }
 0x23f   : > { %4014 = vst [vmem:[%s5915_s23 + $0x18] sm:$0xff] %v3950_v55  }
 0x240   : > { %4013 = vst [vmem:[%s5915_s23 + $0x10] sm:$0xff] %v3945_v4   ;;  %v4375_v20 = vpop.f32.mrb[120].mxu0  ;;  %v4557_v35 = vpop.f32.mrb[88].mxu1 }
 0x241   : > { %v5938_v58 = vadd.f32 %v4629_v40, %v4557_v35  ;;  %v4376_v53 = vpop.f32.mrb[121].mxu0  ;;  %v2896_v7 = vpop.f32.mrb[89].mxu1 }
 0x242   : > { %v4377_v21 = vadd.f32 %v4376_v53, %v4375_v20  ;;  %v5941_v50 = vadd.f32 %v5876_v5, %v2896_v7  ;;  %v4378_v45 = vpop.f32.mrb[122].mxu0  ;;  %v4558_v16 = vpop.f32.mrb[90].mxu1 }
 0x243   : > { %v5944_v6 = vadd.f32 %v5882_v43, %v4558_v16  ;;  %v4379_v3 = vpop.f32.mrb[123].mxu0  ;;  %v2899_v31 = vpop.f32.mrb[91].mxu1 }
 0x244   : > { %v4380_v56 = vadd.f32 %v4379_v3, %v4378_v45  ;;  %v5947_v60 = vadd.f32 %v5878_v42, %v2899_v31  ;;  %v4675_v40 = vadd.f32 %v5761_v25, %v4377_v21 }
 0x245   : > { %v3960_v19 = vpack.c.bf16 %v5944_v6, %v5938_v58 }
 0x246   : > { %v3955_v5 = vpack.c.bf16 %v5947_v60, %v5941_v50  ;;  %v4681_v59 = vadd.f32 %v6254_v17, %v4380_v56 }
 0x247   : > { %4016 = vst [vmem:[%s5915_s23 + $0x28] sm:$0xff] %v3960_v19  }
 0x248   : > { %4015 = vst [vmem:[%s5915_s23 + $0x20] sm:$0xff] %v3955_v5   ;;  %v4381_v43 = vpop.f32.mrb[124].mxu0  ;;  %v4561_v10 = vpop.f32.mrb[92].mxu1 }
 0x249   : > { %v5958_v13 = vadd.f32 %v5889_v0, %v4561_v10  ;;  %v4382_v42 = vpop.f32.mrb[125].mxu0  ;;  %v2912_v51 = vpop.f32.mrb[93].mxu1 }
 0x24a   : > { %v4383_v25 = vadd.f32 %v4382_v42, %v4381_v43  ;;  %v5961_v23 = vadd.f32 %v5884_v41, %v2912_v51  ;;  %v4384_v24 = vpop.f32.mrb[126].mxu0  ;;  %v4562_v12 = vpop.f32.mrb[94].mxu1 }
 0x24b   : > { %v5964_v18 = vadd.f32 %v5892_v54, %v4562_v12  ;;  %v4385_v11 = vpop.f32.mrb[127].mxu0  ;;  %v2915_v44 = vpop.f32.mrb[95].mxu1 }
 0x24c   : > { %v4386_v14 = vadd.f32 %v4385_v11, %v4384_v24  ;;  %v5967_v57 = vadd.f32 %v5886_v30, %v2915_v44  ;;  %v4672_v0 = vadd.f32 %v5769_v62, %v4383_v25 }
 0x24d   : > { %v3970_v9 = vpack.c.bf16 %v5964_v18, %v5958_v13 }
 0x24e   : > { %v3965_v41 = vpack.c.bf16 %v5967_v57, %v5961_v23  ;;  %v4678_v33 = vadd.f32 %v5773_v36, %v4386_v14 }
 0x24f   : > { %4018 = vst [vmem:[%s5915_s23 + $0x38] sm:$0xff] %v3970_v9  }
 0x250   : > { %4017 = vst [vmem:[%s5915_s23 + $0x30] sm:$0xff] %v3965_v41   ;;  %v4387_v54 = vpop.f32.mrb[128].mxu0  ;;  %v4565_v55 = vpop.f32.mrb[0].mxu1 }
 0x251   : > { %v5977_v4 = vadd.f32 %v4660_v29, %v4565_v55  ;;  %v4388_v47 = vpop.f32.mrb[129].mxu0  ;;  %v2928_v30 = vpop.f32.mrb[1].mxu1 }
 0x252   : > { %v4389_v20 = vadd.f32 %v4388_v47, %v4387_v54  ;;  %v5980_v62 = vadd.f32 %v5906_v38, %v2928_v30  ;;  %v4390_v35 = vpop.f32.mrb[130].mxu0  ;;  %v4566_v53 = vpop.f32.mrb[2].mxu1 }
 0x253   : > { %v5982_v7 = vadd.f32 %v4666_v37, %v4566_v53  ;;  %v4391_v21 = vpop.f32.mrb[131].mxu0  ;;  %v2931_v36 = vpop.f32.mrb[3].mxu1 }
 0x254   : > { %v4392_v45 = vadd.f32 %v4391_v21, %v4390_v35  ;;  %v5985_v16 = vadd.f32 %v5913_v15, %v2931_v36  ;;  %v4687_v29 = vadd.f32 %v5785_v63, %v4389_v20 }
 0x255   : > { %v3980_v3 = vpack.c.bf16 %v5982_v7, %v5977_v4 }
 0x256   : > { %v3975_v31 = vpack.c.bf16 %v5985_v16, %v5980_v62  ;;  %v4693_v38 = vadd.f32 %v5795_v26, %v4392_v45 }
 0x257   : > { %4020 = vst [vmem:[%s5915_s23 + $0x48] sm:$0xff] %v3980_v3  }
 0x258   : > { %4019 = vst [vmem:[%s5915_s23 + $0x40] sm:$0xff] %v3975_v31   ;;  %v4393_v37 = vpop.f32.mrb[132].mxu0  ;;  %v4569_v56 = vpop.f32.mrb[4].mxu1 }
 0x259   : > { %v5995_v19 = vadd.f32 %v4672_v0, %v4569_v56  ;;  %v4394_v5 = vpop.f32.mrb[133].mxu0  ;;  %v2944_v15 = vpop.f32.mrb[5].mxu1 }
 0x25a   : > { %v4395_v17 = vadd.f32 %v4394_v5, %v4393_v37  ;;  %v5997_v63 = vadd.f32 %v4675_v40, %v2944_v15  ;;  %v4396_v43 = vpop.f32.mrb[134].mxu0  ;;  %v4570_v10 = vpop.f32.mrb[6].mxu1 }
 0x25b   : > { %v5999_v42 = vadd.f32 %v4678_v33, %v4570_v10  ;;  %v4397_v51 = vpop.f32.mrb[135].mxu0  ;;  %v2947_v25 = vpop.f32.mrb[7].mxu1 }
 0x25c   : > { %v4398_v26 = vadd.f32 %v4397_v51, %v4396_v43  ;;  %v6001_v24 = vadd.f32 %v4681_v59, %v2947_v25  ;;  %v4684_v12 = vadd.f32 %v5807_v1, %v4395_v17 }
 0x25d   : > { %v3990_v11 = vpack.c.bf16 %v5999_v42, %v5995_v19 }
 0x25e   : > { %v3985_v44 = vpack.c.bf16 %v6001_v24, %v5997_v63  ;;  %v4690_v40 = vadd.f32 %v5817_v48, %v4398_v26 }
 0x25f   : > { %4022 = vst [vmem:[%s5915_s23 + $0x58] sm:$0xff] %v3990_v11  }
 0x260   : > { %4021 = vst [vmem:[%s5915_s23 + $0x50] sm:$0xff] %v3985_v44   ;;  %v4399_v14 = vpop.f32.mrb[136].mxu0  ;;  %v4573_v0 = vpop.f32.mrb[8].mxu1 }
 0x261   : > { %v6011_v9 = vadd.f32 %v4684_v12, %v4573_v0  ;;  %v4400_v41 = vpop.f32.mrb[137].mxu0  ;;  %v2960_v59 = vpop.f32.mrb[9].mxu1 }
 0x262   : > { %v4401_v33 = vadd.f32 %v4400_v41, %v4399_v14  ;;  %v6013_v1 = vadd.f32 %v4687_v29, %v2960_v59  ;;  %v4402_v54 = vpop.f32.mrb[138].mxu0  ;;  %v4574_v55 = vpop.f32.mrb[10].mxu1 }
 0x263   : > { %v6015_v47 = vadd.f32 %v4690_v40, %v4574_v55  ;;  %v4403_v30 = vpop.f32.mrb[139].mxu0  ;;  %v2963_v20 = vpop.f32.mrb[11].mxu1 }
 0x264   : > { %v4404_v48 = vadd.f32 %v4403_v30, %v4402_v54  ;;  %v6017_v35 = vadd.f32 %v4693_v38, %v2963_v20  ;;  %v4699_v53 = vadd.f32 %v5829_v2, %v4401_v33 }
 0x265   : > { %v4000_v21 = vpack.c.bf16 %v6015_v47, %v6011_v9 }
 0x266   : > { %v3995_v36 = vpack.c.bf16 %v6017_v35, %v6013_v1  ;;  %v4705_v45 = vadd.f32 %v5837_v28, %v4404_v48 }
 0x267   : > { %4024 = vst [vmem:[%s5915_s23 + $0x68] sm:$0xff] %v4000_v21  }
 0x268   : > { %4023 = vst [vmem:[%s5915_s23 + $0x60] sm:$0xff] %v3995_v36   ;;  %v4405_v29 = vpop.f32.mrb[140].mxu0  ;;  %v4577_v3 = vpop.f32.mrb[12].mxu1 }
 0x269   : > { %v4406_v31 = vpop.f32.mrb[141].mxu0  ;;  %v2976_v37 = vpop.f32.mrb[13].mxu1 }
 0x26a   : > { %v4407_v38 = vadd.f32 %v4406_v31, %v4405_v29  ;;  %v6027_v56 = vadd.f32 %v4699_v53, %v2976_v37  ;;  %v4408_v2 = vpop.f32.mrb[142].mxu0  ;;  %v4578_v5 = vpop.f32.mrb[14].mxu1 }
 0x26b   : > { %v4409_v15 = vpop.f32.mrb[143].mxu0  ;;  %v2979_v17 = vpop.f32.mrb[15].mxu1 }
 0x26c   : > { %v4696_v43 = vadd.f32 %v5847_v49, %v4407_v38  ;;  %v4410_v10 = vadd.f32 %v4409_v15, %v4408_v2  ;;  %v6030_v51 = vadd.f32 %v4705_v45, %v2979_v17  ;;  %v5202_v49 = vmov (!%p6255_p4), 0.0  }
 0x26d   : > { %3251 = vst [vmem:[#allocation9] sm:$0x1] (!%p6255_p4), %v5202_v49  ;;  %3252 = vst [vmem:[#allocation11] sm:$0x1] (!%p6255_p4), %v5202_v49 }
 0x26e   : > { %v6032_v28 = vadd.f32 %v4696_v43, %v4577_v3  ;;  %v4702_v25 = vadd.f32 %v5855_v39, %v4410_v10  ;;  %v4005_v26 = vpack.c.bf16 %v6030_v51, %v6027_v56  ;;  %3250 = sbr.rel (%p6255_p4) target bundleno = 629 (0x275), region = 40 }
 0x270   : > { %v6037_v12 = vadd.f32 %v4702_v25, %v4578_v5  ;;  %4025 = vst [vmem:[%s5915_s23 + $0x70] sm:$0xff] %v4005_v26  }
 0x272   : > { %v4010_v11 = vpack.c.bf16 %v6037_v12, %v6032_v28 }
 0x274   : > { %4026 = vst [vmem:[%s5915_s23 + $0x78] sm:$0xff] %v4010_v11  }
 0x275 PF: > { %v3254_v39 = vadd.f32 %v5903_v8, %v5898_v52  ;;  %s3931_s9 = sshll.u32 %s5254_s19, 11  ;;  %s3379_s6 = sshll.u32 %s5915_s23, 4  ;;  %v3294_v14 = vmul.f32 %v5898_v52, %v5898_v52  ;;  %v3295_v0 = vmul.f32 %v5903_v8, %v5903_v8  ;;  %s6056_s6 = int_to_ptr.vmem [resolvable:$true] %s3379_s6 }
 0x276   : > { %s6052_s10 = scalar_lea.hbm %s6234_s2, %s3931_s9  ;;  %s3366_s5 = scalar_lea.sflag [#allocation5], %s5373_s12 }
 0x277   : > { %v3255_v44 = vadd.f32 %v5894_v32, %v3254_v39  ;;  %s5068_s7 = scalar_lea.vmem %s6056_s6, 2048  ;;  %s5203_s26 = smov [#allocation8]  }
 0x278   : > { %p5069_p6 = scmp.ne.s32.totalorder %s6056_s6, %s5068_s7  ;;  %s5072_s8 = sshll.u32 %s5203_s26, 4  ;;  %s5073_s8 = int_to_ptr.vmem [resolvable:$false] %s5072_s8 }
 0x279   : > { %v3256_v40 = vadd.f32 %v5900_v34, %v3255_v44  ;;  %s5074_s28 = scalar_lea.vmem %s5073_s8, 4096  ;;  %p5075_p13 = scmp.lt.s32.totalorder %s6056_s6, %s5073_s8 }
 0x27a   : > { %p5070_p8 = pnand %p5069_p6, %p5325_p11  ;;  %p5076_p3 = scmp.lt.s32.totalorder %s5074_s28, %s5068_s7 }
 0x27b   : > { %v3257_v41 = vadd.f32 %v5922_v27, %v3256_v40 }
 0x27c   : > { %p5071_p9 = pneg %p5070_p8  ;;  %p5077_p7 = por %p5076_p3, %p5075_p13 }
 0x27e   : > { %p5078_p10 = pnand %p5077_p7, %p5071_p9 }
 0x280   : > { %5081 = shalt.err (!%p5078_p10)
}
 0x281   : > { %s5082_s11 = scalar_lea.hbm %s6052_s10, 2048  ;;  %s5086_s20 = scalar_lea.hbm %s6234_s2, 4096 }
 0x282   : > { %p5083_p2 = scmp.ne.s32.totalorder %s6052_s10, %s5082_s11  ;;  %p5087_p12 = scmp.lt.u32.totalorder %s6052_s10, %s6234_s2 }
 0x283   : > { %p5088_p1 = scmp.lt.u32.totalorder %s5086_s20, %s5082_s11  ;;  %p5090_p6 = scmp.lt.u32.totalorder %s5082_s11, %s6052_s10 }
 0x284   : > { %p5084_p0 = pnand %p5083_p2, %p5325_p11 }
 0x285   : > { %p5089_p4 = por %p5088_p1, %p5087_p12 }
 0x286   : > { %p5085_p5 = pneg %p5084_p0 }
 0x287   : > { %p5091_p8 = por %p5090_p6, %p5089_p4 }
 0x289   : > { %p5092_p9 = pnand %p5091_p8, %p5085_p5 }
 0x28b   : > { %5095 = shalt.err (!%p5092_p9)
}
 0x28c   : > { %s5204_s9 = smov 64   ;;  %s5205_s25 = smov 4   ;;  %v3296_v52 = vmul.f32 %v5894_v32, %v5894_v32  ;;  %v3258_v8 = vadd.f32 %v5928_v46, %v3257_v41  ;;  %v3297_v59 = vmul.f32 %v5900_v34, %v5900_v34  ;;  %v3326_v33 = vadd.f32 %v3295_v0, %v3294_v14 }
 0x28d   : > { %4764 = dma.vmem_to_hbm [thread:$0]  (%p5325_p11), %s6056_s6, 2048, %s6052_s10, %s3366_s5, %s5204_s9, %s5204_s9, %s5205_s25   ;;  %v3298_v55 = vmul.f32 %v5922_v27, %v5922_v27  ;;  %v3299_v48 = vmul.f32 %v5928_v46, %v5928_v46  ;;  %v3300_v21 = vmul.f32 %v5919_v61, %v5919_v61  ;;  %v3301_v45 = vmul.f32 %v5925_v22, %v5925_v22 }
 0x28e   : > { %v3259_v54 = vadd.f32 %v5919_v61, %v3258_v8  ;;  %v3327_v30 = vadd.f32 %v3326_v33, %v3296_v52  ;;  %v3302_v3 = vmul.f32 %v5941_v50, %v5941_v50  ;;  %v3303_v37 = vmul.f32 %v5947_v60, %v5947_v60  ;;  %s5206_s30 = smov [#allocation9]   ;;  %p6256_p13 = scmp.eq.s32.totalorder %s5254_s19, 1 }
 0x28f   : > { %v3304_v2 = vmul.f32 %v5938_v58, %v5938_v58  ;;  %v3305_v15 = vmul.f32 %v5944_v6, %v5944_v6  ;;  %v3306_v43 = vmul.f32 %v5961_v23, %v5961_v23  ;;  %v3307_v25 = vmul.f32 %v5967_v57, %v5967_v57  ;;  %s3393_s12 = sshll.u32 %s5206_s30, 4  ;;  %s3394_s12 = int_to_ptr.vmem [resolvable:$true] %s3393_s12 }
 0x290   : > { %v3260_v20 = vadd.f32 %v5925_v22, %v3259_v54  ;;  %v3328_v53 = vadd.f32 %v3327_v30, %v3297_v59  ;;  %v3308_v11 = vmul.f32 %v5958_v13, %v5958_v13  ;;  %v3309_v39 = vmul.f32 %v5964_v18, %v5964_v18  ;;  %s5096_s29 = scalar_lea.vmem %s3394_s12, 16  ;;  %s5102_s10 = scalar_lea.vmem %s3394_s12, 32 }
 0x291   : > { %v3310_v40 = vmul.f32 %v5980_v62, %v5980_v62  ;;  %v3311_v0 = vmul.f32 %v5985_v16, %v5985_v16  ;;  %v3312_v52 = vmul.f32 %v5977_v4, %v5977_v4  ;;  %v3313_v59 = vmul.f32 %v5982_v7, %v5982_v7  ;;  %p5097_p11 = scmp.ne.s32.totalorder %s3394_s12, %s5096_s29  ;;  %p5103_p10 = scmp.lt.s32.totalorder %s3394_s12, %s3394_s12 }
 0x292   : > { %v3261_v32 = vadd.f32 %v5941_v50, %v3260_v20  ;;  %v3329_v36 = vadd.f32 %v3328_v53, %v3298_v55  ;;  %v3314_v54 = vmul.f32 %v5997_v63, %v5997_v63  ;;  %v3315_v30 = vmul.f32 %v6001_v24, %v6001_v24  ;;  %p5104_p2 = scmp.lt.s32.totalorder %s5102_s10, %s5096_s29 }
 0x293   : > { %p5098_p3 = pnand %p5097_p11, %p6256_p13 }
 0x294   : > { %v3262_v34 = vadd.f32 %v5947_v60, %v3261_v32  ;;  %v3330_v29 = vadd.f32 %v3329_v36, %v3299_v48  ;;  %v3316_v48 = vmul.f32 %v5995_v19, %v5995_v19  ;;  %v3317_v32 = vmul.f32 %v5999_v42, %v5999_v42  ;;  %p5105_p0 = por %p5104_p2, %p5103_p10 }
 0x295   : > { %v3318_v36 = vmul.f32 %v6013_v1, %v6013_v1  ;;  %p5099_p7 = pneg %p5098_p3 }
 0x296   : > { %v3263_v27 = vadd.f32 %v5938_v58, %v3262_v34  ;;  %v3331_v31 = vadd.f32 %v3330_v29, %v3300_v21 }
 0x297   : > { %p5106_p5 = pnand %p5105_p0, %p5099_p7 }
 0x298   : > { %v3264_v46 = vadd.f32 %v5944_v6, %v3263_v27  ;;  %v3332_v38 = vadd.f32 %v3331_v31, %v3301_v45  ;;  %v3319_v45 = vmul.f32 %v6017_v35, %v6017_v35  ;;  %v3320_v27 = vmul.f32 %v6011_v9, %v6011_v9 }
 0x299   : > { %v3321_v31 = vmul.f32 %v6015_v47, %v6015_v47 }
 0x29a   : > { %v3265_v61 = vadd.f32 %v5961_v23, %v3264_v46  ;;  %v3333_v5 = vadd.f32 %v3332_v38, %v3302_v3 }
 0x29c   : > { %v3266_v22 = vadd.f32 %v5967_v57, %v3265_v61  ;;  %v3334_v17 = vadd.f32 %v3333_v5, %v3303_v37  ;;  %v3322_v37 = vmul.f32 %v6027_v56, %v6027_v56  ;;  %v3323_v61 = vmul.f32 %v6030_v51, %v6030_v51 }
 0x29d   : > { %v3324_v5 = vmul.f32 %v6032_v28, %v6032_v28 }
 0x29e   : > { %v3267_v50 = vadd.f32 %v5958_v13, %v3266_v22  ;;  %v3335_v10 = vadd.f32 %v3334_v17, %v3304_v2 }
 0x2a0   : > { %v3268_v60 = vadd.f32 %v5964_v18, %v3267_v50  ;;  %v3336_v26 = vadd.f32 %v3335_v10, %v3305_v15 }
 0x2a2   : > { %v3269_v58 = vadd.f32 %v5980_v62, %v3268_v60  ;;  %v3337_v49 = vadd.f32 %v3336_v26, %v3306_v43 }
 0x2a4   : > { %v3270_v6 = vadd.f32 %v5985_v16, %v3269_v58  ;;  %v3338_v44 = vadd.f32 %v3337_v49, %v3307_v25  ;;  %v3253_v25 = vld [vmem:[#allocation9] sm:$0x1] }
 0x2a6   : > { %v3271_v23 = vadd.f32 %v5977_v4, %v3270_v6  ;;  %v3339_v14 = vadd.f32 %v3338_v44, %v3308_v11 }
 0x2a8   : > { %v3272_v57 = vadd.f32 %v5982_v7, %v3271_v23  ;;  %v3340_v41 = vadd.f32 %v3339_v14, %v3309_v39 }
 0x2aa   : > { %v3273_v13 = vadd.f32 %v5997_v63, %v3272_v57  ;;  %v3341_v8 = vadd.f32 %v3340_v41, %v3310_v40 }
 0x2ac   : > { %v3274_v18 = vadd.f32 %v6001_v24, %v3273_v13  ;;  %v3342_v33 = vadd.f32 %v3341_v8, %v3311_v0 }
 0x2ae   : > { %v3275_v62 = vadd.f32 %v5995_v19, %v3274_v18  ;;  %v3343_v55 = vadd.f32 %v3342_v33, %v3312_v52 }
 0x2b0   : > { %v3276_v16 = vadd.f32 %v5999_v42, %v3275_v62  ;;  %v3344_v20 = vadd.f32 %v3343_v55, %v3313_v59 }
 0x2b2   : > { %v3277_v4 = vadd.f32 %v6013_v1, %v3276_v16  ;;  %v3345_v53 = vadd.f32 %v3344_v20, %v3314_v54 }
 0x2b4   : > { %v3278_v7 = vadd.f32 %v6017_v35, %v3277_v4  ;;  %v3346_v21 = vadd.f32 %v3345_v53, %v3315_v30 }
 0x2b6   : > { %v3279_v63 = vadd.f32 %v6011_v9, %v3278_v7  ;;  %v3347_v34 = vadd.f32 %v3346_v21, %v3316_v48 }
 0x2b8   : > { %v3280_v24 = vadd.f32 %v6015_v47, %v3279_v63  ;;  %v3348_v29 = vadd.f32 %v3347_v34, %v3317_v32  ;;  %v3325_v47 = vmul.f32 %v6037_v12, %v6037_v12 }
 0x2ba   : > { %v3281_v19 = vadd.f32 %v6027_v56, %v3280_v24  ;;  %v3349_v3 = vadd.f32 %v3348_v29, %v3318_v36 }
 0x2bc   : > { %v3282_v42 = vadd.f32 %v6030_v51, %v3281_v19  ;;  %v3350_v46 = vadd.f32 %v3349_v3, %v3319_v45 }
 0x2be   : > { %v3283_v1 = vadd.f32 %v6032_v28, %v3282_v42  ;;  %v3351_v38 = vadd.f32 %v3350_v46, %v3320_v27 }
 0x2c0   : > { %v3284_v35 = vadd.f32 %v6037_v12, %v3283_v1  ;;  %v3352_v2 = vadd.f32 %v3351_v38, %v3321_v31 }
 0x2c2   : > { %v3285_v9 = vrot.slane %v3284_v35, 4  ;;  %v3353_v22 = vadd.f32 %v3352_v2, %v3322_v37 }
 0x2c4   : > { %v3286_v15 = vadd.f32 %v3285_v9, %v3284_v35  ;;  %v3354_v17 = vadd.f32 %v3353_v22, %v3323_v61 }
 0x2c6   : > { %v3287_v50 = vrot.slane %v3286_v15, 2  ;;  %v3355_v43 = vadd.f32 %v3354_v17, %v3324_v5 }
 0x2c8   : > { %v3288_v56 = vadd.f32 %v3287_v50, %v3286_v15  ;;  %v3356_v10 = vadd.f32 %v3355_v43, %v3325_v47 }
 0x2ca   : > { %v3289_v60 = vrot.slane %v3288_v56, 1  ;;  %v3357_v26 = vrot.slane %v3356_v10, 4 }
 0x2cc   : > { %v3290_v51 = vadd.f32 %v3289_v60, %v3288_v56  ;;  %v3358_v58 = vadd.f32 %v3357_v26, %v3356_v10 }
 0x2ce   : > { %v3291_v11 = vadd.f32 %v3290_v51, %v3253_v25  ;;  %v3359_v28 = vrot.slane %v3358_v58, 2 }
 0x2d0   : > { %3292 = vst [vmem:[#allocation9] sm:$0x1] %v3291_v11  ;;  %v3360_v49 = vadd.f32 %v3359_v28, %v3358_v58 }
 0x2d1   : > { %5109 = shalt.err (!%p5106_p5)
}
 0x2d2   : > { %s5110_s7 = scalar_lea.hbm %s6235_s3, 16  ;;  %p6257_p1 = pmov %p6256_p13 }
 0x2d3   : > { %p5111_p12 = scmp.ne.s32.totalorder %s6235_s3, %s5110_s7  ;;  %p5116_p8 = scmp.lt.u32.totalorder %s5110_s7, %s6235_s3 }
 0x2d5   : > { %p5112_p4 = pnand %p5111_p12, %p6257_p1 }
 0x2d7   : > { %p5113_p6 = pneg %p5112_p4 }
 0x2d9   : > { %p5118_p9 = pnand %p5116_p8, %p5113_p6 }
 0x2db   : > { %5121 = shalt.err (!%p5118_p9)
}
 0x2dc   : > { %p6258_p11 = pmov %p6257_p1  ;;  %v3361_v12 = vrot.slane %v3360_v49, 1  ;;  %v3293_v6 = vld [vmem:[#allocation11] sm:$0x1]  ;;  %s5207_s20 = smov [#allocation11]  }
 0x2dd   : > { %s3404_s21 = sshll.u32 %s5207_s20, 4  ;;  %p6259_p3 = pmov %p6257_p1  ;;  %s3405_s21 = int_to_ptr.vmem [resolvable:$true] %s3404_s21 }
 0x2de   : > { %4766 = dma.vmem_to_hbm [thread:$0]  (%p6258_p11), %s3394_s12, 16, %s6235_s3, [#allocation10]   ;;  %v3362_v39 = vadd.f32 %v3361_v12, %v3360_v49 }
 0x2df   : > { %s5122_s23 = scalar_lea.vmem %s3405_s21, 16  ;;  %s5128_s9 = scalar_lea.vmem %s3405_s21, 32 }
 0x2e0   : > { %v3363_v44 = vadd.f32 %v3362_v39, %v3293_v6  ;;  %p5123_p13 = scmp.ne.s32.totalorder %s3405_s21, %s5122_s23  ;;  %p5129_p2 = scmp.lt.s32.totalorder %s3405_s21, %s3405_s21 }
 0x2e1   : > { %p5130_p0 = scmp.lt.s32.totalorder %s5128_s9, %s5122_s23 }
 0x2e2   : > { %3364 = vst [vmem:[#allocation11] sm:$0x1] %v3363_v44  ;;  %p5124_p7 = pnand %p5123_p13, %p6259_p3 }
 0x2e3   : > { %p5131_p5 = por %p5130_p0, %p5129_p2 }
 0x2e4   : > { %p5125_p10 = pneg %p5124_p7 }
 0x2e6   : > { %p5132_p12 = pnand %p5131_p5, %p5125_p10 }
 0x2e8   : > { %5135 = shalt.err (!%p5132_p12)
}
 0x2e9   : > { %s5136_s12 = scalar_lea.hbm %s6236_s4, 16  ;;  %p6260_p4 = pmov %p6259_p3 }
 0x2ea   : > { %p5137_p1 = scmp.ne.s32.totalorder %s6236_s4, %s5136_s12  ;;  %p5142_p9 = scmp.lt.u32.totalorder %s5136_s12, %s6236_s4 }
 0x2ec   : > { %p5138_p6 = pnand %p5137_p1, %p6260_p4 }
 0x2ee   : > { %p5139_p8 = pneg %p5138_p6 }
 0x2f0   : > { %p5144_p11 = pnand %p5142_p9, %p5139_p8 }
 0x2f2   : > { %5147 = shalt.err (!%p5144_p11)
}
 0x2f3   : > { %p6261_p13 = pmov %p6259_p3 }
 0x2f5   : > { %4768 = dma.vmem_to_hbm [thread:$0]  (%p6261_p13), %s3405_s21, 16, %s6236_s4, [#allocation10]  }
 0x2f6   : > { %5173 = dma.done.wait (%p6259_p3), [#allocation10], 32   ;;  %p6262_p7 = pmov %p6259_p3 }
 0x2f8   : > { %5175 = vsyncadd (%p6262_p7), [#allocation10], 4294967264 }
 0x2f9 PF: > { %s3424_s8 = sand.u32 1, %s5182_s15   ;;  %p6263_p10 = scmp.ne.s32.totalorder %s6241_s22, 0 }
 0x2fa   : > { %p6264_p2 = scmp.ge.s32.totalorder %s5194_s18, 2  ;;  %s3425_s28 = scalar_lea.sflag [#allocation5], %s3424_s8 }
 0x2fc   : > { %p4783_p0 = pnand %p6264_p2, %p6263_p10 }
 0x2fe   : > { %5177 = dma.done.wait (!%p4783_p0), %s3425_s28, 2048  }
 0x2ff   : > { %5179 = vsyncadd (!%p4783_p0), %s3425_s28, 4294965248  ;;  %p20_p5 = scmp.ge.s32.totalorder %s5290_s27, 4   ;;  %s6265_s15 = smov %s5186_s16 }
 0x300   : > { %s6266_s16 = smov %s5190_s17  ;;  %s6267_s17 = smov %s5321_s24 }
 0x301   : > { %s6268_s18 = smov %s5290_s27  ;;  %22 = sbr.rel (!%p20_p5) target bundleno = 7 (0x7), region = 101 }
 0x308   :  { %3430 = vsyncpa [#allocation4], 1 }
 0x309   :  { %3432 = vsyncpa [#allocation4 + $0x1], 1 }
 0x30a   :  { %3433 = vsyncpa [#allocation7], 1 }
 0x30b   :  { %3434 = vsyncpa [#allocation5], 1 }
 0x30c   :  { %3436 = vsyncpa [#allocation5 + $0x1], 1 }
 0x30d   :  { %3437 = vsyncpa [#allocation10], 1 }

</bundles_post_ra>
